<compile_context>
chip_gen: v7x
topology: tpu7x:2x2x1
jax: 0.10.0
libtpu: 0.0.40
codegen_flags: <defaults>
</compile_context>

<pallas_src>
import functools
import math

import jax
import jax.numpy as jnp
from jax.experimental import pallas as pl
from jax.experimental.pallas import tpu as pltpu

LN_EPS = 1e-5


def _layernorm(y, g, b):
    mu = jnp.mean(y, axis=-1, keepdims=True)
    var = jnp.mean((y - mu) ** 2, axis=-1, keepdims=True)
    return (y - mu) * jax.lax.rsqrt(var + LN_EPS) * g + b


def _make_kernel(head_num: int, feat_dim: int, hidden_pad: int):
    H, F, Hp = head_num, feat_dim, hidden_pad
    D = F // H

    def kernel(xf_ref, xq_ref, adj_ref, wqkvs_ref, wout_ref, w1_ref, w2_ref,
               bias_ref, out_ref):
        bias = bias_ref[...]                          # [8, W] f32: packed bias / LN vectors
        b_proj = bias[0:1, :4 * F]                    # bq | bk | bv | (bskip@Wout + bout)

        # Fused q|k|v|(skip@Wout) projection: ONE lane-dense [*, 4F] bf16 RHS.
        wqkvs = wqkvs_ref[...]                        # [F, 4F] bf16
        proj_all = jnp.dot(xf_ref[...].astype(jnp.bfloat16), wqkvs,
                           preferred_element_type=jnp.float32) + b_proj    # [N, 4F] (K/V used)
        x_q = xq_ref[...]                             # [Tq, F] f32: this q-block's node rows
        proj_q = jnp.dot(x_q.astype(jnp.bfloat16), wqkvs,
                         preferred_element_type=jnp.float32) + b_proj      # [Tq, 4F] (Q/skip used)

        k16 = proj_all[:, F:2 * F].astype(jnp.bfloat16)       # [N, F]
        v16 = proj_all[:, 2 * F:3 * F].astype(jnp.bfloat16)   # [N, F]
        q16 = proj_q[:, 0:F].astype(jnp.bfloat16)             # [Tq, F] (1/sqrt(D) folded into Wq)
        skip_out = proj_q[:, 3 * F:4 * F]                      # [Tq, F] f32: (x Wskip + bskip) Wout + bout

        # --- masked multi-head attention ------------------------------------------------
        # Additive mask built ONCE from the int8 adjacency row-block: 1 -> 0, 0 -> -1e30.
        neg = (adj_ref[...].astype(jnp.float32) - 1.0) * 1e30          # [Tq, N] f32
        dn = (((1,), (1,)), ((), ()))                                   # contract the head dim D
        s = jnp.stack(
            [jax.lax.dot_general(q16[:, h * D:(h + 1) * D],
                                 k16[:, h * D:(h + 1) * D], dn,
                                 preferred_element_type=jnp.float32)
             for h in range(H)], axis=0) + neg[None]                    # [H, Tq, N]

        m = jnp.max(s, axis=-1, keepdims=True)                          # [H, Tq, 1]
        p = jnp.exp(s - m)                       # off-edge entries underflow to exact 0.0
        denom = jnp.sum(p, axis=-1, keepdims=True)
        # Rows with no in-neighbours (m ~ -1e30) get alpha == 0 (softmax over an empty set).
        inv = jnp.where(m > -1e29, pl.reciprocal(denom, approx=True), 0.0)
        alpha = (p * inv).astype(jnp.bfloat16)                          # [H, Tq, N]

        # --- alpha @ V per head; head-concat folded into the Wout matmul -----------------
        wout = wout_ref[...]                     # [F, F] f32 (8-row slices = aligned f32 tiles)
        out1 = skip_out
        for h in range(H):
            av = jnp.dot(alpha[h], v16[:, h * D:(h + 1) * D],
                         preferred_element_type=jnp.float32)             # [Tq, D]
            out1 = out1 + jnp.dot(av, wout[h * D:(h + 1) * D, :],
                                  preferred_element_type=jnp.float32)    # [Tq, F]

        # --- residual LayerNorm + MLP (hidden zero-padded to a lane-dense width) ---------
        out2 = _layernorm(out1 + x_q, bias[1:2, :F], bias[2:3, :F])
        hmid = jnp.maximum(
            jnp.dot(out2.astype(jnp.bfloat16), w1_ref[...],
                    preferred_element_type=jnp.float32) + bias[3:4, :Hp], 0.0)   # [Tq, Hp]
        out3 = jnp.dot(hmid.astype(jnp.bfloat16), w2_ref[...],
                       preferred_element_type=jnp.float32) + bias[4:5, :F]
        out_ref[...] = _layernorm(out3 + out2, bias[5:6, :F], bias[6:7, :F])

    return kernel


def _fuse_params(params, head_num):
    """Host-side packing: fused projection weight, zero-padded MLP, one packed bias tile."""
    F = params["wq"].shape[0]
    D = F // head_num
    scale = 1.0 / math.sqrt(D)
    Hd = params["w1"].shape[1]
    Hp = max(128, ((Hd + 127) // 128) * 128)      # zero-pad MLP hidden dim to lane-dense width
    W = max(4 * F, Hp)

    # Exact algebraic folds: 1/sqrt(D) into Wq/bq; skip path through Wout (+ bout) into column 3.
    wq = params["wq"] * scale
    bq = params["bq"] * scale
    wskip_out = params["wskip"] @ params["wout"]
    bskip_out = params["bskip"] @ params["wout"] + params["bout"]
    wqkvs = jnp.concatenate([wq, params["wk"], params["wv"], wskip_out], axis=1)   # [F, 4F]
    bqkvs = jnp.concatenate([bq, params["bk"], params["bv"], bskip_out], axis=1)   # [1, 4F]

    w1 = jnp.zeros((F, Hp), jnp.float32).at[:, :Hd].set(params["w1"])
    b1 = jnp.zeros((1, Hp), jnp.float32).at[:, :Hd].set(params["b1"])
    w2 = jnp.zeros((Hp, F), jnp.float32).at[:Hd, :].set(params["w2"])

    # All tiny [1,*] bias / LayerNorm vectors packed into ONE (8, W) f32 tile -> one DMA.
    bias = jnp.zeros((8, W), jnp.float32)
    bias = bias.at[0, :4 * F].set(bqkvs[0])
    bias = bias.at[1, :F].set(params["ln1_g"][0])
    bias = bias.at[2, :F].set(params["ln1_b"][0])
    bias = bias.at[3, :Hp].set(b1[0])
    bias = bias.at[4, :F].set(params["b2"][0])
    bias = bias.at[5, :F].set(params["ln2_g"][0])
    bias = bias.at[6, :F].set(params["ln2_b"][0])

    return dict(
        wqkvs=wqkvs.astype(jnp.bfloat16),
        wout=params["wout"],                       # f32 (sliced per head in 8-row groups)
        w1=w1.astype(jnp.bfloat16),
        w2=w2.astype(jnp.bfloat16),
        bias=bias,
    )


@functools.partial(jax.jit, static_argnames=("head_num",))
def graph_transformer_forward(x, edge_index, params, head_num):
    """x: [N, F] float32, edge_index: [2, E] int32 (row0=source, row1=target).

    N may cover several graphs stacked block-diagonally along the node axis; batch enough
    graphs that N is a multiple of 128 so every row block is lane-dense.
    """
    N, F = x.shape
    # Plain-JAX glue: int8 dense adjacency (target row, source col) from the sparse edge list.
    adj = jnp.zeros((N, N), jnp.int8).at[edge_index[1], edge_index[0]].set(1)
    fused = _fuse_params(params, head_num)
    Hp = fused["w1"].shape[1]
    Wb = fused["bias"].shape[1]

    # One q-block of 128 node rows per grid step ("parallel" -> both TensorCores on v7x).
    tile_n = 128 if (N % 128 == 0) else N
    grid = (N // tile_n,)

    kernel = _make_kernel(head_num, F, Hp)
    return pl.pallas_call(
        kernel,
        out_shape=jax.ShapeDtypeStruct((N, F), jnp.float32),
        grid=grid,
        in_specs=[
            pl.BlockSpec((N, F), lambda i: (0, 0)),        # x (all nodes, VMEM-resident) -> K/V
            pl.BlockSpec((tile_n, F), lambda i: (i, 0)),   # x (this q-block) -> Q/skip/residuals
            pl.BlockSpec((tile_n, N), lambda i: (i, 0)),   # int8 adjacency row-block
            pl.BlockSpec((F, 4 * F), lambda i: (0, 0)),    # fused q|k|v|skip@out weight (bf16)
            pl.BlockSpec((F, F), lambda i: (0, 0)),        # wout (f32)
            pl.BlockSpec((F, Hp), lambda i: (0, 0)),       # w1 (bf16, hidden zero-padded)
            pl.BlockSpec((Hp, F), lambda i: (0, 0)),       # w2 (bf16, hidden zero-padded)
            pl.BlockSpec((8, Wb), lambda i: (0, 0)),       # packed biases / LayerNorm params
        ],
        out_specs=pl.BlockSpec((tile_n, F), lambda i: (i, 0)),
        compiler_params=pltpu.CompilerParams(dimension_semantics=("parallel",)),
    )(x, x, adj, fused["wqkvs"], fused["wout"], fused["w1"], fused["w2"], fused["bias"])


def graph_transformer_reference(x, edge_index, params, head_num):
    """Plain-JAX f32 reference (mirrors PyTorch module semantics)."""
    N, F = x.shape
    H, D = head_num, F // head_num
    adj = jnp.zeros((N, N), jnp.float32).at[edge_index[1], edge_index[0]].set(1.0)

    q = x @ params["wq"] + params["bq"]
    k = x @ params["wk"] + params["bk"]
    v = x @ params["wv"] + params["bv"]
    skip = x @ params["wskip"] + params["bskip"]
    heads = []
    for h in range(H):
        qh, kh, vh = (a[:, h * D:(h + 1) * D] for a in (q, k, v))
        s = (qh @ kh.T) / math.sqrt(D)
        s = jnp.where(adj > 0.0, s, -1e30)
        p = jnp.exp(s - jnp.max(s, axis=-1, keepdims=True)) * adj
        alpha = p / jnp.maximum(jnp.sum(p, axis=-1, keepdims=True), 1e-30)
        heads.append(alpha @ vh)
    conv = jnp.concatenate(heads, axis=-1) + skip
    out1 = conv @ params["wout"] + params["bout"]
    out2 = _layernorm(out1 + x, params["ln1_g"], params["ln1_b"])
    out3 = jnp.maximum(out2 @ params["w1"] + params["b1"], 0.0) @ params["w2"] + params["b2"]
    return _layernorm(out3 + out2, params["ln2_g"], params["ln2_b"])


def init_params(key, input_dim, hidden_dim):
    """Deterministic synthetic parameters. Linear weights stored as [in, out] so y = x @ W + b."""
    ks = jax.random.split(key, 16)
    s = 0.1

    def w(k, shape):
        return (s * jax.random.normal(k, shape)).astype(jnp.float32)

    F, Hd = input_dim, hidden_dim
    return {
        "wq": w(ks[0], (F, F)),    "bq": w(ks[1], (1, F)),
        "wk": w(ks[2], (F, F)),    "bk": w(ks[3], (1, F)),
        "wv": w(ks[4], (F, F)),    "bv": w(ks[5], (1, F)),
        "wskip": w(ks[6], (F, F)), "bskip": w(ks[7], (1, F)),
        "wout": w(ks[8], (F, F)),  "bout": w(ks[9], (1, F)),
        "ln1_g": jnp.ones((1, F), jnp.float32) + w(ks[10], (1, F)),
        "ln1_b": w(ks[11], (1, F)),
        "w1": w(ks[12], (F, Hd)), "b1": w(ks[13], (1, Hd)),
        "w2": w(ks[14], (Hd, F)), "b2": w(ks[15], (1, F)),
        "ln2_g": jnp.ones((1, F), jnp.float32),
        "ln2_b": jnp.zeros((1, F), jnp.float32),
    }


if __name__ == "__main__":
    # Module-consistent shapes: 8 nodes/graph, input_dim=32, 4 heads, hidden=64.
    N_PER_GRAPH, INPUT_DIM, HEAD_NUM, HIDDEN_DIM = 8, 32, 4, 64
    NUM_GRAPHS = 16   # 16 * 8 = 128 node rows -> lane-dense single q-block

    key = jax.random.PRNGKey(0)
    kx, kp = jax.random.split(key)
    params = init_params(kp, INPUT_DIM, HIDDEN_DIM)

    # One ring graph (both directions) + self loops -> every node has in-neighbours.
    src, dst = [], []
    for i in range(N_PER_GRAPH):
        src += [i, i, i]
        dst += [(i + 1) % N_PER_GRAPH, (i - 1) % N_PER_GRAPH, i]
    base_edges = jnp.array([src, dst], dtype=jnp.int32)              # [2, 3*N_PER_GRAPH]

    def batch_graphs(num_graphs, k):
        xg = jax.random.normal(k, (num_graphs * N_PER_GRAPH, INPUT_DIM), jnp.float32)
        ei = jnp.concatenate([base_edges + b * N_PER_GRAPH for b in range(num_graphs)], axis=1)
        return xg, ei

    # --- case 1: N = 128 (one lane-dense q-block, grid=(1,)) ---
    x, edge_index = batch_graphs(NUM_GRAPHS, kx)
    out = jax.block_until_ready(graph_transformer_forward(x, edge_index, params, HEAD_NUM))
    assert out.shape == (NUM_GRAPHS * N_PER_GRAPH, INPUT_DIM)
    assert bool(jnp.all(jnp.isfinite(out)))
    ref = graph_transformer_reference(x, edge_index, params, HEAD_NUM)
    err = float(jnp.max(jnp.abs(out - ref)))
    assert err < 5e-2, err    # bf16 MXU operands cost ~1e-2 abs vs the pure-f32 reference
    # Node-axis batching is exact: graph 0's slice matches the single-graph reference.
    ref0 = graph_transformer_reference(x[:N_PER_GRAPH], base_edges, params, HEAD_NUM)
    assert bool(jnp.allclose(out[:N_PER_GRAPH], ref0, rtol=5e-2, atol=5e-2))

    # --- case 2: N = 256 (two 128-row q-blocks -> exercises the tiled "parallel" grid path) ---
    x2, ei2 = batch_graphs(2 * NUM_GRAPHS, kx)
    out2 = jax.block_until_ready(graph_transformer_forward(x2, ei2, params, HEAD_NUM))
    ref2 = graph_transformer_reference(x2, ei2, params, HEAD_NUM)
    err2 = float(jnp.max(jnp.abs(out2 - ref2)))
    assert out2.shape == (2 * NUM_GRAPHS * N_PER_GRAPH, INPUT_DIM)
    assert err2 < 5e-2, err2

    print("KERNEL_OK")
</pallas_src>

<mosaic_0001>
module attributes {stable_mosaic.version = 11 : i64} {
  func.func @kernel(%arg0: i32, %arg1: memref<128x32xf32, #tpu.memory_space<vmem>>, %arg2: memref<128x32xf32, #tpu.memory_space<vmem>>, %arg3: memref<128x128xi8, #tpu.memory_space<vmem>>, %arg4: memref<32x128xbf16, #tpu.memory_space<vmem>>, %arg5: memref<32x32xf32, #tpu.memory_space<vmem>>, %arg6: memref<32x128xbf16, #tpu.memory_space<vmem>>, %arg7: memref<128x32xbf16, #tpu.memory_space<vmem>>, %arg8: memref<8x128xf32, #tpu.memory_space<vmem>>, %arg9: memref<128x32xf32, #tpu.memory_space<vmem>>) attributes {dimension_semantics = [#tpu.dimension_semantics<parallel>], iteration_bounds = array<i64: 1>, scalar_prefetch = 0 : i64, scratch_operands = 0 : i64, tpu.core_type = #tpu.core_type<tc>, window_params = [{pipeline_mode = #tpu.pipeline_mode<synchronous>, transform_indices = @transform_0, window_bounds = array<i64: 128, 32>}, {transform_indices = @transform_1, window_bounds = array<i64: 128, 32>}, {transform_indices = @transform_2, window_bounds = array<i64: 128, 128>}, {pipeline_mode = #tpu.pipeline_mode<synchronous>, transform_indices = @transform_3, window_bounds = array<i64: 32, 128>}, {pipeline_mode = #tpu.pipeline_mode<synchronous>, transform_indices = @transform_4, window_bounds = array<i64: 32, 32>}, {pipeline_mode = #tpu.pipeline_mode<synchronous>, transform_indices = @transform_5, window_bounds = array<i64: 32, 128>}, {pipeline_mode = #tpu.pipeline_mode<synchronous>, transform_indices = @transform_6, window_bounds = array<i64: 128, 32>}, {pipeline_mode = #tpu.pipeline_mode<synchronous>, transform_indices = @transform_7, window_bounds = array<i64: 8, 128>}, {transform_indices = @transform_8, window_bounds = array<i64: 128, 32>}]} {
    %c0 = arith.constant 0 : index
    %c0_0 = arith.constant 0 : index
    %0 = vector.load %arg8[%c0, %c0_0] : memref<8x128xf32, #tpu.memory_space<vmem>>, vector<8x128xf32>
    %1 = vector.extract_strided_slice %0 {offsets = [0, 0], sizes = [1, 128], strides = [1, 1]} : vector<8x128xf32> to vector<1x128xf32>
    %c0_1 = arith.constant 0 : index
    %c0_2 = arith.constant 0 : index
    %2 = vector.load %arg4[%c0_1, %c0_2] : memref<32x128xbf16, #tpu.memory_space<vmem>>, vector<32x128xbf16>
    %c0_3 = arith.constant 0 : index
    %c0_4 = arith.constant 0 : index
    %3 = vector.load %arg1[%c0_3, %c0_4] : memref<128x32xf32, #tpu.memory_space<vmem>>, vector<128x32xf32>
    %4 = arith.truncf %3 : vector<128x32xf32> to vector<128x32xbf16>
    %cst = arith.constant dense<0.000000e+00> : vector<128x128xf32>
    %5 = tpu.matmul %4, %2, %cst {dimension_numbers = #tpu.dot_dimension_numbers<[1], [0], [0], [1], [0, 0, 1, 1], [], []>} : vector<128x32xbf16>, vector<32x128xbf16>, vector<128x128xf32> -> vector<128x128xf32>
    %6 = vector.broadcast %1 : vector<1x128xf32> to vector<128x128xf32>
    %7 = arith.addf %5, %6 : vector<128x128xf32>
    %c0_5 = arith.constant 0 : index
    %c0_6 = arith.constant 0 : index
    %8 = vector.load %arg2[%c0_5, %c0_6] : memref<128x32xf32, #tpu.memory_space<vmem>>, vector<128x32xf32>
    %9 = arith.truncf %8 : vector<128x32xf32> to vector<128x32xbf16>
    %cst_7 = arith.constant dense<0.000000e+00> : vector<128x128xf32>
    %10 = tpu.matmul %9, %2, %cst_7 {dimension_numbers = #tpu.dot_dimension_numbers<[1], [0], [0], [1], [0, 0, 1, 1], [], []>} : vector<128x32xbf16>, vector<32x128xbf16>, vector<128x128xf32> -> vector<128x128xf32>
    %11 = vector.broadcast %1 : vector<1x128xf32> to vector<128x128xf32>
    %12 = arith.addf %10, %11 : vector<128x128xf32>
    %13 = vector.extract_strided_slice %7 {offsets = [0, 32], sizes = [128, 32], strides = [1, 1]} : vector<128x128xf32> to vector<128x32xf32>
    %14 = arith.truncf %13 : vector<128x32xf32> to vector<128x32xbf16>
    %15 = vector.extract_strided_slice %7 {offsets = [0, 64], sizes = [128, 32], strides = [1, 1]} : vector<128x128xf32> to vector<128x32xf32>
    %16 = arith.truncf %15 : vector<128x32xf32> to vector<128x32xbf16>
    %17 = vector.extract_strided_slice %12 {offsets = [0, 0], sizes = [128, 32], strides = [1, 1]} : vector<128x128xf32> to vector<128x32xf32>
    %18 = arith.truncf %17 : vector<128x32xf32> to vector<128x32xbf16>
    %19 = vector.extract_strided_slice %12 {offsets = [0, 96], sizes = [128, 32], strides = [1, 1]} : vector<128x128xf32> to vector<128x32xf32>
    %c0_8 = arith.constant 0 : index
    %c0_9 = arith.constant 0 : index
    %20 = vector.load %arg3[%c0_8, %c0_9] : memref<128x128xi8, #tpu.memory_space<vmem>>, vector<128x128xi8>
    %21 = arith.sitofp %20 : vector<128x128xi8> to vector<128x128xf32>
    %cst_10 = arith.constant 1.000000e+00 : f32
    %22 = vector.broadcast %cst_10 : f32 to vector<128x128xf32>
    %23 = arith.subf %21, %22 : vector<128x128xf32>
    %cst_11 = arith.constant 1.000000e+30 : f32
    %24 = vector.broadcast %cst_11 : f32 to vector<128x128xf32>
    %25 = arith.mulf %23, %24 : vector<128x128xf32>
    %26 = vector.extract_strided_slice %18 {offsets = [0, 0], sizes = [128, 8], strides = [1, 1]} : vector<128x32xbf16> to vector<128x8xbf16>
    %27 = vector.extract_strided_slice %14 {offsets = [0, 0], sizes = [128, 8], strides = [1, 1]} : vector<128x32xbf16> to vector<128x8xbf16>
    %cst_12 = arith.constant dense<0.000000e+00> : vector<128x128xf32>
    %28 = tpu.matmul %26, %27, %cst_12 {dimension_numbers = #tpu.dot_dimension_numbers<[1], [1], [0], [0], [0, 0, 1, 0], [], []>} : vector<128x8xbf16>, vector<128x8xbf16>, vector<128x128xf32> -> vector<128x128xf32>
    %29 = vector.extract_strided_slice %18 {offsets = [0, 8], sizes = [128, 8], strides = [1, 1]} : vector<128x32xbf16> to vector<128x8xbf16>
    %30 = vector.extract_strided_slice %14 {offsets = [0, 8], sizes = [128, 8], strides = [1, 1]} : vector<128x32xbf16> to vector<128x8xbf16>
    %cst_13 = arith.constant dense<0.000000e+00> : vector<128x128xf32>
    %31 = tpu.matmul %29, %30, %cst_13 {dimension_numbers = #tpu.dot_dimension_numbers<[1], [1], [0], [0], [0, 0, 1, 0], [], []>} : vector<128x8xbf16>, vector<128x8xbf16>, vector<128x128xf32> -> vector<128x128xf32>
    %32 = vector.extract_strided_slice %18 {offsets = [0, 16], sizes = [128, 8], strides = [1, 1]} : vector<128x32xbf16> to vector<128x8xbf16>
    %33 = vector.extract_strided_slice %14 {offsets = [0, 16], sizes = [128, 8], strides = [1, 1]} : vector<128x32xbf16> to vector<128x8xbf16>
    %cst_14 = arith.constant dense<0.000000e+00> : vector<128x128xf32>
    %34 = tpu.matmul %32, %33, %cst_14 {dimension_numbers = #tpu.dot_dimension_numbers<[1], [1], [0], [0], [0, 0, 1, 0], [], []>} : vector<128x8xbf16>, vector<128x8xbf16>, vector<128x128xf32> -> vector<128x128xf32>
    %35 = vector.extract_strided_slice %18 {offsets = [0, 24], sizes = [128, 8], strides = [1, 1]} : vector<128x32xbf16> to vector<128x8xbf16>
    %36 = vector.extract_strided_slice %14 {offsets = [0, 24], sizes = [128, 8], strides = [1, 1]} : vector<128x32xbf16> to vector<128x8xbf16>
    %cst_15 = arith.constant dense<0.000000e+00> : vector<128x128xf32>
    %37 = tpu.matmul %35, %36, %cst_15 {dimension_numbers = #tpu.dot_dimension_numbers<[1], [1], [0], [0], [0, 0, 1, 0], [], []>} : vector<128x8xbf16>, vector<128x8xbf16>, vector<128x128xf32> -> vector<128x128xf32>
    %38 = vector.shape_cast %28 : vector<128x128xf32> to vector<1x128x128xf32>
    %39 = vector.shape_cast %31 : vector<128x128xf32> to vector<1x128x128xf32>
    %40 = vector.shape_cast %34 : vector<128x128xf32> to vector<1x128x128xf32>
    %41 = vector.shape_cast %37 : vector<128x128xf32> to vector<1x128x128xf32>
    %42 = tpu.concatenate %38, %39, %40, %41 in 0 : vector<1x128x128xf32>, vector<1x128x128xf32>, vector<1x128x128xf32>, vector<1x128x128xf32> -> vector<4x128x128xf32>
    %43 = vector.shape_cast %25 : vector<128x128xf32> to vector<1x128x128xf32>
    %44 = vector.broadcast %43 : vector<1x128x128xf32> to vector<4x128x128xf32>
    %45 = arith.addf %42, %44 : vector<4x128x128xf32>
    %cst_16 = arith.constant dense<0xFF800000> : vector<4x128xf32>
    %46 = vector.multi_reduction <maximumf>, %45, %cst_16 [2] : vector<4x128x128xf32> to vector<4x128xf32>
    %47 = vector.shape_cast %46 : vector<4x128xf32> to vector<4x128x1xf32>
    %48 = vector.broadcast %47 : vector<4x128x1xf32> to vector<4x128x128xf32>
    %49 = arith.subf %45, %48 : vector<4x128x128xf32>
    %50 = math.exp %49 : vector<4x128x128xf32>
    %cst_17 = arith.constant dense<0.000000e+00> : vector<4x128xf32>
    %51 = vector.multi_reduction <add>, %50, %cst_17 [2] : vector<4x128x128xf32> to vector<4x128xf32>
    %52 = vector.shape_cast %51 : vector<4x128xf32> to vector<4x128x1xf32>
    %cst_18 = arith.constant -1.000000e+29 : f32
    %53 = vector.broadcast %cst_18 : f32 to vector<4x128x1xf32>
    %54 = arith.cmpf ogt, %47, %53 : vector<4x128x1xf32>
    %55 = tpu.reciprocal %52 {approx = true} : vector<4x128x1xf32> -> vector<4x128x1xf32>
    %cst_19 = arith.constant 0.000000e+00 : f32
    %56 = vector.broadcast %cst_19 : f32 to vector<4x128x1xf32>
    %57 = arith.select %54, %55, %56 : vector<4x128x1xi1>, vector<4x128x1xf32>
    %58 = vector.broadcast %57 : vector<4x128x1xf32> to vector<4x128x128xf32>
    %59 = arith.mulf %50, %58 : vector<4x128x128xf32>
    %60 = arith.truncf %59 : vector<4x128x128xf32> to vector<4x128x128xbf16>
    %c0_20 = arith.constant 0 : index
    %c0_21 = arith.constant 0 : index
    %61 = vector.load %arg5[%c0_20, %c0_21] : memref<32x32xf32, #tpu.memory_space<vmem>>, vector<32x32xf32>
    %62 = vector.extract_strided_slice %60 {offsets = [0, 0, 0], sizes = [1, 128, 128], strides = [1, 1, 1]} : vector<4x128x128xbf16> to vector<1x128x128xbf16>
    %63 = vector.shape_cast %62 : vector<1x128x128xbf16> to vector<128x128xbf16>
    %64 = vector.extract_strided_slice %16 {offsets = [0, 0], sizes = [128, 8], strides = [1, 1]} : vector<128x32xbf16> to vector<128x8xbf16>
    %cst_22 = arith.constant dense<0.000000e+00> : vector<128x8xf32>
    %65 = tpu.matmul %63, %64, %cst_22 {dimension_numbers = #tpu.dot_dimension_numbers<[1], [0], [0], [1], [0, 0, 1, 1], [], []>} : vector<128x128xbf16>, vector<128x8xbf16>, vector<128x8xf32> -> vector<128x8xf32>
    %66 = vector.extract_strided_slice %61 {offsets = [0, 0], sizes = [8, 32], strides = [1, 1]} : vector<32x32xf32> to vector<8x32xf32>
    %cst_23 = arith.constant dense<0.000000e+00> : vector<128x32xf32>
    %67 = tpu.matmul %65, %66, %cst_23 {dimension_numbers = #tpu.dot_dimension_numbers<[1], [0], [0], [1], [0, 0, 1, 1], [], []>} : vector<128x8xf32>, vector<8x32xf32>, vector<128x32xf32> -> vector<128x32xf32>
    %68 = arith.addf %19, %67 : vector<128x32xf32>
    %69 = vector.extract_strided_slice %60 {offsets = [1, 0, 0], sizes = [1, 128, 128], strides = [1, 1, 1]} : vector<4x128x128xbf16> to vector<1x128x128xbf16>
    %70 = vector.shape_cast %69 : vector<1x128x128xbf16> to vector<128x128xbf16>
    %71 = vector.extract_strided_slice %16 {offsets = [0, 8], sizes = [128, 8], strides = [1, 1]} : vector<128x32xbf16> to vector<128x8xbf16>
    %cst_24 = arith.constant dense<0.000000e+00> : vector<128x8xf32>
    %72 = tpu.matmul %70, %71, %cst_24 {dimension_numbers = #tpu.dot_dimension_numbers<[1], [0], [0], [1], [0, 0, 1, 1], [], []>} : vector<128x128xbf16>, vector<128x8xbf16>, vector<128x8xf32> -> vector<128x8xf32>
    %73 = vector.extract_strided_slice %61 {offsets = [8, 0], sizes = [8, 32], strides = [1, 1]} : vector<32x32xf32> to vector<8x32xf32>
    %cst_25 = arith.constant dense<0.000000e+00> : vector<128x32xf32>
    %74 = tpu.matmul %72, %73, %cst_25 {dimension_numbers = #tpu.dot_dimension_numbers<[1], [0], [0], [1], [0, 0, 1, 1], [], []>} : vector<128x8xf32>, vector<8x32xf32>, vector<128x32xf32> -> vector<128x32xf32>
    %75 = arith.addf %68, %74 : vector<128x32xf32>
    %76 = vector.extract_strided_slice %60 {offsets = [2, 0, 0], sizes = [1, 128, 128], strides = [1, 1, 1]} : vector<4x128x128xbf16> to vector<1x128x128xbf16>
    %77 = vector.shape_cast %76 : vector<1x128x128xbf16> to vector<128x128xbf16>
    %78 = vector.extract_strided_slice %16 {offsets = [0, 16], sizes = [128, 8], strides = [1, 1]} : vector<128x32xbf16> to vector<128x8xbf16>
    %cst_26 = arith.constant dense<0.000000e+00> : vector<128x8xf32>
    %79 = tpu.matmul %77, %78, %cst_26 {dimension_numbers = #tpu.dot_dimension_numbers<[1], [0], [0], [1], [0, 0, 1, 1], [], []>} : vector<128x128xbf16>, vector<128x8xbf16>, vector<128x8xf32> -> vector<128x8xf32>
    %80 = vector.extract_strided_slice %61 {offsets = [16, 0], sizes = [8, 32], strides = [1, 1]} : vector<32x32xf32> to vector<8x32xf32>
    %cst_27 = arith.constant dense<0.000000e+00> : vector<128x32xf32>
    %81 = tpu.matmul %79, %80, %cst_27 {dimension_numbers = #tpu.dot_dimension_numbers<[1], [0], [0], [1], [0, 0, 1, 1], [], []>} : vector<128x8xf32>, vector<8x32xf32>, vector<128x32xf32> -> vector<128x32xf32>
    %82 = arith.addf %75, %81 : vector<128x32xf32>
    %83 = vector.extract_strided_slice %60 {offsets = [3, 0, 0], sizes = [1, 128, 128], strides = [1, 1, 1]} : vector<4x128x128xbf16> to vector<1x128x128xbf16>
    %84 = vector.shape_cast %83 : vector<1x128x128xbf16> to vector<128x128xbf16>
    %85 = vector.extract_strided_slice %16 {offsets = [0, 24], sizes = [128, 8], strides = [1, 1]} : vector<128x32xbf16> to vector<128x8xbf16>
    %cst_28 = arith.constant dense<0.000000e+00> : vector<128x8xf32>
    %86 = tpu.matmul %84, %85, %cst_28 {dimension_numbers = #tpu.dot_dimension_numbers<[1], [0], [0], [1], [0, 0, 1, 1], [], []>} : vector<128x128xbf16>, vector<128x8xbf16>, vector<128x8xf32> -> vector<128x8xf32>
    %87 = vector.extract_strided_slice %61 {offsets = [24, 0], sizes = [8, 32], strides = [1, 1]} : vector<32x32xf32> to vector<8x32xf32>
    %cst_29 = arith.constant dense<0.000000e+00> : vector<128x32xf32>
    %88 = tpu.matmul %86, %87, %cst_29 {dimension_numbers = #tpu.dot_dimension_numbers<[1], [0], [0], [1], [0, 0, 1, 1], [], []>} : vector<128x8xf32>, vector<8x32xf32>, vector<128x32xf32> -> vector<128x32xf32>
    %89 = arith.addf %82, %88 : vector<128x32xf32>
    %90 = arith.addf %89, %8 : vector<128x32xf32>
    %91 = vector.extract_strided_slice %0 {offsets = [1, 0], sizes = [1, 32], strides = [1, 1]} : vector<8x128xf32> to vector<1x32xf32>
    %92 = vector.extract_strided_slice %0 {offsets = [2, 0], sizes = [1, 32], strides = [1, 1]} : vector<8x128xf32> to vector<1x32xf32>
    %cst_30 = arith.constant dense<0.000000e+00> : vector<128xf32>
    %93 = vector.multi_reduction <add>, %90, %cst_30 [1] : vector<128x32xf32> to vector<128xf32>
    %94 = vector.shape_cast %93 : vector<128xf32> to vector<128x1xf32>
    %cst_31 = arith.constant 3.200000e+01 : f32
    %95 = vector.broadcast %cst_31 : f32 to vector<128x1xf32>
    %96 = arith.divf %94, %95 : vector<128x1xf32>
    %97 = vector.broadcast %96 : vector<128x1xf32> to vector<128x32xf32>
    %98 = arith.subf %90, %97 : vector<128x32xf32>
    %99 = arith.mulf %98, %98 : vector<128x32xf32>
    %cst_32 = arith.constant dense<0.000000e+00> : vector<128xf32>
    %100 = vector.multi_reduction <add>, %99, %cst_32 [1] : vector<128x32xf32> to vector<128xf32>
    %101 = vector.shape_cast %100 : vector<128xf32> to vector<128x1xf32>
    %cst_33 = arith.constant 3.200000e+01 : f32
    %102 = vector.broadcast %cst_33 : f32 to vector<128x1xf32>
    %103 = arith.divf %101, %102 : vector<128x1xf32>
    %104 = vector.broadcast %96 : vector<128x1xf32> to vector<128x32xf32>
    %105 = arith.subf %90, %104 : vector<128x32xf32>
    %cst_34 = arith.constant 9.99999974E-6 : f32
    %106 = vector.broadcast %cst_34 : f32 to vector<128x1xf32>
    %107 = arith.addf %103, %106 : vector<128x1xf32>
    %108 = math.rsqrt %107 : vector<128x1xf32>
    %109 = vector.broadcast %108 : vector<128x1xf32> to vector<128x32xf32>
    %110 = arith.mulf %105, %109 : vector<128x32xf32>
    %111 = vector.broadcast %91 : vector<1x32xf32> to vector<128x32xf32>
    %112 = arith.mulf %110, %111 : vector<128x32xf32>
    %113 = vector.broadcast %92 : vector<1x32xf32> to vector<128x32xf32>
    %114 = arith.addf %112, %113 : vector<128x32xf32>
    %115 = arith.truncf %114 : vector<128x32xf32> to vector<128x32xbf16>
    %c0_35 = arith.constant 0 : index
    %c0_36 = arith.constant 0 : index
    %116 = vector.load %arg6[%c0_35, %c0_36] : memref<32x128xbf16, #tpu.memory_space<vmem>>, vector<32x128xbf16>
    %cst_37 = arith.constant dense<0.000000e+00> : vector<128x128xf32>
    %117 = tpu.matmul %115, %116, %cst_37 {dimension_numbers = #tpu.dot_dimension_numbers<[1], [0], [0], [1], [0, 0, 1, 1], [], []>} : vector<128x32xbf16>, vector<32x128xbf16>, vector<128x128xf32> -> vector<128x128xf32>
    %118 = vector.extract_strided_slice %0 {offsets = [3, 0], sizes = [1, 128], strides = [1, 1]} : vector<8x128xf32> to vector<1x128xf32>
    %119 = vector.broadcast %118 : vector<1x128xf32> to vector<128x128xf32>
    %120 = arith.addf %117, %119 : vector<128x128xf32>
    %cst_38 = arith.constant 0.000000e+00 : f32
    %121 = vector.broadcast %cst_38 : f32 to vector<128x128xf32>
    %122 = arith.maximumf %120, %121 : vector<128x128xf32>
    %123 = arith.truncf %122 : vector<128x128xf32> to vector<128x128xbf16>
    %c0_39 = arith.constant 0 : index
    %c0_40 = arith.constant 0 : index
    %124 = vector.load %arg7[%c0_39, %c0_40] : memref<128x32xbf16, #tpu.memory_space<vmem>>, vector<128x32xbf16>
    %cst_41 = arith.constant dense<0.000000e+00> : vector<128x32xf32>
    %125 = tpu.matmul %123, %124, %cst_41 {dimension_numbers = #tpu.dot_dimension_numbers<[1], [0], [0], [1], [0, 0, 1, 1], [], []>} : vector<128x128xbf16>, vector<128x32xbf16>, vector<128x32xf32> -> vector<128x32xf32>
    %126 = vector.extract_strided_slice %0 {offsets = [4, 0], sizes = [1, 32], strides = [1, 1]} : vector<8x128xf32> to vector<1x32xf32>
    %127 = vector.broadcast %126 : vector<1x32xf32> to vector<128x32xf32>
    %128 = arith.addf %125, %127 : vector<128x32xf32>
    %129 = arith.addf %128, %114 : vector<128x32xf32>
    %130 = vector.extract_strided_slice %0 {offsets = [5, 0], sizes = [1, 32], strides = [1, 1]} : vector<8x128xf32> to vector<1x32xf32>
    %131 = vector.extract_strided_slice %0 {offsets = [6, 0], sizes = [1, 32], strides = [1, 1]} : vector<8x128xf32> to vector<1x32xf32>
    %cst_42 = arith.constant dense<0.000000e+00> : vector<128xf32>
    %132 = vector.multi_reduction <add>, %129, %cst_42 [1] : vector<128x32xf32> to vector<128xf32>
    %133 = vector.shape_cast %132 : vector<128xf32> to vector<128x1xf32>
    %cst_43 = arith.constant 3.200000e+01 : f32
    %134 = vector.broadcast %cst_43 : f32 to vector<128x1xf32>
    %135 = arith.divf %133, %134 : vector<128x1xf32>
    %136 = vector.broadcast %135 : vector<128x1xf32> to vector<128x32xf32>
    %137 = arith.subf %129, %136 : vector<128x32xf32>
    %138 = arith.mulf %137, %137 : vector<128x32xf32>
    %cst_44 = arith.constant dense<0.000000e+00> : vector<128xf32>
    %139 = vector.multi_reduction <add>, %138, %cst_44 [1] : vector<128x32xf32> to vector<128xf32>
    %140 = vector.shape_cast %139 : vector<128xf32> to vector<128x1xf32>
    %cst_45 = arith.constant 3.200000e+01 : f32
    %141 = vector.broadcast %cst_45 : f32 to vector<128x1xf32>
    %142 = arith.divf %140, %141 : vector<128x1xf32>
    %143 = vector.broadcast %135 : vector<128x1xf32> to vector<128x32xf32>
    %144 = arith.subf %129, %143 : vector<128x32xf32>
    %cst_46 = arith.constant 9.99999974E-6 : f32
    %145 = vector.broadcast %cst_46 : f32 to vector<128x1xf32>
    %146 = arith.addf %142, %145 : vector<128x1xf32>
    %147 = math.rsqrt %146 : vector<128x1xf32>
    %148 = vector.broadcast %147 : vector<128x1xf32> to vector<128x32xf32>
    %149 = arith.mulf %144, %148 : vector<128x32xf32>
    %150 = vector.broadcast %130 : vector<1x32xf32> to vector<128x32xf32>
    %151 = arith.mulf %149, %150 : vector<128x32xf32>
    %152 = vector.broadcast %131 : vector<1x32xf32> to vector<128x32xf32>
    %153 = arith.addf %151, %152 : vector<128x32xf32>
    %c0_47 = arith.constant 0 : index
    %c0_48 = arith.constant 0 : index
    %154 = vector.load %arg9[%c0_47, %c0_48] : memref<128x32xf32, #tpu.memory_space<vmem>>, vector<128x32xf32>
    tpu.vector_store %arg9[%c0_47, %c0_48], %153 {strides = array<i32>} : memref<128x32xf32, #tpu.memory_space<vmem>>, vector<128x32xf32>,
    return
  }
  func.func @transform_0(%arg0: i32) -> (i32, i32) {
    %c0_i32 = arith.constant 0 : i32
    %c0_i32_0 = arith.constant 0 : i32
    %c0_i32_1 = arith.constant 0 : i32
    return %c0_i32, %c0_i32_0 : i32, i32
  }
  func.func @transform_1(%arg0: i32) -> (i32, i32) {
    %c0_i32 = arith.constant 0 : i32
    %c0_i32_0 = arith.constant 0 : i32
    return %arg0, %c0_i32 : i32, i32
  }
  func.func @transform_2(%arg0: i32) -> (i32, i32) {
    %c0_i32 = arith.constant 0 : i32
    %c0_i32_0 = arith.constant 0 : i32
    return %arg0, %c0_i32 : i32, i32
  }
  func.func @transform_3(%arg0: i32) -> (i32, i32) {
    %c0_i32 = arith.constant 0 : i32
    %c0_i32_0 = arith.constant 0 : i32
    %c0_i32_1 = arith.constant 0 : i32
    return %c0_i32, %c0_i32_0 : i32, i32
  }
  func.func @transform_4(%arg0: i32) -> (i32, i32) {
    %c0_i32 = arith.constant 0 : i32
    %c0_i32_0 = arith.constant 0 : i32
    %c0_i32_1 = arith.constant 0 : i32
    return %c0_i32, %c0_i32_0 : i32, i32
  }
  func.func @transform_5(%arg0: i32) -> (i32, i32) {
    %c0_i32 = arith.constant 0 : i32
    %c0_i32_0 = arith.constant 0 : i32
    %c0_i32_1 = arith.constant 0 : i32
    return %c0_i32, %c0_i32_0 : i32, i32
  }
  func.func @transform_6(%arg0: i32) -> (i32, i32) {
    %c0_i32 = arith.constant 0 : i32
    %c0_i32_0 = arith.constant 0 : i32
    %c0_i32_1 = arith.constant 0 : i32
    return %c0_i32, %c0_i32_0 : i32, i32
  }
  func.func @transform_7(%arg0: i32) -> (i32, i32) {
    %c0_i32 = arith.constant 0 : i32
    %c0_i32_0 = arith.constant 0 : i32
    %c0_i32_1 = arith.constant 0 : i32
    return %c0_i32, %c0_i32_0 : i32, i32
  }
  func.func @transform_8(%arg0: i32) -> (i32, i32) {
    %c0_i32 = arith.constant 0 : i32
    %c0_i32_0 = arith.constant 0 : i32
    return %arg0, %c0_i32 : i32, i32
  }
}

</mosaic_0001>

<bundles_post_ra>
// kernel: graph_transformer_forward.1
= control target key start
LH: loop header
LB: loop body
LE: loop exit
PB: predicated region body
PF: predicated region fallthrough
CT: control target
= control target key end

     0   :  { %vm75_vm0 = vcmask 261120   ;;  %v59_v50 = vlaneseq  ;;  %vm462_vm1 = vcmask 64512   ;;  %s5977_s27 = smov 88   ;;  %s5978_s28 = smov 96   ;;  %s8660_s3 = inlined_call_operand.vmem [shape: bf16[32,128], index: 3, kind: input, shape index: {}]   ;;  %s8661_s0 = inlined_call_operand.vmem [shape: f32[128,32], index: 0, kind: input, shape index: {}, may-alias: {0,1}]   ;;  %s8662_s1 = inlined_call_operand.vmem [shape: f32[128,32], index: 1, kind: input, shape index: {}, may-alias: {0,1}]   ;;  %s8663_s7 = inlined_call_operand.vmem [shape: f32[8,128], index: 7, kind: input, shape index: {}]   ;;  %s8664_s2 = inlined_call_operand.vmem [shape: s8[128,128], index: 2, kind: input, shape index: {}]   ;;  %s8665_s4 = inlined_call_operand.vmem [shape: f32[32,32], index: 4, kind: input, shape index: {}]   ;;  %s8666_s5 = inlined_call_operand.vmem [shape: bf16[32,128], index: 5, kind: input, shape index: {}]   ;;  %s8667_s6 = inlined_call_operand.vmem [shape: bf16[128,32], index: 6, kind: input, shape index: {}]   ;;  %s8668_s8 = inlined_call_operand.vmem [shape: f32[128,32], index: 8, kind: output, shape index: {}]  }
   0x1   :  { %v5627_v0 = vld [vmem:[%s8660_s3] sm:$0xff]   ;;  %v5628_v1 = vld [vmem:[%s8660_s3 + $0x8] sm:$0xff]   ;;  %v37_v4 = vld [vmem:[%s8661_s0 + $0x10] sm:$0xff]  ;;  %s5979_s29 = smov 80   ;;  %s5980_s30 = smov 64  }
   0x2   :  { %5124 = vmatprep.subr.bf16.mxu0 %v5627_v0  ;;  %v35_v2 = vld [vmem:[%s8661_s0] sm:$0xff]  ;;  %v36_v3 = vld [vmem:[%s8661_s0 + $0x8] sm:$0xff]  ;;  %5144 = vmatprep.subr.bf16.mxu1 %v5627_v0  ;;  %v38_v6 = vld [vmem:[%s8661_s0 + $0x18] sm:$0xff]  ;;  %v6152_v51 = vshrl.u32 %v59_v50, 7  ;;  %s5981_s9 = smov 120   ;;  %s5982_s10 = smov 56  }
   0x3   :  { %5125 = vmatpush3.bf16.msra.mxu0 %v5627_v0  ;;  %v51_v5 = vpack.c.bf16 %v36_v3, %v35_v2  ;;  %5145 = vmatpush3.bf16.msra.mxu1 %v5627_v0  ;;  %v197_v7 = vld [vmem:[%s8662_s1] sm:$0xff]  ;;  %v198_v8 = vld [vmem:[%s8662_s1 + $0x8] sm:$0xff]  ;;  %v199_v10 = vld [vmem:[%s8662_s1 + $0x10] sm:$0xff]  ;;  %v52_v14 = vpack.c.bf16 %v38_v6, %v37_v4  ;;  %s5983_s11 = smov 72   ;;  %s5984_s12 = smov 112  }
   0x4   :  { %5126 = vmatprep.subr.bf16.mxu0 %v5628_v1  ;;  %5146 = vmatprep.subr.bf16.mxu1 %v5628_v1  ;;  %v213_v9 = vpack.c.bf16 %v198_v8, %v197_v7  ;;  %v200_v11 = vld [vmem:[%s8662_s1 + $0x18] sm:$0xff]  ;;  %v201_v12 = vld [vmem:[%s8662_s1 + $0x20] sm:$0xff]  ;;  %v202_v13 = vld [vmem:[%s8662_s1 + $0x28] sm:$0xff]  ;;  %8800 = vst [vmem:[#allocation2_spill] sm:$0xff] %v6152_v51  ;;  %v61_v52 = vsub.s32 0, %v6152_v51  ;;  %s5985_s13 = smov 104  }
   0x5   :  { %5128 = vmatprep.mubr.msk.bf16.mxu0 %vm75_vm0, %v51_v5  ;;  %v214_v15 = vpack.c.bf16 %v200_v11, %v199_v10  ;;  %v39_v16 = vld [vmem:[%s8661_s0 + $0x20] sm:$0xff]  ;;  %v40_v17 = vld [vmem:[%s8661_s0 + $0x28] sm:$0xff]  ;;  %v215_v18 = vpack.c.bf16 %v202_v13, %v201_v12  ;;  %v203_v20 = vld [vmem:[%s8662_s1 + $0x30] sm:$0xff]  ;;  %s5986_s14 = smov 48  }
   0x6   :  { %5148 = vmatprep.mubr.msk.bf16.mxu1 %vm75_vm0, %v213_v9  ;;  %v53_v19 = vpack.c.bf16 %v40_v17, %v39_v16  ;;  %v204_v21 = vld [vmem:[%s8662_s1 + $0x38] sm:$0xff]  ;;  %v41_v22 = vld [vmem:[%s8661_s0 + $0x30] sm:$0xff]  ;;  %v43_v24 = vld [vmem:[%s8661_s0 + $0x40] sm:$0xff] }
   0x7   :  { %5127 = vmatpush3.bf16.msra.mxu0 %v5628_v1  ;;  %5147 = vmatpush3.bf16.msra.mxu1 %v5628_v1  ;;  %v42_v23 = vld [vmem:[%s8661_s0 + $0x38] sm:$0xff]  ;;  %v44_v25 = vld [vmem:[%s8661_s0 + $0x48] sm:$0xff]  ;;  %v205_v26 = vld [vmem:[%s8662_s1 + $0x40] sm:$0xff]  ;;  %v216_v28 = vpack.c.bf16 %v204_v21, %v203_v20 }
   0x8   :  { %v206_v27 = vld [vmem:[%s8662_s1 + $0x48] sm:$0xff]  ;;  %v54_v29 = vpack.c.bf16 %v42_v23, %v41_v22  ;;  %v55_v30 = vpack.c.bf16 %v44_v25, %v43_v24  ;;  %v45_v32 = vld [vmem:[%s8661_s0 + $0x50] sm:$0xff]  ;;  %v46_v33 = vld [vmem:[%s8661_s0 + $0x58] sm:$0xff] }
   0x9   :  { %v217_v31 = vpack.c.bf16 %v206_v27, %v205_v26  ;;  %v207_v34 = vld [vmem:[%s8662_s1 + $0x50] sm:$0xff]  ;;  %v208_v35 = vld [vmem:[%s8662_s1 + $0x58] sm:$0xff]  ;;  %v47_v36 = vld [vmem:[%s8661_s0 + $0x60] sm:$0xff]  ;;  %v56_v40 = vpack.c.bf16 %v46_v33, %v45_v32 }
   0xa   :  { %5129 = vmatmul.mubr.msk.bf16.vlgmr.msra.gmra.mrb[0].mxu0 %vm75_vm0, %v52_v14  ;;  %5149 = vmatmul.mubr.msk.bf16.vlgmr.msra.gmra.mrb[0].mxu1 %vm75_vm0, %v214_v15  ;;  %v48_v37 = vld [vmem:[%s8661_s0 + $0x68] sm:$0xff]  ;;  %v209_v38 = vld [vmem:[%s8662_s1 + $0x60] sm:$0xff]  ;;  %v218_v41 = vpack.c.bf16 %v208_v35, %v207_v34  ;;  %v49_v44 = vld [vmem:[%s8661_s0 + $0x70] sm:$0xff] }
   0xb   :  { %5152 = vmatprep.mubr.msk.bf16.mxu1 %vm75_vm0, %v215_v18  ;;  %5132 = vmatprep.mubr.msk.bf16.mxu0 %vm75_vm0, %v53_v19  ;;  %v210_v39 = vld [vmem:[%s8662_s1 + $0x68] sm:$0xff]  ;;  %v57_v42 = vpack.c.bf16 %v48_v37, %v47_v36  ;;  %v50_v45 = vld [vmem:[%s8661_s0 + $0x78] sm:$0xff]  ;;  %v211_v46 = vld [vmem:[%s8662_s1 + $0x70] sm:$0xff] }
   0xc   :  { %v219_v43 = vpack.c.bf16 %v210_v39, %v209_v38  ;;  %v212_v47 = vld [vmem:[%s8662_s1 + $0x78] sm:$0xff]  ;;  %v58_v48 = vpack.c.bf16 %v50_v45, %v49_v44  ;;  %v30_v53 = vld [vmem:[%s8663_s7] sm:$0xff] }
   0xd   :  { %v220_v49 = vpack.c.bf16 %v212_v47, %v211_v46  ;;  %v6158_v54 = vrot.slane %v30_v53, %v61_v52 }
  0x12   :  { %5153 = vmatmul.mubr.msk.bf16.gmra.mrb[4].mxu1 %vm75_vm0, %v216_v28  ;;  %5133 = vmatmul.mubr.msk.bf16.gmra.mrb[4].mxu0 %vm75_vm0, %v54_v29 }
  0x13   :  { %5136 = vmatprep.mubr.msk.bf16.mxu0 %vm75_vm0, %v55_v30  ;;  %5156 = vmatprep.mubr.msk.bf16.mxu1 %vm75_vm0, %v217_v31 }
  0x1a   :  { %5137 = vmatmul.mubr.msk.bf16.gmra.mrb[8].mxu0 %vm75_vm0, %v56_v40  ;;  %5157 = vmatmul.mubr.msk.bf16.gmra.mrb[8].mxu1 %vm75_vm0, %v218_v41 }
  0x1b   :  { %5140 = vmatprep.mubr.msk.bf16.mxu0 %vm75_vm0, %v57_v42  ;;  %5160 = vmatprep.mubr.msk.bf16.mxu1 %vm75_vm0, %v219_v43 }
  0x22   :  { %5141 = vmatmul.mubr.msk.bf16.gmra.mrb[12].mxu0 %vm75_vm0, %v58_v48  ;;  %5161 = vmatmul.mubr.msk.bf16.gmra.mrb[12].mxu1 %vm75_vm0, %v220_v49 }
  0xdd   :  { %v5130_v55 = vpop.f32.mrb[0].mxu0  ;;  %v5150_v56 = vpop.f32.mrb[0].mxu1 }
  0xde   :  { %v134_v57 = vpop.f32.mrb[1].mxu0  ;;  %v279_v58 = vpop.f32.mrb[1].mxu1  ;;  %v143_v62 = vadd.f32 %v5130_v55, %v6158_v54  ;;  %v6183_v8 = vadd.f32 %v5150_v56, %v6158_v54 }
  0xdf   :  { %v5131_v59 = vpop.f32.mrb[2].mxu0  ;;  %v6161_v60 = vadd.f32 %v279_v58, %v6158_v54  ;;  %v5151_v61 = vpop.f32.mrb[2].mxu1  ;;  %v135_v2 = vadd.f32 %v134_v57, %v6158_v54 }
  0xe0   :  { %v146_v63 = vadd.f32 %v5131_v59, %v6158_v54  ;;  %v137_v0 = vpop.f32.mrb[3].mxu0  ;;  %v282_v1 = vpop.f32.mrb[3].mxu1  ;;  %8805 = vst [vmem:[#allocation7_spill] sm:$0xff] %v6183_v8  ;;  %v6186_v9 = vadd.f32 %v5151_v61, %v6158_v54 }
  0xe1   :  { %8801 = vst [vmem:[#allocation3_spill] sm:$0xff] %v6161_v60  ;;  %v138_v3 = vadd.f32 %v137_v0, %v6158_v54  ;;  %v6168_v4 = vadd.f32 %v282_v1, %v6158_v54 }
  0xe2   :  { %v6170_v5 = vpack.c.bf16 %v146_v63, %v143_v62  ;;  %8806 = vst [vmem:[#allocation8_spill] sm:$0xff] %v6186_v9  ;;  %v6198_v18 = vpack.c.bf16 %v6186_v9, %v6183_v8 }
  0xe3   :  { %8802 = vst [vmem:[#allocation4_spill] sm:$0xff] %v6168_v4  ;;  %v6172_v6 = vpack.c.bf16 %v138_v3, %v135_v2  ;;  %v6176_v7 = vpack.c.bf16 %v6168_v4, %v6161_v60 }
  0xe4   :  { %8803 = vst [vmem:[#allocation5_spill] sm:$0xff] %v6170_v5  ;;  %634 = vrot.lane.b32.xlu1 %v6170_v5, %s5977_s27  ;;  %448 = vrot.lane.b32.xlu0 %v6170_v5, %s5978_s28 }
  0xe5   :  { %8804 = vst [vmem:[#allocation6_spill] sm:$0xff] %v6172_v6  ;;  %5180 = vmatprep.mubr.msk.bf16.mxu0 %vm462_vm1, %v6176_v7  ;;  %v6190_v10 = vpop.f32.mrb[4].mxu1  ;;  %v5134_v11 = vpop.f32.mrb[4].mxu0 }
  0xe6   :  { %v6192_v12 = vpop.f32.mrb[5].mxu1  ;;  %v159_v13 = vadd.f32 %v5134_v11, %v6158_v54  ;;  %v150_v14 = vpop.f32.mrb[5].mxu0  ;;  %v6266_v62 = vadd.f32 %v6190_v10, %v6158_v54 }
  0xe7   :  { %v5155_v15 = vpop.f32.mrb[6].mxu1  ;;  %v151_v16 = vadd.f32 %v150_v14, %v6158_v54  ;;  %v5135_v17 = vpop.f32.mrb[6].mxu0  ;;  %v6289_v3 = vadd.f32 %v6192_v12, %v6158_v54 }
  0xe8   :  { %811 = vrot.lane.b32.xlu1 %v6170_v5, %s5979_s29  ;;  %1953 = vrot.lane.b32.xlu0 %v6170_v5, %s5980_s30  ;;  %v6204_v19 = vpop.f32.mrb[7].mxu1  ;;  %v162_v20 = vadd.f32 %v5135_v17, %v6158_v54  ;;  %v153_v21 = vpop.f32.mrb[7].mxu0  ;;  %8819 = vst [vmem:[#allocation21_spill] sm:$0xff] %v6266_v62  ;;  %v6269_v63 = vadd.f32 %v5155_v15, %v6158_v54 }
  0xe9   :  { %v154_v22 = vadd.f32 %v153_v21, %v6158_v54  ;;  %8823 = vst [vmem:[#allocation25_spill] sm:$0xff] %v6289_v3  ;;  %v6293_v10 = vadd.f32 %v6204_v19, %v6158_v54 }
  0xea   :  { %v6208_v23 = vpack.c.bf16 %v162_v20, %v159_v13  ;;  %8820 = vst [vmem:[#allocation22_spill] sm:$0xff] %v6269_v63  ;;  %v6281_v2 = vpack.c.bf16 %v6269_v63, %v6266_v62 }
  0xeb   :  { %v6210_v24 = vpack.c.bf16 %v154_v22, %v151_v16  ;;  %8824 = vst [vmem:[#allocation26_spill] sm:$0xff] %v6293_v10 }
  0xec   :  { %8807 = vst [vmem:[#allocation9_spill] sm:$0xff] %v6208_v23  ;;  %618 = vrot.lane.b32.xlu1 %v6198_v18, %s5981_s9  ;;  %2347 = vrot.lane.b32.xlu0 %v6170_v5, %s5982_s10 }
  0xed   :  { %8808 = vst [vmem:[#allocation10_spill] sm:$0xff] %v6210_v24  ;;  %v5138_v25 = vpop.f32.mrb[8].mxu0  ;;  %v5158_v26 = vpop.f32.mrb[8].mxu1 }
  0xee   :  { %v175_v27 = vadd.f32 %v5138_v25, %v6158_v54  ;;  %v166_v28 = vpop.f32.mrb[9].mxu0  ;;  %v6218_v29 = vadd.f32 %v5158_v26, %v6158_v54  ;;  %v311_v30 = vpop.f32.mrb[9].mxu1 }
  0xef   :  { %v167_v31 = vadd.f32 %v166_v28, %v6158_v54  ;;  %v5139_v32 = vpop.f32.mrb[10].mxu0  ;;  %v6222_v33 = vadd.f32 %v311_v30, %v6158_v54  ;;  %v5159_v34 = vpop.f32.mrb[10].mxu1 }
  0xf0   :  { %8809 = vst [vmem:[#allocation11_spill] sm:$0xff] %v6218_v29  ;;  %988 = vrot.lane.b32.xlu1 %v6170_v5, %s5983_s11  ;;  %446 = vrot.lane.b32.xlu0 %v6172_v6, %s5978_s28  ;;  %v178_v35 = vadd.f32 %v5139_v32, %v6158_v54  ;;  %v169_v36 = vpop.f32.mrb[11].mxu0  ;;  %v6230_v37 = vadd.f32 %v5159_v34, %v6158_v54  ;;  %v314_v38 = vpop.f32.mrb[11].mxu1 }
  0xf1   :  { %8810 = vst [vmem:[#allocation12_spill] sm:$0xff] %v6222_v33  ;;  %v170_v39 = vadd.f32 %v169_v36, %v6158_v54  ;;  %v6234_v40 = vadd.f32 %v314_v38, %v6158_v54 }
  0xf2   :  { %8811 = vst [vmem:[#allocation13_spill] sm:$0xff] %v6230_v37  ;;  %v6236_v41 = vpack.c.bf16 %v178_v35, %v175_v27  ;;  %v6369_v11 = vpack.c.bf16 %v6230_v37, %v6218_v29 }
  0xf3   :  { %8812 = vst [vmem:[#allocation14_spill] sm:$0xff] %v6234_v40  ;;  %v6238_v42 = vpack.c.bf16 %v170_v39, %v167_v31 }
  0xf4   :  { %8813 = vst [vmem:[#allocation15_spill] sm:$0xff] %v6236_v41  ;;  %795 = vrot.lane.b32.xlu1 %v6198_v18, %s5984_s12  ;;  %616 = vrot.lane.b32.xlu0 %v6176_v7, %s5981_s9 }
  0xf5   :  { %8814 = vst [vmem:[#allocation16_spill] sm:$0xff] %v6238_v42  ;;  %v5142_v43 = vpop.f32.mrb[12].mxu0  ;;  %v5162_v44 = vpop.f32.mrb[12].mxu1 }
  0xf6   :  { %v191_v45 = vadd.f32 %v5142_v43, %v6158_v54  ;;  %v182_v46 = vpop.f32.mrb[13].mxu0  ;;  %v6246_v47 = vadd.f32 %v5162_v44, %v6158_v54  ;;  %v327_v48 = vpop.f32.mrb[13].mxu1 }
  0xf7   :  { %v183_v49 = vadd.f32 %v182_v46, %v6158_v54  ;;  %v5143_v50 = vpop.f32.mrb[14].mxu0  ;;  %v6250_v52 = vadd.f32 %v327_v48, %v6158_v54  ;;  %v5163_v53 = vpop.f32.mrb[14].mxu1 }
  0xf8   :  { %8815 = vst [vmem:[#allocation17_spill] sm:$0xff] %v6246_v47  ;;  %972 = vrot.lane.b32.xlu1 %v6198_v18, %s5985_s13  ;;  %793 = vrot.lane.b32.xlu0 %v6176_v7, %s5984_s12  ;;  %v194_v55 = vadd.f32 %v5143_v50, %v6158_v54  ;;  %v185_v56 = vpop.f32.mrb[15].mxu0  ;;  %v6258_v57 = vadd.f32 %v5163_v53, %v6158_v54  ;;  %v330_v58 = vpop.f32.mrb[15].mxu1 }
  0xf9   :  { %8816 = vst [vmem:[#allocation18_spill] sm:$0xff] %v6250_v52  ;;  %v186_v59 = vadd.f32 %v185_v56, %v6158_v54  ;;  %v6262_v61 = vadd.f32 %v330_v58, %v6158_v54  ;;  %v6345_v54 = vpack.c.bf16 %v6234_v40, %v6222_v33 }
  0xfa   :  { %8817 = vst [vmem:[#allocation19_spill] sm:$0xff] %v6258_v57  ;;  %v6271_v0 = vpack.c.bf16 %v194_v55, %v191_v45  ;;  %v6385_v12 = vpack.c.bf16 %v6258_v57, %v6246_v47 }
  0xfb   :  { %8818 = vst [vmem:[#allocation20_spill] sm:$0xff] %v6262_v61  ;;  %v6273_v1 = vpack.c.bf16 %v186_v59, %v183_v49  ;;  %v6417_v20 = vpack.c.bf16 %v6262_v61, %v6250_v52 }
  0xfc   :  { %8821 = vst [vmem:[#allocation23_spill] sm:$0xff] %v6271_v0  ;;  %632 = vrot.lane.b32.xlu1 %v6172_v6, %s5977_s27  ;;  %970 = vrot.lane.b32.xlu0 %v6176_v7, %s5985_s13  ;;  %v6301_v7 = vpack.c.bf16 %v6293_v10, %v6289_v3 }
  0xfd   :  { %8822 = vst [vmem:[#allocation24_spill] sm:$0xff] %v6273_v1 }
 0x100   :  { %809 = vrot.lane.b32.xlu1 %v6172_v6, %s5979_s29  ;;  %799 = vrot.lane.b32.xlu0 %v6281_v2, %s5984_s12 }
 0x104   :  { %986 = vrot.lane.b32.xlu1 %v6172_v6, %s5983_s11  ;;  %2351 = vrot.lane.b32.xlu0 %v6208_v23, %s5982_s10 }
 0x108   :  { %1951 = vrot.lane.b32.xlu1 %v6172_v6, %s5980_s30  ;;  %620 = vrot.lane.b32.xlu0 %v6301_v7, %s5981_s9 }
 0x10c   :  { %2345 = vrot.lane.b32.xlu1 %v6172_v6, %s5982_s10  ;;  %974 = vrot.lane.b32.xlu0 %v6301_v7, %s5985_s13 }
 0x110   :  { %452 = vrot.lane.b32.xlu1 %v6208_v23, %s5978_s28  ;;  %1955 = vrot.lane.b32.xlu0 %v6210_v24, %s5980_s30 }
 0x114   :  { %638 = vrot.lane.b32.xlu1 %v6208_v23, %s5977_s27  ;;  %456 = vrot.lane.b32.xlu0 %v6236_v41, %s5978_s28 }
 0x118   :  { %815 = vrot.lane.b32.xlu1 %v6208_v23, %s5979_s29  ;;  %642 = vrot.lane.b32.xlu0 %v6236_v41, %s5977_s27 }
 0x11c   :  { %622 = vrot.lane.b32.xlu1 %v6281_v2, %s5981_s9  ;;  %819 = vrot.lane.b32.xlu0 %v6236_v41, %s5979_s29 }
 0x120   :  { %992 = vrot.lane.b32.xlu1 %v6208_v23, %s5983_s11  ;;  %1961 = vrot.lane.b32.xlu0 %v6236_v41, %s5980_s30 }
 0x124   :  { %976 = vrot.lane.b32.xlu1 %v6281_v2, %s5985_s13  ;;  %454 = vrot.lane.b32.xlu0 %v6238_v42, %s5978_s28 }
 0x128   :  { %1957 = vrot.lane.b32.xlu1 %v6208_v23, %s5980_s30  ;;  %640 = vrot.lane.b32.xlu0 %v6238_v42, %s5977_s27 }
 0x12c   :  { %450 = vrot.lane.b32.xlu1 %v6210_v24, %s5978_s28  ;;  %817 = vrot.lane.b32.xlu0 %v6238_v42, %s5979_s29 }
 0x130   :  { %636 = vrot.lane.b32.xlu1 %v6210_v24, %s5977_s27  ;;  %624 = vrot.lane.b32.xlu0 %v6345_v54, %s5981_s9 }
 0x134   :  { %813 = vrot.lane.b32.xlu1 %v6210_v24, %s5979_s29  ;;  %994 = vrot.lane.b32.xlu0 %v6238_v42, %s5983_s11 }
 0x138   :  { %990 = vrot.lane.b32.xlu1 %v6210_v24, %s5983_s11  ;;  %801 = vrot.lane.b32.xlu0 %v6345_v54, %s5984_s12 }
 0x13c   :  { %797 = vrot.lane.b32.xlu1 %v6301_v7, %s5984_s12  ;;  %978 = vrot.lane.b32.xlu0 %v6345_v54, %s5985_s13 }
 0x140   :  { %2349 = vrot.lane.b32.xlu1 %v6210_v24, %s5982_s10  ;;  %1959 = vrot.lane.b32.xlu0 %v6238_v42, %s5980_s30 }
 0x144   :  { %626 = vrot.lane.b32.xlu1 %v6369_v11, %s5981_s9  ;;  %460 = vrot.lane.b32.xlu0 %v6271_v0, %s5978_s28 }
 0x148   :  { %996 = vrot.lane.b32.xlu1 %v6236_v41, %s5983_s11  ;;  %646 = vrot.lane.b32.xlu0 %v6271_v0, %s5977_s27 }
 0x14c   :  { %803 = vrot.lane.b32.xlu1 %v6369_v11, %s5984_s12  ;;  %823 = vrot.lane.b32.xlu0 %v6271_v0, %s5979_s29 }
 0x150   :  { %980 = vrot.lane.b32.xlu1 %v6369_v11, %s5985_s13  ;;  %807 = vrot.lane.b32.xlu0 %v6385_v12, %s5984_s12 }
 0x154   :  { %2353 = vrot.lane.b32.xlu1 %v6238_v42, %s5982_s10  ;;  %1965 = vrot.lane.b32.xlu0 %v6271_v0, %s5980_s30 }
 0x156   :  { %v635_v13 = vpop.permute.xlu1 %634  ;;  %v449_v14 = vpop.permute.xlu0 %448 }
 0x157   :  { %v491_v31 = vsel %vm462_vm1, %v449_v14, 0  ;;  %v676_v44 = vsel %vm462_vm1, %v635_v13, 0 }
 0x158   :  { %630 = vrot.lane.b32.xlu1 %v6385_v12, %s5981_s9  ;;  %458 = vrot.lane.b32.xlu0 %v6273_v1, %s5978_s28 }
 0x15a   :  { %v6399_v15 = vpop.permute.xlu1 %811  ;;  %v6401_v16 = vpop.permute.xlu0 %1953 }
 0x15c   :  { %1000 = vrot.lane.b32.xlu1 %v6271_v0, %s5983_s11  ;;  %644 = vrot.lane.b32.xlu0 %v6273_v1, %s5977_s27 }
 0x15e   :  { %v6407_v17 = vpop.permute.xlu1 %618  ;;  %v6409_v19 = vpop.permute.xlu0 %2347 }
 0x15f   :  { %8825 = vst [vmem:[#allocation27_spill] sm:$0xff] %v6409_v19 }
 0x160   :  { %984 = vrot.lane.b32.xlu1 %v6385_v12, %s5985_s13  ;;  %821 = vrot.lane.b32.xlu0 %v6273_v1, %s5979_s29 }
 0x162   :  { %v6419_v21 = vpop.permute.xlu1 %988  ;;  %v447_v22 = vpop.permute.xlu0 %446 }
 0x163   :  { %5583 = vmatprep.subr.msk.bf16.mxu0 %vm462_vm1, %v447_v22  ;;  %v488_v25 = vsel %vm462_vm1, %v447_v22, 0 }
 0x164   :  { %805 = vrot.lane.b32.xlu1 %v6417_v20, %s5984_s12  ;;  %628 = vrot.lane.b32.xlu0 %v6417_v20, %s5981_s9 }
 0x165   :  { %5165 = vmatpush3.bf16.xpose.msra.mxu0 %v488_v25 }
 0x166   :  { %5584 = vmatprep.subr.msk.bf16.mxu0 %vm462_vm1, %v449_v14  ;;  %v6428_v26 = vpop.permute.xlu1 %795  ;;  %v617_v27 = vpop.permute.xlu0 %616 }
 0x167   :  { %5212 = vmatprep.mubr.msk.bf16.mxu1 %vm462_vm1, %v617_v27 }
 0x168   :  { %2739 = vrot.lane.b32.xlu1 %v6172_v6, %s5986_s14  ;;  %998 = vrot.lane.b32.xlu0 %v6273_v1, %s5983_s11 }
 0x16a   :  { %v6435_v28 = vpop.permute.xlu1 %972  ;;  %v6437_v30 = vpop.permute.xlu0 %793 }
 0x16c   :  { %1963 = vrot.lane.b32.xlu1 %v6273_v1, %s5980_s30  ;;  %982 = vrot.lane.b32.xlu0 %v6417_v20, %s5985_s13 }
 0x16d   :  { %5167 = vmatpush3.bf16.xpose.msra.mxu0 %v491_v31 }
 0x16e   :  { %v633_v32 = vpop.permute.xlu1 %632  ;;  %v6444_v34 = vpop.permute.xlu0 %970 }
 0x16f   :  { %5591 = vmatprep.subr.msk.bf16.mxu1 %vm462_vm1, %v633_v32  ;;  %v673_v35 = vsel %vm462_vm1, %v633_v32, 0 }
 0x170   :  { %2357 = vrot.lane.b32.xlu1 %v6273_v1, %s5982_s10  ;;  %5197 = vmatpush3.bf16.xpose.msra.mxu1 %v673_v35 }
 0x171   :  { %2355 = vrot.lane.b32.xlu0 %v6236_v41, %s5982_s10  ;;  %5592 = vmatprep.subr.msk.bf16.mxu1 %vm462_vm1, %v635_v13 }
 0x172   :  { %v6453_v36 = vpop.permute.xlu1 %809  ;;  %v6455_v38 = vpop.permute.xlu0 %799 }
 0x174   :  { %2743 = vrot.lane.b32.xlu1 %v6210_v24, %s5986_s14 }
 0x175   :  { %2359 = vrot.lane.b32.xlu0 %v6271_v0, %s5982_s10 }
 0x176   :  { %v6461_v39 = vpop.permute.xlu1 %986  ;;  %v6463_v43 = vpop.permute.xlu0 %2351 }
 0x177   :  { %8826 = vst [vmem:[#allocation28_spill] sm:$0xff] %v6463_v43 }
 0x178   :  { %2747 = vrot.lane.b32.xlu1 %v6238_v42, %s5986_s14  ;;  %5199 = vmatpush3.bf16.xpose.msra.mxu1 %v676_v44 }
 0x179   :  { %2741 = vrot.lane.b32.xlu0 %v6170_v5, %s5986_s14 }
 0x17a   :  { %v6470_v45 = vpop.permute.xlu1 %1951  ;;  %v6472_v46 = vpop.permute.xlu0 %620 }
 0x17d   :  { %2745 = vrot.lane.b32.xlu0 %v6208_v23, %s5986_s14 }
 0x17e   :  { %v6476_v48 = vpop.permute.xlu1 %2345  ;;  %v6478_v49 = vpop.permute.xlu0 %974 }
 0x17f   :  { %8827 = vst [vmem:[#allocation29_spill] sm:$0xff] %v6476_v48 }
 0x182   :  { %v453_v50 = vpop.permute.xlu1 %452  ;;  %v6480_v53 = vpop.permute.xlu0 %1955 }
 0x183   :  { %v497_v37 = vsel %vm462_vm1, %v453_v50, 0 }
 0x186   :  { %v639_v55 = vpop.permute.xlu1 %638  ;;  %v457_v56 = vpop.permute.xlu0 %456 }
 0x18a   :  { %v6482_v58 = vpop.permute.xlu1 %815  ;;  %v643_v59 = vpop.permute.xlu0 %642 }
 0x18b   :  { %v688_v40 = vsel %vm462_vm1, %v643_v59, 0 }
 0x18e   :  { %v6484_v13 = vpop.permute.xlu1 %622  ;;  %v6486_v14 = vpop.permute.xlu0 %819 }
 0x192   :  { %v6488_v22 = vpop.permute.xlu1 %992  ;;  %v6490_v25 = vpop.permute.xlu0 %1961 }
 0x196   :  { %v6492_v27 = vpop.permute.xlu1 %976  ;;  %v455_v31 = vpop.permute.xlu0 %454 }
 0x19a   :  { %v6494_v32 = vpop.permute.xlu1 %1957  ;;  %v641_v35 = vpop.permute.xlu0 %640 }
 0x19e   :  { %v451_v44 = vpop.permute.xlu1 %450  ;;  %v6496_v51 = vpop.permute.xlu0 %817 }
 0x19f   :  { %5585 = vmatprep.subr.msk.bf16.mxu0 %vm462_vm1, %v451_v44  ;;  %v494_v47 = vsel %vm462_vm1, %v451_v44, 0  ;;  %v682_v44 = vsel %vm462_vm1, %v639_v55, 0 }
 0x1a0   :  { %5169 = vmatpush3.bf16.xpose.msra.mxu0 %v494_v47 }
 0x1a1   :  { %5586 = vmatprep.subr.msk.bf16.mxu0 %vm462_vm1, %v453_v50 }
 0x1a2   :  { %v637_v57 = vpop.permute.xlu1 %636  ;;  %v6501_v52 = vpop.permute.xlu0 %624 }
 0x1a3   :  { %5593 = vmatprep.subr.msk.bf16.mxu1 %vm462_vm1, %v637_v57  ;;  %v679_v61 = vsel %vm462_vm1, %v637_v57, 0  ;;  %v500_v57 = vsel %vm462_vm1, %v455_v31, 0 }
 0x1a4   :  { %5201 = vmatpush3.bf16.xpose.msra.mxu1 %v679_v61 }
 0x1a5   :  { %5594 = vmatprep.subr.msk.bf16.mxu1 %vm462_vm1, %v639_v55  ;;  %v503_v55 = vsel %vm462_vm1, %v457_v56, 0 }
 0x1a6   :  { %v6506_v29 = vpop.permute.xlu0 %994 }
 0x1a8   :  { %5171 = vmatpush3.bf16.xpose.msra.mxu0 %v497_v37  ;;  %v685_v37 = vsel %vm462_vm1, %v641_v35, 0 }
 0x1a9   :  { %5587 = vmatprep.subr.msk.bf16.mxu0 %vm462_vm1, %v455_v31  ;;  %v814_v31 = vpop.permute.xlu1 %813 }
 0x1aa   :  { %v6510_v47 = vpop.permute.xlu0 %801 }
 0x1ac   :  { %5203 = vmatpush3.bf16.xpose.msra.mxu1 %v682_v44 }
 0x1ad   :  { %5595 = vmatprep.subr.msk.bf16.mxu1 %vm462_vm1, %v641_v35  ;;  %v991_v63 = vpop.permute.xlu1 %990 }
 0x1ae   :  { %v6514_v33 = vpop.permute.xlu0 %978 }
 0x1b0   :  { %5173 = vmatpush3.bf16.xpose.msra.mxu0 %v500_v57 }
 0x1b1   :  { %5588 = vmatprep.subr.msk.bf16.mxu0 %vm462_vm1, %v457_v56  ;;  %v6532_v10 = vpop.permute.xlu1 %797 }
 0x1b2   :  { %v6518_v61 = vpop.permute.xlu0 %1959 }
 0x1b4   :  { %5205 = vmatpush3.bf16.xpose.msra.mxu1 %v685_v37 }
 0x1b5   :  { %5596 = vmatprep.subr.msk.bf16.mxu1 %vm462_vm1, %v643_v59  ;;  %v6538_v59 = vpop.permute.xlu1 %2349 }
 0x1b6   :  { %v461_v50 = vpop.permute.xlu0 %460  ;;  %8828 = vst [vmem:[#allocation30_spill] sm:$0xff] %v6538_v59 }
 0x1b8   :  { %5175 = vmatpush3.bf16.xpose.msra.mxu0 %v503_v55  ;;  %v509_v55 = vsel %vm462_vm1, %v461_v50, 0 }
 0x1ba   :  { %v647_v44 = vpop.permute.xlu0 %646 }
 0x1bc   :  { %5207 = vmatpush3.bf16.xpose.msra.mxu1 %v688_v40 }
 0x1be   :  { %v6524_v62 = vpop.permute.xlu0 %823 }
 0x1c2   :  { %v6526_v57 = vpop.permute.xlu0 %807 }
 0x1c6   :  { %v6528_v3 = vpop.permute.xlu0 %1965 }
 0x1ca   :  { %v459_v35 = vpop.permute.xlu0 %458 }
 0x1cb   :  { %5589 = vmatprep.subr.msk.bf16.mxu0 %vm462_vm1, %v459_v35  ;;  %v506_v37 = vsel %vm462_vm1, %v459_v35, 0  ;;  %v694_v35 = vsel %vm462_vm1, %v647_v44, 0 }
 0x1cc   :  { %5177 = vmatpush3.bf16.xpose.msra.mxu0 %v506_v37  ;;  %v627_v37 = vpop.permute.xlu1 %626 }
 0x1cd   :  { %5590 = vmatprep.subr.msk.bf16.mxu0 %vm462_vm1, %v461_v50 }
 0x1ce   :  { %v645_v56 = vpop.permute.xlu0 %644 }
 0x1cf   :  { %5597 = vmatprep.subr.msk.bf16.mxu1 %vm462_vm1, %v645_v56  ;;  %v691_v40 = vsel %vm462_vm1, %v645_v56, 0  ;;  %v850_v56 = vsel %vm462_vm1, %v6453_v36, 0 }
 0x1d0   :  { %5209 = vmatpush3.bf16.xpose.msra.mxu1 %v691_v40  ;;  %v997_v50 = vpop.permute.xlu1 %996 }
 0x1d1   :  { %5598 = vmatprep.subr.msk.bf16.mxu1 %vm462_vm1, %v647_v44  ;;  %v1027_v44 = vsel %vm462_vm1, %v6461_v39, 0 }
 0x1d4   :  { %5179 = vmatpush3.bf16.xpose.msra.mxu0 %v509_v55 }
 0x1d5   :  { %5599 = vmatprep.subr.msk.bf16.mxu0 %vm462_vm1, %v6453_v36 }
 0x1d8   :  { %5211 = vmatpush3.bf16.xpose.msra.mxu1 %v694_v35 }
 0x1d9   :  { %5607 = vmatprep.subr.msk.bf16.mxu1 %vm462_vm1, %v6461_v39  ;;  %v865_v39 = vsel %vm462_vm1, %v6486_v14, 0 }
 0x1db   :  { %5181 = vmatmul.mubr.msk.bf16.vlgmr.msra.gmra.mrb[16].mxu0 %vm462_vm1, %v6198_v18  ;;  %v853_v18 = vsel %vm462_vm1, %v6399_v15, 0 }
 0x1dc   :  { %5184 = vmatprep.mubr.msk.bf16.mxu0 %vm462_vm1, %v6301_v7  ;;  %5229 = vmatpush3.bf16.xpose.msra.mxu0 %v850_v56  ;;  %v6566_v7 = vpop.permute.xlu1 %803 }
 0x1dd   :  { %5600 = vmatprep.subr.msk.bf16.mxu0 %vm462_vm1, %v6399_v15 }
 0x1df   :  { %5213 = vmatmul.mubr.msk.bf16.vlgmr.msra.gmra.mrb[16].mxu1 %vm462_vm1, %v6407_v17  ;;  %v1030_v17 = vsel %vm462_vm1, %v6419_v21, 0 }
 0x1e0   :  { %5216 = vmatprep.mubr.msk.bf16.mxu1 %vm462_vm1, %v6472_v46  ;;  %5261 = vmatpush3.bf16.xpose.msra.mxu1 %v1027_v44  ;;  %v6578_v15 = vpop.permute.xlu1 %980 }
 0x1e1   :  { %5608 = vmatprep.subr.msk.bf16.mxu1 %vm462_vm1, %v6419_v21 }
 0x1e3   :  { %5185 = vmatmul.mubr.msk.bf16.gmra.mrb[20].mxu0 %vm462_vm1, %v6281_v2  ;;  %v822_v2 = vpop.permute.xlu0 %821 }
 0x1e4   :  { %5188 = vmatprep.mubr.msk.bf16.mxu0 %vm462_vm1, %v6345_v54  ;;  %5231 = vmatpush3.bf16.xpose.msra.mxu0 %v853_v18  ;;  %v856_v54 = vsel %vm462_vm1, %v814_v31, 0  ;;  %v6589_v36 = vpop.permute.xlu1 %2353 }
 0x1e5   :  { %5601 = vmatprep.subr.msk.bf16.mxu0 %vm462_vm1, %v814_v31  ;;  %8829 = vst [vmem:[#allocation31_spill] sm:$0xff] %v6589_v36  ;;  %v6686_v31 = vld [vmem:[%s8664_s2 + $0xc] sm:$0xff]  }
 0x1e6   :  { %v4869_v9 = vunpack.c.3.s8 %v6686_v31 }
 0x1e7   :  { %5217 = vmatmul.mubr.msk.bf16.gmra.mrb[20].mxu1 %vm462_vm1, %v6484_v13  ;;  %v629_v21 = vpop.permute.xlu0 %628  ;;  %v871_v13 = vsel %vm462_vm1, %v6524_v62, 0 }
 0x1e8   :  { %5220 = vmatprep.mubr.msk.bf16.mxu1 %vm462_vm1, %v6501_v52  ;;  %5263 = vmatpush3.bf16.xpose.msra.mxu1 %v1030_v17  ;;  %v1033_v52 = vsel %vm462_vm1, %v991_v63, 0  ;;  %v399_v5 = vcvt.s32.f32 %v4869_v9 }
 0x1e9   :  { %5609 = vmatprep.subr.msk.bf16.mxu1 %vm462_vm1, %v991_v63  ;;  %v631_v63 = vpop.permute.xlu1 %630 }
 0x1ea   :  { %v4729_v24 = vadd.f32 -1.0, %v399_v5 }
 0x1eb   :  { %5189 = vmatmul.mubr.msk.bf16.gmra.mrb[24].mxu0 %vm462_vm1, %v6369_v11  ;;  %v859_v11 = vsel %vm462_vm1, %v6482_v58, 0  ;;  %v999_v46 = vpop.permute.xlu0 %998 }
 0x1ec   :  { %5192 = vmatprep.mubr.msk.bf16.mxu0 %vm462_vm1, %v6417_v20  ;;  %5233 = vmatpush3.bf16.xpose.msra.mxu0 %v856_v54  ;;  %v1036_v20 = vsel %vm462_vm1, %v6488_v22, 0 }
 0x1ed   :  { %5602 = vmatprep.subr.msk.bf16.mxu0 %vm462_vm1, %v6482_v58  ;;  %v1001_v58 = vpop.permute.xlu1 %1000 }
 0x1ef   :  { %5221 = vmatmul.mubr.msk.bf16.gmra.mrb[24].mxu1 %vm462_vm1, %v627_v37 }
 0x1f0   :  { %5224 = vmatprep.mubr.msk.bf16.mxu1 %vm462_vm1, %v629_v21  ;;  %5265 = vmatpush3.bf16.xpose.msra.mxu1 %v1033_v52 }
 0x1f1   :  { %5610 = vmatprep.subr.msk.bf16.mxu1 %vm462_vm1, %v6488_v22  ;;  %v985_v22 = vpop.permute.xlu1 %984 }
 0x1f3   :  { %5193 = vmatmul.mubr.msk.bf16.gmra.mrb[28].mxu0 %vm462_vm1, %v6385_v12  ;;  %v862_v12 = vsel %vm462_vm1, %v6496_v51, 0 }
 0x1f4   :  { %5235 = vmatpush3.bf16.xpose.msra.mxu0 %v859_v11  ;;  %5244 = vmatprep.mubr.msk.bf16.mxu0 %vm462_vm1, %v6437_v30  ;;  %v1039_v30 = vsel %vm462_vm1, %v6506_v29, 0  ;;  %v4865_v11 = vunpack.c.1.s8 %v6686_v31 }
 0x1f5   :  { %5603 = vmatprep.subr.msk.bf16.mxu0 %vm462_vm1, %v6496_v51  ;;  %v868_v51 = vsel %vm462_vm1, %v822_v2, 0 }
 0x1f7   :  { %5225 = vmatmul.mubr.msk.bf16.gmra.mrb[28].mxu1 %vm462_vm1, %v631_v63 }
 0x1f8   :  { %5267 = vmatpush3.bf16.xpose.msra.mxu1 %v1036_v20  ;;  %5276 = vmatprep.mubr.msk.bf16.mxu1 %vm462_vm1, %v6444_v34  ;;  %v1042_v34 = vsel %vm462_vm1, %v997_v50, 0 }
 0x1f9   :  { %5611 = vmatprep.subr.msk.bf16.mxu1 %vm462_vm1, %v6506_v29  ;;  %v1045_v29 = vsel %vm462_vm1, %v999_v46, 0 }
 0x1fc   :  { %5237 = vmatpush3.bf16.xpose.msra.mxu0 %v862_v12 }
 0x1fd   :  { %5604 = vmatprep.subr.msk.bf16.mxu0 %vm462_vm1, %v6486_v14  ;;  %v1048_v14 = vsel %vm462_vm1, %v1001_v58, 0 }
 0x200   :  { %5269 = vmatpush3.bf16.xpose.msra.mxu1 %v1039_v30 }
 0x201   :  { %5612 = vmatprep.subr.msk.bf16.mxu1 %vm462_vm1, %v997_v50  ;;  %v4864_v50 = vunpack.c.0.s8 %v6686_v31 }
 0x203   :  { %v396_v52 = vcvt.s32.f32 %v4864_v50 }
 0x204   :  { %5239 = vmatpush3.bf16.xpose.msra.mxu0 %v865_v39 }
 0x205   :  { %5605 = vmatprep.subr.msk.bf16.mxu0 %vm462_vm1, %v822_v2 }
 0x208   :  { %5271 = vmatpush3.bf16.xpose.msra.mxu1 %v1042_v34 }
 0x209   :  { %5613 = vmatprep.subr.msk.bf16.mxu1 %vm462_vm1, %v999_v46 }
 0x20c   :  { %5241 = vmatpush3.bf16.xpose.msra.mxu0 %v868_v51  ;;  %v4726_v51 = vadd.f32 -1.0, %v396_v52 }
 0x20d   :  { %5606 = vmatprep.subr.msk.bf16.mxu0 %vm462_vm1, %v6524_v62  ;;  %v806_v62 = vpop.permute.xlu1 %805 }
 0x210   :  { %5273 = vmatpush3.bf16.xpose.msra.mxu1 %v1045_v29 }
 0x211   :  { %5614 = vmatprep.subr.msk.bf16.mxu1 %vm462_vm1, %v1001_v58  ;;  %v397_v58 = vcvt.s32.f32 %v4865_v11 }
 0x214   :  { %5243 = vmatpush3.bf16.xpose.msra.mxu0 %v871_v13 }
 0x215   :  { %5292 = vmatprep.subr.bf16.mxu0 %v6470_v45 }
 0x218   :  { %5275 = vmatpush3.bf16.xpose.msra.mxu1 %v1048_v14 }
 0x21b   :  { %5245 = vmatmul.mubr.msk.bf16.vlgmr.msra.gmra.mrb[32].mxu0 %vm462_vm1, %v6428_v26  ;;  %v5576_v26 = vld [vmem:[%s8664_s2 + $0x4] sm:$0xff]  }
 0x21c   :  { %5248 = vmatprep.mubr.msk.bf16.mxu0 %vm462_vm1, %v6532_v10  ;;  %5293 = vmatpush3.bf16.msra.mxu0 %v6470_v45  ;;  %v6654_v10 = vpop.permute.xlu1 %2739  ;;  %v4860_v39 = vunpack.c.2.s8 %v5576_v26 }
 0x21d   :  { %5294 = vmatprep.subr.bf16.mxu0 %v6401_v16  ;;  %8830 = vst [vmem:[#allocation32_spill] sm:$0xff] %v6654_v10 }
 0x21f   :  { %5277 = vmatmul.mubr.msk.bf16.vlgmr.msra.gmra.mrb[32].mxu1 %vm462_vm1, %v6435_v28  ;;  %v4856_v28 = vunpack.c.0.s8 %v5576_v26 }
 0x220   :  { %5280 = vmatprep.mubr.msk.bf16.mxu1 %vm462_vm1, %v6478_v49  ;;  %5295 = vmatpush3.bf16.msra.mxu0 %v6401_v16  ;;  %v983_v16 = vpop.permute.xlu0 %982 }
 0x221   :  { %5296 = vmatprep.subr.bf16.mxu0 %v6480_v53  ;;  %v392_v45 = vcvt.s32.f32 %v4856_v28 }
 0x223   :  { %5249 = vmatmul.mubr.msk.bf16.gmra.mrb[36].mxu0 %vm462_vm1, %v6455_v38  ;;  %v6677_v38 = vld [vmem:[%s8664_s2] ss:$28 sps:$4 sm:$0xff]  }
 0x224   :  { %5252 = vmatprep.mubr.msk.bf16.mxu0 %vm462_vm1, %v6510_v47  ;;  %5297 = vmatpush3.bf16.msra.mxu0 %v6480_v53  ;;  %v4852_v49 = vunpack.c.0.s8 %v6677_v38  ;;  %v4857_v53 = vunpack.c.1.s8 %v5576_v26 }
 0x225   :  { %5298 = vmatprep.subr.bf16.mxu0 %v6494_v32 }
 0x227   :  { %5281 = vmatmul.mubr.msk.bf16.gmra.mrb[36].mxu1 %vm462_vm1, %v6492_v27  ;;  %v390_v27 = vcvt.s32.f32 %v4852_v49  ;;  %v4727_v49 = vadd.f32 -1.0, %v397_v58 }
 0x228   :  { %5284 = vmatprep.mubr.msk.bf16.mxu1 %vm462_vm1, %v6514_v33  ;;  %5299 = vmatpush3.bf16.msra.mxu0 %v6494_v32  ;;  %v1964_v33 = vpop.permute.xlu1 %1963  ;;  %v393_v32 = vcvt.s32.f32 %v4857_v53 }
 0x229   :  { %5300 = vmatprep.subr.bf16.mxu0 %v6518_v61 }
 0x22a   :  { %v4723_v40 = vadd.f32 -1.0, %v393_v32 }
 0x22b   :  { %5253 = vmatmul.mubr.msk.bf16.gmra.mrb[40].mxu0 %vm462_vm1, %v6566_v7 }
 0x22c   :  { %5256 = vmatprep.mubr.msk.bf16.mxu0 %vm462_vm1, %v806_v62  ;;  %5301 = vmatpush3.bf16.msra.mxu0 %v6518_v61  ;;  %v4720_v61 = vadd.f32 -1.0, %v390_v27  ;;  %v6695_v7 = vmul.f32 1e+30, %v4723_v40  ;;  %v4861_v62 = vunpack.c.3.s8 %v5576_v26  ;;  %v6727_v27 = vld [vmem:[%s8664_s2 + $0x14] sm:$0xff]   ;;  %s5987_s2 = smov 40  }
 0x22d   :  { %5302 = vmatprep.subr.bf16.mxu0 %v6490_v25  ;;  %v4876_v10 = vunpack.c.2.s8 %v6727_v27 }
 0x22e   :  { %v6691_v37 = vmul.f32 1e+30, %v4720_v61 }
 0x22f   :  { %5285 = vmatmul.mubr.msk.bf16.gmra.mrb[40].mxu1 %vm462_vm1, %v6578_v15 }
 0x230   :  { %5288 = vmatprep.mubr.msk.bf16.mxu1 %vm462_vm1, %v983_v16  ;;  %5303 = vmatpush3.bf16.msra.mxu0 %v6490_v25  ;;  %v4722_v25 = vadd.f32 -1.0, %v392_v45  ;;  %v6722_v45 = vmul.f32 1e+30, %v4726_v51 }
 0x231   :  { %5304 = vmatprep.subr.bf16.mxu0 %v1964_v33 }
 0x232   :  { %v6681_v47 = vmul.f32 1e+30, %v4722_v25 }
 0x233   :  { %5257 = vmatmul.mubr.msk.bf16.gmra.mrb[44].mxu0 %vm462_vm1, %v6526_v57 }
 0x234   :  { %5305 = vmatpush3.bf16.msra.mxu0 %v1964_v33 }
 0x235   :  { %5306 = vmatprep.subr.bf16.mxu0 %v6528_v3 }
 0x237   :  { %5289 = vmatmul.mubr.msk.bf16.gmra.mrb[44].mxu1 %vm462_vm1, %v985_v22  ;;  %v394_v22 = vcvt.s32.f32 %v4860_v39 }
 0x238   :  { %5307 = vmatpush3.bf16.msra.mxu0 %v6528_v3  ;;  %v4853_v3 = vunpack.c.1.s8 %v6677_v38 }
 0x239   :  { %5350 = vmatprep.subr.bf16.mxu0 %v6476_v48  ;;  %v4724_v32 = vadd.f32 -1.0, %v394_v22  ;;  %v4868_v22 = vunpack.c.2.s8 %v6686_v31 }
 0x23a   :  { %v391_v55 = vcvt.s32.f32 %v4853_v3  ;;  %v395_v3 = vcvt.s32.f32 %v4861_v62 }
 0x23c   :  { %v4721_v17 = vadd.f32 -1.0, %v391_v55  ;;  %v6737_v55 = vmul.f32 1e+30, %v4727_v49 }
 0x23e   :  { %v6706_v12 = vmul.f32 1e+30, %v4721_v17  ;;  %v6744_v17 = vmul.f32 1e+30, %v4724_v32 }
 0x2ae   :  { %v5182_v57 = vpop.f32.mrb[16].mxu0 }
 0x2af   :  { %v6689_v35 = vadd.f32 %v5182_v57, %v6681_v47  ;;  %v545_v56 = vpop.f32.mrb[17].mxu0 }
 0x2b0   :  { %v5183_v44 = vpop.f32.mrb[18].mxu0  ;;  %v6698_v15 = vadd.f32 %v545_v56, %v6691_v37  ;;  %v4872_v56 = vunpack.c.0.s8 %v6727_v27 }
 0x2b1   :  { %1215 = vmax.xlane.f32.xlu0 %v6689_v35  ;;  %v548_v18 = vpop.f32.mrb[19].mxu0  ;;  %v6709_v34 = vadd.f32 %v5183_v44, %v6695_v7 }
 0x2b2   :  { %v5214_v2 = vpop.f32.mrb[16].mxu1  ;;  %v6717_v33 = vadd.f32 %v548_v18, %v6706_v12 }
 0x2b3   :  { %v6701_v54 = vadd.f32 %v5214_v2, %v6681_v47  ;;  %v730_v21 = vpop.f32.mrb[17].mxu1  ;;  %v4725_v2 = vadd.f32 -1.0, %v395_v3 }
 0x2b4   :  { %v5215_v63 = vpop.f32.mrb[18].mxu1  ;;  %v6712_v46 = vadd.f32 %v730_v21, %v6691_v37 }
 0x2b5   :  { %1211 = vmax.xlane.f32.xlu0 %v6698_v15  ;;  %1247 = vmax.xlane.f32.xlu1 %v6701_v54  ;;  %v733_v20 = vpop.f32.mrb[19].mxu1  ;;  %v6720_v28 = vadd.f32 %v5215_v63, %v6695_v7  ;;  %v400_v63 = vcvt.s32.f32 %v4872_v56  ;;  %v6755_v58 = vmul.f32 1e+30, %v4725_v2  ;;  %v398_v2 = vcvt.s32.f32 %v4868_v22 }
 0x2b6   :  { %v5186_v30 = vpop.f32.mrb[20].mxu0  ;;  %v6732_v57 = vadd.f32 %v733_v20, %v6706_v12  ;;  %v4873_v20 = vunpack.c.1.s8 %v6727_v27 }
 0x2b7   :  { %v561_v29 = vpop.f32.mrb[21].mxu0  ;;  %v6735_v40 = vadd.f32 %v5186_v30, %v6722_v45  ;;  %v4730_v49 = vadd.f32 -1.0, %v400_v63  ;;  %v4728_v22 = vadd.f32 -1.0, %v398_v2 }
 0x2b8   :  { %v5187_v13 = vpop.f32.mrb[22].mxu0  ;;  %v401_v32 = vcvt.s32.f32 %v4873_v20 }
 0x2b9   :  { %1217 = vmax.xlane.f32.xlu0 %v6709_v34  ;;  %v564_v14 = vpop.f32.mrb[23].mxu0  ;;  %1243 = vmax.xlane.f32.xlu1 %v6712_v46  ;;  %v6747_v52 = vadd.f32 %v5187_v13, %v6737_v55  ;;  %v6759_v13 = vadd.f32 %v561_v29, %v6744_v17  ;;  %v6775_v63 = vmul.f32 1e+30, %v4730_v49  ;;  %v4880_v49 = vunpack.c.2.s8 %v6677_v38 }
 0x2ba   :  { %v5218_v16 = vpop.f32.mrb[20].mxu1  ;;  %v6770_v29 = vadd.f32 %v564_v14, %v6755_v58  ;;  %v4731_v20 = vadd.f32 -1.0, %v401_v32  ;;  %v6790_v32 = vmul.f32 1e+30, %v4728_v22 }
 0x2bb   :  { %v746_v53 = vpop.f32.mrb[21].mxu1  ;;  %v6750_v11 = vadd.f32 %v5218_v16, %v6722_v45 }
 0x2bc   :  { %v5219_v25 = vpop.f32.mrb[22].mxu1 }
 0x2bd   :  { %1213 = vmax.xlane.f32.xlu1 %v6717_v33  ;;  %1249 = vmax.xlane.f32.xlu0 %v6720_v28  ;;  %v749_v26 = vpop.f32.mrb[23].mxu1  ;;  %v6762_v16 = vadd.f32 %v5219_v25, %v6737_v55  ;;  %v6773_v25 = vadd.f32 %v746_v53, %v6744_v17  ;;  %v6785_v53 = vmul.f32 1e+30, %v4731_v20  ;;  %v6801_v20 = vmul.f32 1e+30, %v4729_v24 }
 0x2be   :  { %v5190_v61 = vpop.f32.mrb[24].mxu0  ;;  %v6780_v31 = vadd.f32 %v749_v26, %v6755_v58  ;;  %v404_v26 = vcvt.s32.f32 %v4880_v49  ;;  %v4877_v49 = vunpack.c.3.s8 %v6727_v27 }
 0x2bf   :  { %v577_v50 = vpop.f32.mrb[25].mxu0  ;;  %v6783_v14 = vadd.f32 %v5190_v61, %v6775_v63  ;;  %v4881_v61 = vunpack.c.3.s8 %v6677_v38  ;;  %v402_v38 = vcvt.s32.f32 %v4876_v10 }
 0x2c0   :  { %v5191_v44 = vpop.f32.mrb[26].mxu0  ;;  %v6805_v22 = vadd.f32 %v577_v50, %v6790_v32 }
 0x2c1   :  { %v6740_v18 = vpop.f32.mrb[27].mxu0  ;;  %1223 = vmax.xlane.f32.xlu1 %v6735_v40  ;;  %1245 = vmax.xlane.f32.xlu0 %v6732_v57  ;;  %v6793_v2 = vadd.f32 %v5191_v44, %v6785_v53  ;;  %v4734_v44 = vadd.f32 -1.0, %v404_v26  ;;  %v4732_v26 = vadd.f32 -1.0, %v402_v38 }
 0x2c2   :  { %v5222_v21 = vpop.f32.mrb[24].mxu1  ;;  %v6815_v24 = vadd.f32 %v6740_v18, %v6801_v20  ;;  %v403_v18 = vcvt.s32.f32 %v4877_v49 }
 0x2c3   :  { %v762_v30 = vpop.f32.mrb[25].mxu1  ;;  %v6796_v9 = vadd.f32 %v5222_v21, %v6775_v63  ;;  %v405_v21 = vcvt.s32.f32 %v4881_v61  ;;  %v6820_v50 = vmul.f32 1e+30, %v4734_v44 }
 0x2c4   :  { %v5223_v39 = vpop.f32.mrb[26].mxu1  ;;  %v6818_v0 = vadd.f32 %v762_v30, %v6790_v32  ;;  %v6834_v30 = vmul.f32 1e+30, %v4732_v26 }
 0x2c5   :  { %1225 = vmax.xlane.f32.xlu0 %v6747_v52  ;;  %1255 = vmax.xlane.f32.xlu1 %v6750_v11  ;;  %v765_v51 = vpop.f32.mrb[27].mxu1  ;;  %v6808_v5 = vadd.f32 %v5223_v39, %v6785_v53  ;;  %v4735_v39 = vadd.f32 -1.0, %v405_v21  ;;  %v4733_v21 = vadd.f32 -1.0, %v403_v18 }
 0x2c6   :  { %v5194_v62 = vpop.f32.mrb[28].mxu0  ;;  %v6825_v61 = vadd.f32 %v765_v51, %v6801_v20 }
 0x2c7   :  { %v593_v3 = vpop.f32.mrb[29].mxu0  ;;  %v6828_v10 = vadd.f32 %v5194_v62, %v6820_v50  ;;  %v6830_v27 = vmul.f32 1e+30, %v4735_v39  ;;  %v6847_v62 = vmul.f32 1e+30, %v4733_v21 }
 0x2c8   :  { %v5195_v56 = vpop.f32.mrb[30].mxu0  ;;  %v6845_v51 = vadd.f32 %v593_v3, %v6834_v30 }
 0x2c9   :  { %v6764_v8 = vpop.f32.mrb[31].mxu0  ;;  %1219 = vmax.xlane.f32.xlu1 %v6759_v13  ;;  %1257 = vmax.xlane.f32.xlu0 %v6762_v16  ;;  %v6837_v44 = vadd.f32 %v5195_v56, %v6830_v27 }
 0x2ca   :  { %v5226_v60 = vpop.f32.mrb[28].mxu1 }
 0x2cb   :  { %v778_v4 = vpop.f32.mrb[29].mxu1  ;;  %v6840_v38 = vadd.f32 %v5226_v60, %v6820_v50  ;;  %v6856_v60 = vadd.f32 %v6764_v8, %v6847_v62 }
 0x2cc   :  { %v5227_v23 = vpop.f32.mrb[30].mxu1  ;;  %v6859_v56 = vadd.f32 %v778_v4, %v6834_v30 }
 0x2cd   :  { %1251 = vmax.xlane.f32.xlu1 %v6773_v25  ;;  %1221 = vmax.xlane.f32.xlu0 %v6770_v29  ;;  %v781_v42 = vpop.f32.mrb[31].mxu1  ;;  %v6850_v49 = vadd.f32 %v5227_v23, %v6830_v27  ;;  %8832 = vst [vmem:[#allocation34_spill] sm:$0xff] %v6856_v60 }
 0x2ce   :  { %v6864_v39 = vadd.f32 %v781_v42, %v6847_v62 }
 0x2cf   :  { %8831 = vst [vmem:[#allocation33_spill] sm:$0xff] %v6850_v49 }
 0x2d0   :  { %8833 = vst [vmem:[#allocation35_spill] sm:$0xff] %v6864_v39 }
 0x2d1   :  { %1231 = vmax.xlane.f32.xlu1 %v6783_v14  ;;  %1253 = vmax.xlane.f32.xlu0 %v6780_v31 }
 0x2d5   :  { %1233 = vmax.xlane.f32.xlu0 %v6793_v2  ;;  %1263 = vmax.xlane.f32.xlu1 %v6796_v9 }
 0x2d9   :  { %1227 = vmax.xlane.f32.xlu1 %v6805_v22  ;;  %1265 = vmax.xlane.f32.xlu0 %v6808_v5 }
 0x2dd   :  { %1259 = vmax.xlane.f32.xlu1 %v6818_v0  ;;  %1229 = vmax.xlane.f32.xlu0 %v6815_v24 }
 0x2e1   :  { %1239 = vmax.xlane.f32.xlu1 %v6828_v10  ;;  %1261 = vmax.xlane.f32.xlu0 %v6825_v61 }
 0x2e5   :  { %1241 = vmax.xlane.f32.xlu0 %v6837_v44  ;;  %1271 = vmax.xlane.f32.xlu1 %v6840_v38 }
 0x2e9   :  { %1235 = vmax.xlane.f32.xlu1 %v6845_v51  ;;  %1273 = vmax.xlane.f32.xlu0 %v6850_v49 }
 0x2ed   :  { %1267 = vmax.xlane.f32.xlu1 %v6859_v56  ;;  %1237 = vmax.xlane.f32.xlu0 %v6856_v60 }
 0x2ee   :  { %v5246_v3 = vpop.f32.mrb[32].mxu0 }
 0x2ef   :  { %v6867_v23 = vadd.f32 %v5246_v3, %v6681_v47  ;;  %v907_v26 = vpop.f32.mrb[33].mxu0 }
 0x2f0   :  { %v5247_v18 = vpop.f32.mrb[34].mxu0  ;;  %v6880_v59 = vadd.f32 %v907_v26, %v6691_v37 }
 0x2f1   :  { %8834 = vst [vmem:[#allocation36_spill] sm:$0xff] %v6867_v23  ;;  %v910_v21 = vpop.f32.mrb[35].mxu0  ;;  %1279 = vmax.xlane.f32.xlu1 %v6867_v23  ;;  %1269 = vmax.xlane.f32.xlu0 %v6864_v39  ;;  %v6872_v8 = vadd.f32 %v5247_v18, %v6695_v7 }
 0x2f2   :  { %v5278_v4 = vpop.f32.mrb[32].mxu1  ;;  %8837 = vst [vmem:[#allocation39_spill] sm:$0xff] %v6880_v59  ;;  %v6883_v19 = vadd.f32 %v910_v21, %v6706_v12 }
 0x2f3   :  { %8835 = vst [vmem:[#allocation37_spill] sm:$0xff] %v6872_v8  ;;  %v6875_v6 = vadd.f32 %v5278_v4, %v6681_v47  ;;  %v1084_v36 = vpop.f32.mrb[33].mxu1 }
 0x2f4   :  { %v5279_v42 = vpop.f32.mrb[34].mxu1  ;;  %8838 = vst [vmem:[#allocation40_spill] sm:$0xff] %v6883_v19  ;;  %v6888_v4 = vadd.f32 %v1084_v36, %v6691_v37 }
 0x2f5   :  { %8836 = vst [vmem:[#allocation38_spill] sm:$0xff] %v6875_v6  ;;  %1281 = vmax.xlane.f32.xlu0 %v6872_v8  ;;  %1311 = vmax.xlane.f32.xlu1 %v6875_v6  ;;  %v1087_v3 = vpop.f32.mrb[35].mxu1  ;;  %v6896_v23 = vadd.f32 %v5279_v42, %v6695_v7 }
 0x2f6   :  { %v5250_v43 = vpop.f32.mrb[36].mxu0  ;;  %8839 = vst [vmem:[#allocation41_spill] sm:$0xff] %v6888_v4 }
 0x2f7   :  { %v923_v48 = vpop.f32.mrb[37].mxu0  ;;  %8841 = vst [vmem:[#allocation43_spill] sm:$0xff] %v6896_v23  ;;  %v6912_v49 = vadd.f32 %v5250_v43, %v6722_v45 }
 0x2f8   :  { %v5251_v18 = vpop.f32.mrb[38].mxu0 }
 0x2f9   :  { %v926_v41 = vpop.f32.mrb[39].mxu0  ;;  %1277 = vmax.xlane.f32.xlu0 %v6883_v19  ;;  %1275 = vmax.xlane.f32.xlu1 %v6880_v59  ;;  %v6899_v19 = vadd.f32 %v5251_v18, %v6737_v55  ;;  %8845 = vst [vmem:[#allocation47_spill] sm:$0xff] %v6912_v49 }
 0x2fa   :  { %v5282_v47 = vpop.f32.mrb[36].mxu1 }
 0x2fb   :  { %v6891_v6 = vadd.f32 %v5282_v47, %v6722_v45  ;;  %v1100_v1 = vpop.f32.mrb[37].mxu1  ;;  %8842 = vst [vmem:[#allocation44_spill] sm:$0xff] %v6899_v19 }
 0x2fc   :  { %v5283_v26 = vpop.f32.mrb[38].mxu1 }
 0x2fd   :  { %8840 = vst [vmem:[#allocation42_spill] sm:$0xff] %v6891_v6  ;;  %1307 = vmax.xlane.f32.xlu1 %v6888_v4  ;;  %1319 = vmax.xlane.f32.xlu0 %v6891_v6  ;;  %v1103_v21 = vpop.f32.mrb[39].mxu1  ;;  %v6904_v4 = vadd.f32 %v1087_v3, %v6706_v12  ;;  %v6907_v6 = vadd.f32 %v926_v41, %v6755_v58 }
 0x2fe   :  { %v5254_v8 = vpop.f32.mrb[40].mxu0 }
 0x2ff   :  { %v939_v59 = vpop.f32.mrb[41].mxu0  ;;  %8843 = vst [vmem:[#allocation45_spill] sm:$0xff] %v6904_v4  ;;  %8844 = vst [vmem:[#allocation46_spill] sm:$0xff] %v6907_v6 }
 0x300   :  { %v5255_v36 = vpop.f32.mrb[42].mxu0 }
 0x301   :  { %v942_v37 = vpop.f32.mrb[43].mxu0  ;;  %1313 = vmax.xlane.f32.xlu1 %v6896_v23  ;;  %1289 = vmax.xlane.f32.xlu0 %v6899_v19 }
 0x302   :  { %v5286_v47 = vpop.f32.mrb[40].mxu1 }
 0x303   :  { %v1116_v39 = vpop.f32.mrb[41].mxu1  ;;  %v6915_v23 = vadd.f32 %v5286_v47, %v6775_v63  ;;  %v6928_v47 = vadd.f32 %v1100_v1, %v6744_v17  ;;  %v6944_v1 = vadd.f32 %v1103_v21, %v6755_v58  ;;  %v6960_v58 = vadd.f32 %v939_v59, %v6790_v32 }
 0x304   :  { %v5287_v7 = vpop.f32.mrb[42].mxu1 }
 0x305   :  { %1309 = vmax.xlane.f32.xlu1 %v6904_v4  ;;  %1285 = vmax.xlane.f32.xlu0 %v6907_v6  ;;  %v1119_v42 = vpop.f32.mrb[43].mxu1  ;;  %8846 = vst [vmem:[#allocation48_spill] sm:$0xff] %v6915_v23  ;;  %v6920_v4 = vadd.f32 %v923_v48, %v6744_v17  ;;  %v6923_v6 = vadd.f32 %v1116_v39, %v6790_v32  ;;  %8848 = vst [vmem:[#allocation50_spill] sm:$0xff] %v6928_v47  ;;  %v6981_v32 = vpop.permute.xlu0 %2355 }
 0x306   :  { %v5258_v18 = vpop.f32.mrb[44].mxu0  ;;  %v6936_v48 = vadd.f32 %v5283_v26, %v6737_v55  ;;  %v6939_v39 = vadd.f32 %v942_v37, %v6801_v20  ;;  %8850 = vst [vmem:[#allocation52_spill] sm:$0xff] %v6944_v1  ;;  %v6952_v55 = vadd.f32 %v5254_v8, %v6775_v63  ;;  %v6968_v63 = vadd.f32 %v5287_v7, %v6785_v53  ;;  %v6999_v8 = vpop.permute.xlu1 %2357 }
 0x307   :  { %v955_v19 = vpop.f32.mrb[45].mxu0  ;;  %8847 = vst [vmem:[#allocation49_spill] sm:$0xff] %v6923_v6  ;;  %v6947_v17 = vadd.f32 %v5258_v18, %v6820_v50  ;;  %v6976_v59 = vadd.f32 %v1119_v42, %v6801_v20 }
 0x308   :  { %v5259_v12 = vpop.f32.mrb[46].mxu0  ;;  %8849 = vst [vmem:[#allocation51_spill] sm:$0xff] %v6936_v48  ;;  %v6963_v21 = vadd.f32 %v955_v19, %v6834_v30  ;;  %8852 = vst [vmem:[#allocation54_spill] sm:$0xff] %v6968_v63 }
 0x309   :  { %v958_v3 = vpop.f32.mrb[47].mxu0  ;;  %1287 = vmax.xlane.f32.xlu1 %v6912_v49  ;;  %1327 = vmax.xlane.f32.xlu0 %v6915_v23  ;;  %v6931_v49 = vadd.f32 %v5255_v36, %v6785_v53  ;;  %8854 = vst [vmem:[#allocation56_spill] sm:$0xff] %v6976_v59  ;;  %v6979_v19 = vadd.f32 %v5259_v12, %v6830_v27  ;;  %v6993_v20 = vpop.permute.xlu0 %2359 }
 0x30a   :  { %v5290_v41 = vpop.f32.mrb[44].mxu1  ;;  %v6986_v53 = vadd.f32 %v958_v3, %v6847_v62  ;;  %v7003_v37 = vpop.permute.xlu1 %2743 }
 0x30b   :  { %v1132_v60 = vpop.f32.mrb[45].mxu1  ;;  %v6955_v26 = vadd.f32 %v5290_v41, %v6820_v50  ;;  %8858 = vst [vmem:[#allocation60_spill] sm:$0xff] %v7003_v37 }
 0x30c   :  { %v5291_v43 = vpop.f32.mrb[46].mxu1  ;;  %v6971_v50 = vadd.f32 %v1132_v60, %v6834_v30 }
 0x30d   :  { %1283 = vmax.xlane.f32.xlu1 %v6920_v4  ;;  %1323 = vmax.xlane.f32.xlu0 %v6923_v6  ;;  %v1135_v45 = vpop.f32.mrb[47].mxu1  ;;  %8851 = vst [vmem:[#allocation53_spill] sm:$0xff] %v6955_v26  ;;  %v6989_v30 = vadd.f32 %v5291_v43, %v6830_v27  ;;  %v7001_v36 = vpop.permute.xlu0 %2741 }
 0x30e   :  { %8853 = vst [vmem:[#allocation55_spill] sm:$0xff] %v6971_v50  ;;  %v6996_v60 = vadd.f32 %v1135_v45, %v6847_v62  ;;  %8857 = vst [vmem:[#allocation59_spill] sm:$0xff] %v7001_v36  ;;  %v7007_v27 = vpop.permute.xlu1 %2747 }
 0x30f   :  { %8855 = vst [vmem:[#allocation57_spill] sm:$0xff] %v6989_v30  ;;  %8860 = vst [vmem:[#allocation62_spill] sm:$0xff] %v7007_v27 }
 0x310   :  { %8856 = vst [vmem:[#allocation58_spill] sm:$0xff] %v6996_v60 }
 0x311   :  { %1315 = vmax.xlane.f32.xlu1 %v6928_v47  ;;  %1297 = vmax.xlane.f32.xlu0 %v6931_v49  ;;  %v7005_v7 = vpop.permute.xlu0 %2745 }
 0x312   :  { %8859 = vst [vmem:[#allocation61_spill] sm:$0xff] %v7005_v7 }
 0x315   :  { %1321 = vmax.xlane.f32.xlu1 %v6936_v48  ;;  %1293 = vmax.xlane.f32.xlu0 %v6939_v39 }
 0x319   :  { %1317 = vmax.xlane.f32.xlu1 %v6944_v1  ;;  %1303 = vmax.xlane.f32.xlu0 %v6947_v17 }
 0x31d   :  { %1295 = vmax.xlane.f32.xlu1 %v6952_v55  ;;  %1335 = vmax.xlane.f32.xlu0 %v6955_v26 }
 0x321   :  { %1291 = vmax.xlane.f32.xlu1 %v6960_v58  ;;  %1299 = vmax.xlane.f32.xlu0 %v6963_v21 }
 0x325   :  { %1329 = vmax.xlane.f32.xlu1 %v6968_v63  ;;  %1331 = vmax.xlane.f32.xlu0 %v6971_v50 }
 0x329   :  { %1325 = vmax.xlane.f32.xlu1 %v6976_v59  ;;  %1305 = vmax.xlane.f32.xlu0 %v6979_v19 }
 0x32d   :  { %1301 = vmax.xlane.f32.xlu0 %v6986_v53  ;;  %1337 = vmax.xlane.f32.xlu1 %v6989_v30 }
 0x331   :  { %1333 = vmax.xlane.f32.xlu1 %v6996_v60 }
 0x33e   :  { %v7009_v42 = vpop.xlane.xlu0 %1215 }
 0x33f   :  { %v1341_v18 = vsub.f32 %v6689_v35, %v7009_v42  ;;  %vm1661_vm4 = vcmp.gt.f32.partialorder %v7009_v42, -1e+29 }
 0x341   :  { %v1407_v12 = vmul.f32 1.442695, %v1341_v18 }
 0x342   :  { %v7013_v62 = vpop.xlane.xlu1 %1247  ;;  %v7015_v3 = vpop.xlane.xlu0 %1211 }
 0x343   :  { %8861 = vst [vmem:[#allocation63_spill] sm:$0xff] %v7013_v62  ;;  %5639 = vpow2.f32 %v1407_v12  ;;  %v1357_v41 = vsub.f32 %v6701_v54, %v7013_v62  ;;  %v1339_v43 = vsub.f32 %v6698_v15, %v7015_v3  ;;  %vm1659_vm3 = vcmp.gt.f32.partialorder %v7015_v3, -1e+29 }
 0x345   :  { %v1439_v45 = vmul.f32 1.442695, %v1357_v41  ;;  %v1403_v30 = vmul.f32 1.442695, %v1339_v43 }
 0x346   :  { %v7021_v50 = vpop.xlane.xlu1 %1243  ;;  %v7023_v26 = vpop.xlane.xlu0 %1217 }
 0x347   :  { %5641 = vpow2.f32 %v1439_v45  ;;  %v1355_v35 = vsub.f32 %v6712_v46, %v7021_v50  ;;  %v1342_v18 = vsub.f32 %v6709_v34, %v7023_v26  ;;  %vm1662_vm2 = vcmp.gt.f32.partialorder %v7023_v26, -1e+29 }
 0x348   :  { %5643 = vpow2.f32 %v1403_v30  ;;  %vm1675_vm15 = vcmp.gt.f32.partialorder %v7021_v50, -1e+29 }
 0x349   :  { %v1435_v12 = vmul.f32 1.442695, %v1355_v35  ;;  %v1409_v15 = vmul.f32 1.442695, %v1342_v18 }
 0x34a   :  { %v7029_v60 = vpop.xlane.xlu1 %1213  ;;  %v7031_v54 = vpop.xlane.xlu0 %1249 }
 0x34b   :  { %8862 = vst [vmem:[#allocation64_spill] sm:$0xff] %v7031_v54  ;;  %5645 = vpow2.f32 %v1435_v12  ;;  %v1340_v41 = vsub.f32 %v6717_v33, %v7029_v60  ;;  %v1358_v43 = vsub.f32 %v6720_v28, %v7031_v54  ;;  %vm1660_vm5 = vcmp.gt.f32.partialorder %v7029_v60, -1e+29 }
 0x34c   :  { %5647 = vpow2.f32 %v1409_v15 }
 0x34d   :  { %v7037_v45 = vpop.eup %5639  ;;  %v1441_v46 = vmul.f32 1.442695, %v1358_v43  ;;  %v1405_v63 = vmul.f32 1.442695, %v1340_v41 }
 0x34e   :  { %v7039_v6 = vpop.xlane.xlu1 %1223  ;;  %1535 = vadd.xlane.f32.xlu1 %v7037_v45  ;;  %v7042_v34 = vpop.xlane.xlu0 %1245 }
 0x34f   :  { %v1345_v30 = vsub.f32 %v6735_v40, %v7039_v6  ;;  %v1356_v33 = vsub.f32 %v6732_v57, %v7042_v34  ;;  %5649 = vpow2.f32 %v1441_v46  ;;  %vm1665_vm8 = vcmp.gt.f32.partialorder %v7039_v6, -1e+29 }
 0x350   :  { %5651 = vpow2.f32 %v1405_v63 }
 0x351   :  { %v7048_v35 = vpop.eup %5641  ;;  %v1415_v28 = vmul.f32 1.442695, %v1345_v30  ;;  %v1437_v41 = vmul.f32 1.442695, %v1356_v33 }
 0x352   :  { %8863 = vst [vmem:[#allocation65_spill] sm:$0xff] %v7048_v35  ;;  %v7050_v18 = vpop.xlane.xlu1 %1255  ;;  %1567 = vadd.xlane.f32.xlu0 %v7048_v35  ;;  %v7053_v12 = vpop.xlane.xlu0 %1225 }
 0x353   :  { %8864 = vst [vmem:[#allocation66_spill] sm:$0xff] %v7050_v18  ;;  %5653 = vpow2.f32 %v1415_v28  ;;  %v1361_v15 = vsub.f32 %v6750_v11, %v7050_v18  ;;  %v7057_v40 = vpop.eup %5643  ;;  %v1346_v59 = vsub.f32 %v6747_v52, %v7053_v12  ;;  %vm1666_vm9 = vcmp.gt.f32.partialorder %v7053_v12, -1e+29  ;;  %v8943_v12 = vld [vmem:[#allocation31_spill] sm:$0xff] }
 0x354   :  { %5655 = vpow2.f32 %v1437_v41 }
 0x355   :  { %v7059_v43 = vpop.eup %5645  ;;  %v1447_v57 = vmul.f32 1.442695, %v1361_v15 }
 0x356   :  { %8865 = vst [vmem:[#allocation67_spill] sm:$0xff] %v7059_v43  ;;  %v7061_v46 = vpop.xlane.xlu1 %1219  ;;  %1563 = vadd.xlane.f32.xlu1 %v7059_v43  ;;  %1531 = vadd.xlane.f32.xlu0 %v7057_v40  ;;  %v7065_v63 = vpop.xlane.xlu0 %1257 }
 0x357   :  { %8866 = vst [vmem:[#allocation68_spill] sm:$0xff] %v7065_v63  ;;  %v1343_v30 = vsub.f32 %v6759_v13, %v7061_v46  ;;  %v7069_v33 = vpop.eup %5647  ;;  %5657 = vpow2.f32 %v1447_v57  ;;  %vm1663_vm6 = vcmp.gt.f32.partialorder %v7061_v46, -1e+29 }
 0x359   :  { %v1411_v11 = vmul.f32 1.442695, %v1343_v30  ;;  %v7071_v28 = vpop.eup %5649 }
 0x35a   :  { %8867 = vst [vmem:[#allocation69_spill] sm:$0xff] %v7071_v28  ;;  %v7073_v23 = vpop.xlane.xlu1 %1251  ;;  %1537 = vadd.xlane.f32.xlu0 %v7069_v33  ;;  %v7076_v15 = vpop.xlane.xlu0 %1221  ;;  %1569 = vadd.xlane.f32.xlu1 %v7071_v28 }
 0x35b   :  { %8868 = vst [vmem:[#allocation70_spill] sm:$0xff] %v7073_v23  ;;  %5659 = vpow2.f32 %v1411_v11  ;;  %v1359_v41 = vsub.f32 %v6773_v25, %v7073_v23  ;;  %v1344_v13 = vsub.f32 %v6770_v29, %v7076_v15  ;;  %v7085_v30 = vpop.eup %5651  ;;  %v1417_v11 = vmul.f32 1.442695, %v1346_v59 }
 0x35c   :  { %v1362_v25 = vsub.f32 %v6762_v16, %v7065_v63  ;;  %vm1664_vm7 = vcmp.gt.f32.partialorder %v7076_v15, -1e+29  ;;  %v8942_v15 = vld [vmem:[#allocation28_spill] sm:$0xff] }
 0x35d   :  { %v7087_v57 = vpop.eup %5653  ;;  %v1443_v48 = vmul.f32 1.442695, %v1359_v41  ;;  %v1413_v47 = vmul.f32 1.442695, %v1344_v13 }
 0x35e   :  { %v7089_v1 = vpop.xlane.xlu1 %1231  ;;  %1533 = vadd.xlane.f32.xlu0 %v7085_v30  ;;  %v7092_v52 = vpop.xlane.xlu0 %1253  ;;  %1543 = vadd.xlane.f32.xlu1 %v7087_v57  ;;  %v1449_v16 = vmul.f32 1.442695, %v1362_v25 }
 0x35f   :  { %8869 = vst [vmem:[#allocation71_spill] sm:$0xff] %v7092_v52  ;;  %5661 = vpow2.f32 %v1443_v48  ;;  %v1360_v29 = vsub.f32 %v6780_v31, %v7092_v52  ;;  %v1349_v41 = vsub.f32 %v6783_v14, %v7089_v1  ;;  %v7101_v13 = vpop.eup %5655  ;;  %vm1669_vm12 = vcmp.gt.f32.partialorder %v7089_v1, -1e+29 }
 0x360   :  { %5663 = vpow2.f32 %v1413_v47 }
 0x361   :  { %v1445_v27 = vmul.f32 1.442695, %v1360_v29  ;;  %5665 = vpow2.f32 %v1417_v11  ;;  %v7108_v48 = vpop.eup %5657  ;;  %v1423_v37 = vmul.f32 1.442695, %v1349_v41 }
 0x362   :  { %v7103_v7 = vpop.xlane.xlu1 %1263  ;;  %1565 = vadd.xlane.f32.xlu0 %v7101_v13  ;;  %v7106_v59 = vpop.xlane.xlu0 %1233  ;;  %8871 = vst [vmem:[#allocation73_spill] sm:$0xff] %v7108_v48 }
 0x363   :  { %8870 = vst [vmem:[#allocation72_spill] sm:$0xff] %v7103_v7  ;;  %5667 = vpow2.f32 %v1445_v27  ;;  %v1365_v31 = vsub.f32 %v6796_v9, %v7103_v7  ;;  %vm1670_vm13 = vcmp.gt.f32.partialorder %v7106_v59, -1e+29 }
 0x364   :  { %5669 = vpow2.f32 %v1449_v16 }
 0x365   :  { %v7112_v47 = vpop.eup %5659  ;;  %5671 = vpow2.f32 %v1423_v37  ;;  %v1455_v25 = vmul.f32 1.442695, %v1365_v31 }
 0x366   :  { %v7114_v14 = vpop.xlane.xlu1 %1227  ;;  %1539 = vadd.xlane.f32.xlu1 %v7112_v47  ;;  %1575 = vadd.xlane.f32.xlu0 %v7108_v48  ;;  %v7118_v29 = vpop.xlane.xlu0 %1265  ;;  %v1350_v48 = vsub.f32 %v6793_v2, %v7106_v59  ;;  %v8947_v59 = vld [vmem:[#allocation38_spill] sm:$0xff] }
 0x367   :  { %8872 = vst [vmem:[#allocation74_spill] sm:$0xff] %v7118_v29  ;;  %v1347_v11 = vsub.f32 %v6805_v22, %v7114_v14  ;;  %vm1667_vm10 = vcmp.gt.f32.partialorder %v7114_v14, -1e+29 }
 0x369   :  { %v7122_v27 = vpop.eup %5661  ;;  %v1419_v41 = vmul.f32 1.442695, %v1347_v11 }
 0x36a   :  { %8873 = vst [vmem:[#allocation75_spill] sm:$0xff] %v7122_v27  ;;  %v7124_v9 = vpop.eup %5663  ;;  %v7126_v7 = vpop.xlane.xlu1 %1259  ;;  %1571 = vadd.xlane.f32.xlu1 %v7122_v27 }
 0x36b   :  { %8874 = vst [vmem:[#allocation76_spill] sm:$0xff] %v7126_v7  ;;  %v7129_v36 = vpop.xlane.xlu0 %1229  ;;  %5673 = vpow2.f32 %v1419_v41  ;;  %v1363_v22 = vsub.f32 %v6818_v0, %v7126_v7  ;;  %1541 = vadd.xlane.f32.xlu0 %v7124_v9  ;;  %v7138_v16 = vpop.eup %5665  ;;  %v1425_v41 = vmul.f32 1.442695, %v1350_v48  ;;  %v1366_v0 = vsub.f32 %v6808_v5, %v7118_v29 }
 0x36c   :  { %v1348_v37 = vsub.f32 %v6815_v24, %v7129_v36  ;;  %5675 = vpow2.f32 %v1455_v25  ;;  %vm1668_vm11 = vcmp.gt.f32.partialorder %v7129_v36, -1e+29 }
 0x36d   :  { %v1451_v31 = vmul.f32 1.442695, %v1363_v22  ;;  %v7140_v18 = vpop.eup %5667  ;;  %v1457_v48 = vmul.f32 1.442695, %v1366_v0 }
 0x36e   :  { %v1421_v11 = vmul.f32 1.442695, %v1348_v37  ;;  %8875 = vst [vmem:[#allocation77_spill] sm:$0xff] %v7140_v18  ;;  %v7142_v63 = vpop.xlane.xlu1 %1239  ;;  %1545 = vadd.xlane.f32.xlu1 %v7138_v16  ;;  %v7154_v22 = vpop.eup %5669 }
 0x36f   :  { %v7145_v2 = vpop.xlane.xlu0 %1261  ;;  %5677 = vpow2.f32 %v1451_v31  ;;  %1573 = vadd.xlane.f32.xlu0 %v7140_v18  ;;  %v1353_v25 = vsub.f32 %v6828_v10, %v7142_v63  ;;  %8877 = vst [vmem:[#allocation79_spill] sm:$0xff] %v7154_v22  ;;  %v7156_v7 = vpop.eup %5671 }
 0x370   :  { %8876 = vst [vmem:[#allocation78_spill] sm:$0xff] %v7145_v2  ;;  %v1364_v24 = vsub.f32 %v6825_v61, %v7145_v2  ;;  %5679 = vpow2.f32 %v1421_v11 }
 0x371   :  { %5681 = vpow2.f32 %v1425_v41  ;;  %v1431_v61 = vmul.f32 1.442695, %v1353_v25 }
 0x372   :  { %v1453_v37 = vmul.f32 1.442695, %v1364_v24  ;;  %v7158_v27 = vpop.xlane.xlu1 %1271  ;;  %1577 = vadd.xlane.f32.xlu1 %v7154_v22 }
 0x373   :  { %8878 = vst [vmem:[#allocation80_spill] sm:$0xff] %v7158_v27  ;;  %v7161_v5 = vpop.xlane.xlu0 %1241  ;;  %1551 = vadd.xlane.f32.xlu0 %v7156_v7  ;;  %v1369_v10 = vsub.f32 %v6840_v38, %v7158_v27 }
 0x374   :  { %5683 = vpow2.f32 %v1453_v37 }
 0x375   :  { %v7166_v31 = vpop.eup %5673  ;;  %5685 = vpow2.f32 %v1457_v48  ;;  %v1463_v0 = vmul.f32 1.442695, %v1369_v10  ;;  %v1354_v48 = vsub.f32 %v6837_v44, %v7161_v5 }
 0x376   :  { %v7168_v11 = vpop.eup %5675  ;;  %v7170_v24 = vpop.xlane.xlu1 %1235  ;;  %1547 = vadd.xlane.f32.xlu1 %v7166_v31  ;;  %5687 = vpow2.f32 %v1431_v61  ;;  %v8883_v61 = vld [vmem:[#allocation34_spill] sm:$0xff] }
 0x377   :  { %8879 = vst [vmem:[#allocation81_spill] sm:$0xff] %v7168_v11  ;;  %v7173_v29 = vpop.xlane.xlu0 %1273  ;;  %v1351_v41 = vsub.f32 %v6845_v51, %v7170_v24  ;;  %1583 = vadd.xlane.f32.xlu0 %v7168_v11  ;;  %vm1671_vm14 = vcmp.gt.f32.partialorder %v7170_v24, -1e+29 }
 0x378   :  { %8880 = vst [vmem:[#allocation82_spill] sm:$0xff] %v7173_v29 }
 0x379   :  { %v7178_v25 = vpop.eup %5677  ;;  %v1427_v38 = vmul.f32 1.442695, %v1351_v41 }
 0x37a   :  { %8881 = vst [vmem:[#allocation83_spill] sm:$0xff] %v7178_v25  ;;  %v7180_v37 = vpop.eup %5679  ;;  %v7182_v27 = vpop.xlane.xlu1 %1267  ;;  %1579 = vadd.xlane.f32.xlu1 %v7178_v25 }
 0x37b   :  { %8882 = vst [vmem:[#allocation84_spill] sm:$0xff] %v7182_v27  ;;  %v7185_v22 = vpop.xlane.xlu0 %1237  ;;  %5689 = vpow2.f32 %v1427_v38  ;;  %v1367_v51 = vsub.f32 %v6859_v56, %v7182_v27  ;;  %1549 = vadd.xlane.f32.xlu0 %v7180_v37  ;;  %v7194_v41 = vpop.eup %5681  ;;  %v1433_v38 = vmul.f32 1.442695, %v1354_v48  ;;  %v8887_v56 = vld [vmem:[#allocation33_spill] sm:$0xff] }
 0x37c   :  { %v1352_v10 = vsub.f32 %v8883_v61, %v7185_v22  ;;  %5691 = vpow2.f32 %v1463_v0  ;;  %v1370_v27 = vsub.f32 %v8887_v56, %v7173_v29  ;;  %v8888_v0 = vld [vmem:[#allocation35_spill] sm:$0xff] }
 0x37d   :  { %v1459_v11 = vmul.f32 1.442695, %v1367_v51  ;;  %v8889_v51 = vld [vmem:[#allocation36_spill] sm:$0xff] }
 0x37e   :  { %v1429_v2 = vmul.f32 1.442695, %v1352_v10  ;;  %v7196_v25 = vpop.eup %5683  ;;  %v7198_v35 = vpop.xlane.xlu1 %1279  ;;  %1553 = vadd.xlane.f32.xlu1 %v7194_v41 }
 0x37f   :  { %8884 = vst [vmem:[#allocation34_spill] sm:$0xff] %v7196_v25  ;;  %8885 = vst [vmem:[#allocation85_spill] sm:$0xff] %v7198_v35  ;;  %v7201_v44 = vpop.xlane.xlu0 %1269  ;;  %5693 = vpow2.f32 %v1459_v11  ;;  %1581 = vadd.xlane.f32.xlu0 %v7196_v25  ;;  %v1373_v10 = vsub.f32 %v8889_v51, %v7198_v35  ;;  %v7210_v18 = vpop.eup %5685  ;;  %v1465_v11 = vmul.f32 1.442695, %v1370_v27  ;;  %v8895_v35 = vld [vmem:[#allocation37_spill] sm:$0xff]  ;;  %v8896_v27 = vld [vmem:[#allocation39_spill] sm:$0xff] }
 0x380   :  { %8886 = vst [vmem:[#allocation86_spill] sm:$0xff] %v7201_v44  ;;  %v1368_v61 = vsub.f32 %v8888_v0, %v7201_v44  ;;  %5695 = vpow2.f32 %v1429_v2  ;;  %8890 = vst [vmem:[#allocation33_spill] sm:$0xff] %v7210_v18  ;;  %v7212_v23 = vpop.eup %5687 }
 0x381   :  { %5697 = vpow2.f32 %v1433_v38  ;;  %v1471_v56 = vmul.f32 1.442695, %v1373_v10 }
 0x382   :  { %v1461_v28 = vmul.f32 1.442695, %v1368_v61  ;;  %v7214_v62 = vpop.xlane.xlu1 %1311  ;;  %1585 = vadd.xlane.f32.xlu1 %v7210_v18 }
 0x383   :  { %v7217_v48 = vpop.xlane.xlu0 %1281  ;;  %1559 = vadd.xlane.f32.xlu0 %v7212_v23 }
 0x384   :  { %8891 = vst [vmem:[#allocation35_spill] sm:$0xff] %v7217_v48  ;;  %5699 = vpow2.f32 %v1461_v28  ;;  %v1374_v29 = vsub.f32 %v8895_v35, %v7217_v48  ;;  %v8897_v28 = vld [vmem:[#allocation40_spill] sm:$0xff] }
 0x385   :  { %v7220_v2 = vpop.eup %5689  ;;  %5701 = vpow2.f32 %v1465_v11 }
 0x386   :  { %v7222_v0 = vpop.eup %5691  ;;  %v7224_v51 = vpop.xlane.xlu1 %1275  ;;  %1555 = vadd.xlane.f32.xlu1 %v7220_v2  ;;  %5703 = vpow2.f32 %v1471_v56  ;;  %v1473_v11 = vmul.f32 1.442695, %v1374_v29 }
 0x387   :  { %8892 = vst [vmem:[#allocation36_spill] sm:$0xff] %v7222_v0  ;;  %8893 = vst [vmem:[#allocation87_spill] sm:$0xff] %v7224_v51  ;;  %v7227_v61 = vpop.xlane.xlu0 %1277  ;;  %v1371_v38 = vsub.f32 %v8896_v27, %v7224_v51  ;;  %1591 = vadd.xlane.f32.xlu0 %v7222_v0 }
 0x388   :  { %8894 = vst [vmem:[#allocation88_spill] sm:$0xff] %v7227_v61  ;;  %v1372_v10 = vsub.f32 %v8897_v28, %v7227_v61 }
 0x389   :  { %v7236_v18 = vpop.eup %5693  ;;  %v1467_v44 = vmul.f32 1.442695, %v1371_v38 }
 0x38a   :  { %8898 = vst [vmem:[#allocation37_spill] sm:$0xff] %v7236_v18  ;;  %v1469_v25 = vmul.f32 1.442695, %v1372_v10  ;;  %v7238_v52 = vpop.eup %5695  ;;  %v7240_v54 = vpop.xlane.xlu1 %1307  ;;  %1587 = vadd.xlane.f32.xlu1 %v7236_v18  ;;  %v8911_v18 = vld [vmem:[#allocation47_spill] sm:$0xff] }
 0x38b   :  { %v7243_v35 = vpop.xlane.xlu0 %1319  ;;  %5705 = vpow2.f32 %v1467_v44  ;;  %1557 = vadd.xlane.f32.xlu0 %v7238_v52  ;;  %v7246_v27 = vpop.eup %5697 }
 0x38c   :  { %8899 = vst [vmem:[#allocation39_spill] sm:$0xff] %v7243_v35  ;;  %5707 = vpow2.f32 %v1469_v25  ;;  %8900 = vst [vmem:[#allocation40_spill] sm:$0xff] %v7246_v27 }
 0x38d   :  { %5709 = vpow2.f32 %v1473_v11  ;;  %v8908_v11 = vld [vmem:[#allocation46_spill] sm:$0xff] }
 0x38e   :  { %v7248_v56 = vpop.eup %5699  ;;  %v7250_v28 = vpop.xlane.xlu1 %1313  ;;  %1561 = vadd.xlane.f32.xlu1 %v7246_v27 }
 0x38f   :  { %8901 = vst [vmem:[#allocation89_spill] sm:$0xff] %v7248_v56  ;;  %v7253_v38 = vpop.xlane.xlu0 %1289  ;;  %1589 = vadd.xlane.f32.xlu0 %v7248_v56  ;;  %v7256_v10 = vpop.eup %5701 }
 0x390   :  { %8902 = vst [vmem:[#allocation90_spill] sm:$0xff] %v7253_v38  ;;  %8903 = vst [vmem:[#allocation91_spill] sm:$0xff] %v7256_v10  ;;  %v7258_v29 = vpop.eup %5703 }
 0x391   :  { %8904 = vst [vmem:[#allocation92_spill] sm:$0xff] %v7258_v29 }
 0x392   :  { %v7260_v44 = vpop.xlane.xlu1 %1309  ;;  %1593 = vadd.xlane.f32.xlu1 %v7256_v10 }
 0x393   :  { %v7263_v25 = vpop.xlane.xlu0 %1285  ;;  %1599 = vadd.xlane.f32.xlu0 %v7258_v29 }
 0x394   :  { %8905 = vst [vmem:[#allocation93_spill] sm:$0xff] %v7263_v25  ;;  %v1376_v0 = vsub.f32 %v8908_v11, %v7263_v25  ;;  %v8913_v11 = vld [vmem:[#allocation44_spill] sm:$0xff] }
 0x395   :  { %v7266_v48 = vpop.eup %5705  ;;  %v1378_v25 = vsub.f32 %v8913_v11, %v7253_v38 }
 0x396   :  { %8906 = vst [vmem:[#allocation94_spill] sm:$0xff] %v7266_v48  ;;  %v7268_v35 = vpop.eup %5707  ;;  %v7272_v61 = vpop.xlane.xlu1 %1287  ;;  %1595 = vadd.xlane.f32.xlu1 %v7266_v48  ;;  %v1477_v43 = vmul.f32 1.442695, %v1376_v0 }
 0x397   :  { %8907 = vst [vmem:[#allocation95_spill] sm:$0xff] %v7268_v35  ;;  %8909 = vst [vmem:[#allocation46_spill] sm:$0xff] %v7272_v61  ;;  %v7275_v51 = vpop.xlane.xlu0 %1327  ;;  %v1377_v10 = vsub.f32 %v8911_v18, %v7272_v61  ;;  %1597 = vadd.xlane.f32.xlu0 %v7268_v35  ;;  %v7280_v56 = vpop.eup %5709  ;;  %v1481_v35 = vmul.f32 1.442695, %v1378_v25 }
 0x398   :  { %8910 = vst [vmem:[#allocation96_spill] sm:$0xff] %v7275_v51  ;;  %8912 = vst [vmem:[#allocation47_spill] sm:$0xff] %v7280_v56 }
 0x399   :  { %v1479_v29 = vmul.f32 1.442695, %v1377_v10 }
 0x39a   :  { %v7282_v27 = vpop.xlane.xlu1 %1283  ;;  %1601 = vadd.xlane.f32.xlu1 %v7280_v56 }
 0x39b   :  { %5711 = vpow2.f32 %v1479_v29  ;;  %v1375_v51 = vsub.f32 %v6920_v4, %v7282_v27  ;;  %v7289_v48 = vpop.xlane.xlu0 %1323 }
 0x39c   :  { %8914 = vst [vmem:[#allocation44_spill] sm:$0xff] %v7289_v48  ;;  %5713 = vpow2.f32 %v1477_v43 }
 0x39d   :  { %v1475_v18 = vmul.f32 1.442695, %v1375_v51 }
 0x39e   :  { %v7291_v61 = vpop.xlane.xlu1 %1315 }
 0x39f   :  { %5715 = vpow2.f32 %v1475_v18  ;;  %v7293_v0 = vpop.xlane.xlu0 %1297 }
 0x3a0   :  { %8915 = vst [vmem:[#allocation97_spill] sm:$0xff] %v7293_v0  ;;  %5717 = vpow2.f32 %v1481_v35 }
 0x3a2   :  { %v7295_v10 = vpop.xlane.xlu1 %1321 }
 0x3a3   :  { %v7302_v4 = vpop.xlane.xlu0 %1293 }
 0x3a4   :  { %8917 = vst [vmem:[#allocation99_spill] sm:$0xff] %v7302_v4  ;;  %v1380_v51 = vsub.f32 %v6939_v39, %v7302_v4  ;;  %v1382_v39 = vsub.f32 %v6931_v49, %v7293_v0 }
 0x3a5   :  { %v7297_v56 = vpop.eup %5711 }
 0x3a6   :  { %8916 = vst [vmem:[#allocation98_spill] sm:$0xff] %v7297_v56  ;;  %v7299_v11 = vpop.xlane.xlu1 %1317  ;;  %1607 = vadd.xlane.f32.xlu0 %v7297_v56  ;;  %v7304_v29 = vpop.eup %5713  ;;  %v1485_v48 = vmul.f32 1.442695, %v1380_v51 }
 0x3a7   :  { %8918 = vst [vmem:[#allocation100_spill] sm:$0xff] %v7304_v29 }
 0x3a9   :  { %v7306_v43 = vpop.eup %5715 }
 0x3aa   :  { %8919 = vst [vmem:[#allocation101_spill] sm:$0xff] %v7306_v43  ;;  %v7310_v25 = vpop.xlane.xlu1 %1295  ;;  %1603 = vadd.xlane.f32.xlu1 %v7306_v43  ;;  %1605 = vadd.xlane.f32.xlu0 %v7304_v29  ;;  %v7316_v18 = vpop.eup %5717  ;;  %v1489_v29 = vmul.f32 1.442695, %v1382_v39  ;;  %v8933_v39 = vld [vmem:[#allocation15_spill] sm:$0xff] }
 0x3ab   :  { %8920 = vst [vmem:[#allocation102_spill] sm:$0xff] %v7310_v25  ;;  %v1381_v35 = vsub.f32 %v6952_v55, %v7310_v25  ;;  %8921 = vst [vmem:[#allocation103_spill] sm:$0xff] %v7316_v18  ;;  %v7332_v25 = vpop.xlane.xlu0 %1303 }
 0x3ac   :  { %8926 = vst [vmem:[#allocation108_spill] sm:$0xff] %v7332_v25 }
 0x3ad   :  { %v1487_v56 = vmul.f32 1.442695, %v1381_v35 }
 0x3ae   :  { %v7318_v38 = vpop.xlane.xlu1 %1291  ;;  %1609 = vadd.xlane.f32.xlu1 %v7316_v18 }
 0x3af   :  { %8922 = vst [vmem:[#allocation104_spill] sm:$0xff] %v7318_v38  ;;  %5719 = vpow2.f32 %v1487_v56  ;;  %v1379_v4 = vsub.f32 %v6960_v58, %v7318_v38  ;;  %v7339_v58 = vpop.xlane.xlu0 %1335 }
 0x3b0   :  { %5721 = vpow2.f32 %v1485_v48  ;;  %8928 = vst [vmem:[#allocation110_spill] sm:$0xff] %v7339_v58 }
 0x3b1   :  { %v1483_v43 = vmul.f32 1.442695, %v1379_v4 }
 0x3b2   :  { %v7343_v56 = vpop.xlane.xlu1 %1329 }
 0x3b3   :  { %5723 = vpow2.f32 %v1483_v43  ;;  %v7341_v48 = vpop.xlane.xlu0 %1299  ;;  %8929 = vst [vmem:[#allocation111_spill] sm:$0xff] %v7343_v56  ;;  %v8932_v43 = vld [vmem:[#allocation24_spill] sm:$0xff] }
 0x3b4   :  { %5725 = vpow2.f32 %v1489_v29 }
 0x3b6   :  { %v7347_v29 = vpop.xlane.xlu1 %1325 }
 0x3b7   :  { %v7345_v4 = vpop.xlane.xlu0 %1331  ;;  %8931 = vst [vmem:[#allocation113_spill] sm:$0xff] %v7347_v29 }
 0x3b8   :  { %8930 = vst [vmem:[#allocation112_spill] sm:$0xff] %v7345_v4 }
 0x3b9   :  { %v7325_v55 = vpop.eup %5719 }
 0x3ba   :  { %8923 = vst [vmem:[#allocation105_spill] sm:$0xff] %v7325_v55  ;;  %1615 = vadd.xlane.f32.xlu0 %v7325_v55  ;;  %v7328_v51 = vpop.eup %5721  ;;  %v7355_v0 = vpop.xlane.xlu1 %1337 }
 0x3bb   :  { %8924 = vst [vmem:[#allocation106_spill] sm:$0xff] %v7328_v51  ;;  %v7353_v55 = vpop.xlane.xlu0 %1305  ;;  %8935 = vst [vmem:[#allocation115_spill] sm:$0xff] %v7355_v0 }
 0x3bc   :  { %8934 = vst [vmem:[#allocation114_spill] sm:$0xff] %v7353_v55 }
 0x3bd   :  { %v7330_v35 = vpop.eup %5723 }
 0x3be   :  { %8925 = vst [vmem:[#allocation107_spill] sm:$0xff] %v7330_v35  ;;  %1611 = vadd.xlane.f32.xlu1 %v7330_v35  ;;  %1613 = vadd.xlane.f32.xlu0 %v7328_v51  ;;  %v7336_v49 = vpop.eup %5725  ;;  %v7359_v58 = vpop.xlane.xlu1 %1333 }
 0x3bf   :  { %8927 = vst [vmem:[#allocation109_spill] sm:$0xff] %v7336_v49  ;;  %8937 = vst [vmem:[#allocation117_spill] sm:$0xff] %v7359_v58 }
 0x3c2   :  { %1617 = vadd.xlane.f32.xlu1 %v7336_v49  ;;  %v7357_v49 = vpop.xlane.xlu0 %1301 }
 0x3c3   :  { %8936 = vst [vmem:[#allocation116_spill] sm:$0xff] %v7357_v49  ;;  %v1384_v56 = vsub.f32 %v6986_v53, %v7357_v49  ;;  %v1386_v53 = vsub.f32 %v6979_v19, %v7353_v55 }
 0x3c5   :  { %v1493_v35 = vmul.f32 1.442695, %v1384_v56  ;;  %v1497_v56 = vmul.f32 1.442695, %v1386_v53 }
 0x3c7   :  { %5727 = vpow2.f32 %v1493_v35 }
 0x3d3   :  { %2751 = vrot.lane.b32.xlu1 %v8932_v43, %s5986_s14  ;;  %v1385_v43 = vsub.f32 %v6947_v17, %v7332_v25 }
 0x3d4   :  { %2749 = vrot.lane.b32.xlu0 %v8933_v39, %s5986_s14  ;;  %v1383_v39 = vsub.f32 %v6963_v21, %v7341_v48 }
 0x3d5   :  { %v1495_v38 = vmul.f32 1.442695, %v1385_v43  ;;  %v7377_v43 = vpop.eup %5727 }
 0x3d6   :  { %v1491_v29 = vmul.f32 1.442695, %v1383_v39  ;;  %8938 = vst [vmem:[#allocation118_spill] sm:$0xff] %v7377_v43 }
 0x3db   :  { %v1536_v4 = vpop.xlane.xlu1 %1535 }
 0x3df   :  { %v7363_v51 = vpop.xlane.xlu0 %1567 }
 0x3e3   :  { %v7369_v18 = vpop.xlane.xlu1 %1563  ;;  %v1532_v0 = vpop.xlane.xlu0 %1531 }
 0x3e4   :  { %5729 = vrcp.f32 %v1532_v0 }
 0x3e7   :  { %v1538_v58 = vpop.xlane.xlu0 %1537  ;;  %v7373_v49 = vpop.xlane.xlu1 %1569 }
 0x3e8   :  { %5731 = vrcp.f32 %v1538_v58 }
 0x3e9   :  { %5733 = vrcp.f32 %v1536_v4 }
 0x3ea   :  { %5735 = vpow2.f32 %v1495_v38 }
 0x3eb   :  { %5737 = vpow2.f32 %v1491_v29  ;;  %v1534_v17 = vpop.xlane.xlu0 %1533  ;;  %v1544_v21 = vpop.xlane.xlu1 %1543 }
 0x3ec   :  { %5739 = vrcp.f32 %v1534_v17 }
 0x3ed   :  { %5741 = vpow2.f32 %v1497_v56 }
 0x3ee   :  { %v5730_v0 = vpop.eup %5729 }
 0x3ef   :  { %v7375_v25 = vpop.xlane.xlu0 %1565  ;;  %v1787_v53 = vsel %vm1659_vm3, %v5730_v0, 0.0  ;;  %vm1672_vm3 = vcmp.gt.f32.partialorder %v7185_v22, -1e+29 }
 0x3f2   :  { %v5732_v35 = vpop.eup %5731 }
 0x3f3   :  { %v5734_v39 = vpop.eup %5733  ;;  %v1540_v19 = vpop.xlane.xlu1 %1539  ;;  %1621 = vadd.xlane.f32.xlu0 %v7377_v43  ;;  %v1790_v4 = vsel %vm1662_vm2, %v5732_v35, 0.0  ;;  %v1851_v43 = vmul.f32 %v7057_v40, %v1787_v53  ;;  %v8940_v53 = vld [vmem:[#allocation27_spill] sm:$0xff]  ;;  %vm1676_vm2 = vcmp.gt.f32.partialorder %v7042_v34, -1e+29 }
 0x3f4   :  { %v7381_v58 = vpop.xlane.xlu0 %1575  ;;  %v7383_v38 = vpop.eup %5735  ;;  %5743 = vrcp.f32 %v1540_v19  ;;  %v1789_v26 = vsel %vm1661_vm4, %v5734_v39, 0.0  ;;  %v1854_v56 = vmul.f32 %v7069_v33, %v1790_v4  ;;  %vm1673_vm4 = vcmp.gt.f32.partialorder %v7142_v63, -1e+29 }
 0x3f5   :  { %v7386_v29 = vpop.eup %5737  ;;  %5745 = vrcp.f32 %v1544_v21  ;;  %v1853_v0 = vmul.f32 %v7037_v45, %v1789_v26  ;;  %v8939_v21 = vld [vmem:[#allocation29_spill] sm:$0xff] }
 0x3f6   :  { %v5740_v17 = vpop.eup %5739 }
 0x3f7   :  { %v7391_v55 = vpop.xlane.xlu1 %1571  ;;  %1619 = vadd.xlane.f32.xlu1 %v7386_v29  ;;  %1623 = vadd.xlane.f32.xlu0 %v7383_v38  ;;  %v1788_v3 = vsel %vm1660_vm5, %v5740_v17, 0.0  ;;  %v7398_v60 = vpop.eup %5741  ;;  %v1916_v19 = vpack.c.bf16 %v1854_v56, %v1853_v0  ;;  %v8941_v56 = vld [vmem:[#allocation30_spill] sm:$0xff]  ;;  %vm1674_vm5 = vcmp.gt.f32.partialorder %v7161_v5, -1e+29 }
 0x3f8   :  { %v1542_v35 = vpop.xlane.xlu0 %1541  ;;  %v1852_v42 = vmul.f32 %v7085_v30, %v1788_v3 }
 0x3f9   :  { %5747 = vrcp.f32 %v1542_v35 }
 0x3fa   :  { %v1915_v39 = vpack.c.bf16 %v1852_v42, %v1851_v43 }
 0x3fb   :  { %v1546_v33 = vpop.xlane.xlu1 %1545  ;;  %1625 = vadd.xlane.f32.xlu1 %v7398_v60 }
 0x3fc   :  { %5749 = vrcp.f32 %v1546_v33  ;;  %v7401_v4 = vpop.xlane.xlu0 %1573  ;;  %5308 = vmatprep.mubr.bf16.mxu0 %v1915_v39 }
 0x3fd   :  { %5309 = vmatmul.mubr.bf16.vlgmr.msra.gmra.mrb[48].mxu0 %v1916_v19 }
 0x3fe   :  { %5351 = vmatpush3.bf16.msra.mxu0 %v8939_v21  ;;  %v5744_v40 = vpop.eup %5743 }
 0x3ff   :  { %5352 = vmatprep.subr.bf16.mxu0 %v8940_v53  ;;  %v7405_v30 = vpop.xlane.xlu1 %1577  ;;  %v5746_v43 = vpop.eup %5745  ;;  %v1791_v17 = vsel %vm1663_vm6, %v5744_v40, 0.0 }
 0x400   :  { %v1552_v45 = vpop.xlane.xlu0 %1551  ;;  %v1855_v0 = vmul.f32 %v7112_v47, %v1791_v17  ;;  %v1793_v39 = vsel %vm1665_vm8, %v5746_v43, 0.0 }
 0x402   :  { %5353 = vmatpush3.bf16.msra.mxu0 %v8940_v53  ;;  %v1857_v53 = vmul.f32 %v7087_v57, %v1793_v39  ;;  %v8945_v57 = vld [vmem:[#allocation23_spill] sm:$0xff]  ;;  %v8946_v39 = vld [vmem:[#allocation45_spill] sm:$0xff] }
 0x403   :  { %v5748_v26 = vpop.eup %5747  ;;  %5354 = vmatprep.subr.bf16.mxu0 %v8941_v56  ;;  %v1548_v3 = vpop.xlane.xlu1 %1547 }
 0x404   :  { %v7412_v35 = vpop.xlane.xlu0 %1583  ;;  %v1792_v42 = vsel %vm1664_vm7, %v5748_v26, 0.0  ;;  %5751 = vrcp.f32 %v1548_v3  ;;  %v8944_v26 = vld [vmem:[#allocation6_spill] sm:$0xff] }
 0x405   :  { %v1856_v46 = vmul.f32 %v7124_v9, %v1792_v42  ;;  %5753 = vrcp.f32 %v1552_v45 }
 0x406   :  { %v5750_v33 = vpop.eup %5749  ;;  %5355 = vmatpush3.bf16.msra.mxu0 %v8941_v56 }
 0x407   :  { %5356 = vmatprep.subr.bf16.mxu0 %v8942_v15  ;;  %v7419_v19 = vpop.xlane.xlu1 %1579  ;;  %v1917_v21 = vpack.c.bf16 %v1856_v46, %v1855_v0  ;;  %v1794_v6 = vsel %vm1666_vm9, %v5750_v33, 0.0  ;;  %v1388_v33 = vsub.f32 %v8946_v39, %v7260_v44 }
 0x408   :  { %v1550_v40 = vpop.xlane.xlu0 %1549  ;;  %v1858_v47 = vmul.f32 %v7138_v16, %v1794_v6 }
 0x409   :  { %5755 = vrcp.f32 %v1550_v40  ;;  %5312 = vmatprep.mubr.bf16.mxu0 %v1917_v21 }
 0x40a   :  { %5357 = vmatpush3.bf16.msra.mxu0 %v8942_v15  ;;  %v1918_v9 = vpack.c.bf16 %v1858_v47, %v1857_v53 }
 0x40b   :  { %5358 = vmatprep.subr.bf16.mxu0 %v8943_v12  ;;  %v1554_v43 = vpop.xlane.xlu1 %1553 }
 0x40c   :  { %5757 = vrcp.f32 %v1554_v43  ;;  %v7425_v17 = vpop.xlane.xlu0 %1581  ;;  %3133 = vrot.lane.b32.xlu1 %v8944_v26, %s5987_s2  ;;  %5313 = vmatmul.mubr.bf16.gmra.mrb[52].mxu0 %v1918_v9  ;;  %v1501_v9 = vmul.f32 1.442695, %v1388_v33  ;;  %v8949_v43 = vld [vmem:[#allocation41_spill] sm:$0xff] }
 0x40d   :  { %2753 = vrot.lane.b32.xlu0 %v8945_v57, %s5986_s14  ;;  %v1387_v26 = vsub.f32 %v8949_v43, %v7240_v54  ;;  %v8957_v43 = vld [vmem:[#allocation69_spill] sm:$0xff] }
 0x40e   :  { %5359 = vmatpush3.bf16.msra.mxu0 %v8943_v12  ;;  %v5752_v16 = vpop.eup %5751 }
 0x40f   :  { %5360 = vmatprep.subr.bf16.mxu0 %v6981_v32  ;;  %v7433_v45 = vpop.xlane.xlu1 %1585  ;;  %v5754_v3 = vpop.eup %5753  ;;  %v1795_v42 = vsel %vm1667_vm10, %v5752_v16, 0.0 }
 0x410   :  { %v1560_v56 = vpop.xlane.xlu0 %1559  ;;  %v1859_v14 = vmul.f32 %v7166_v31, %v1795_v42  ;;  %v1797_v6 = vsel %vm1669_vm12, %v5754_v3, 0.0  ;;  %v1499_v3 = vmul.f32 1.442695, %v1387_v26 }
 0x412   :  { %5361 = vmatpush3.bf16.msra.mxu0 %v6981_v32 }
 0x413   :  { %v5756_v0 = vpop.eup %5755  ;;  %5362 = vmatprep.subr.bf16.mxu0 %v6999_v8  ;;  %v1556_v46 = vpop.xlane.xlu1 %1555 }
 0x414   :  { %v7442_v15 = vpop.xlane.xlu0 %1591  ;;  %v1796_v21 = vsel %vm1668_vm11, %v5756_v0, 0.0  ;;  %5759 = vrcp.f32 %v1556_v46 }
 0x415   :  { %v1860_v32 = vmul.f32 %v7180_v37, %v1796_v21  ;;  %5761 = vrcp.f32 %v7369_v18  ;;  %v1861_v37 = vmul.f32 %v7156_v7, %v1797_v6  ;;  %v8948_v18 = vld [vmem:[#allocation32_spill] sm:$0xff]  ;;  %v8950_v7 = vld [vmem:[#allocation43_spill] sm:$0xff] }
 0x416   :  { %v5758_v40 = vpop.eup %5757  ;;  %5363 = vmatpush3.bf16.msra.mxu0 %v6999_v8  ;;  %5763 = vrcp.f32 %v7375_v25  ;;  %v1389_v25 = vsub.f32 %v8947_v59, %v7214_v62  ;;  %v8951_v6 = vld [vmem:[#allocation40_spill] sm:$0xff] }
 0x417   :  { %5364 = vmatprep.subr.bf16.mxu0 %v6993_v20  ;;  %v7451_v1 = vpop.xlane.xlu1 %1587  ;;  %v1919_v36 = vpack.c.bf16 %v1860_v32, %v1859_v14  ;;  %v1798_v53 = vsel %vm1670_vm13, %v5758_v40, 0.0  ;;  %5765 = vrcp.f32 %v1560_v56 }
 0x418   :  { %v1558_v31 = vpop.xlane.xlu0 %1557  ;;  %v1862_v47 = vmul.f32 %v7194_v41, %v1798_v53  ;;  %v1390_v41 = vsub.f32 %v8950_v7, %v7250_v28 }
 0x419   :  { %5767 = vrcp.f32 %v1558_v31  ;;  %5316 = vmatprep.mubr.bf16.mxu0 %v1919_v36 }
 0x41a   :  { %5365 = vmatpush3.bf16.msra.mxu0 %v6993_v20  ;;  %v1920_v8 = vpack.c.bf16 %v1862_v47, %v1861_v37  ;;  %v1503_v20 = vmul.f32 1.442695, %v1389_v25  ;;  %v1505_v0 = vmul.f32 1.442695, %v1390_v41 }
 0x41b   :  { %5408 = vmatprep.subr.bf16.mxu0 %v8948_v18  ;;  %v1562_v12 = vpop.xlane.xlu1 %1561 }
 0x41c   :  { %5769 = vrcp.f32 %v1562_v12  ;;  %5317 = vmatmul.mubr.bf16.gmra.mrb[56].mxu0 %v1920_v8 }
 0x41d   :  { %5771 = vpow2.f32 %v1501_v9  ;;  %v8955_v9 = vld [vmem:[#allocation63_spill] sm:$0xff] }
 0x41e   :  { %5773 = vrcp.f32 %v7373_v49  ;;  %v5760_v16 = vpop.eup %5759  ;;  %vm1677_vm8 = vcmp.gt.f32.partialorder %v8955_v9, -1e+29 }
 0x41f   :  { %5775 = vrcp.f32 %v7401_v4  ;;  %v5762_v56 = vpop.eup %5761  ;;  %v1799_v39 = vsel %vm1671_vm14, %v5760_v16, 0.0  ;;  %v1594_v25 = vpop.xlane.xlu1 %1593 }
 0x420   :  { %5777 = vrcp.f32 %v7363_v51  ;;  %v5764_v42 = vpop.eup %5763  ;;  %v1863_v24 = vmul.f32 %v7220_v2, %v1799_v39  ;;  %v1803_v50 = vsel %vm1675_vm15, %v5762_v56, 0.0  ;;  %v1590_v2 = vpop.xlane.xlu0 %1589  ;;  %v8960_v39 = vld [vmem:[#allocation75_spill] sm:$0xff] }
 0x421   :  { %5779 = vrcp.f32 %v7391_v55  ;;  %v5766_v46 = vpop.eup %5765  ;;  %v1804_v49 = vsel %vm1676_vm2, %v5764_v42, 0.0  ;;  %v8959_v42 = vld [vmem:[#allocation65_spill] sm:$0xff] }
 0x422   :  { %5781 = vpow2.f32 %v1503_v20  ;;  %v1801_v4 = vsel %vm1673_vm4, %v5766_v46, 0.0  ;;  %v1868_v14 = vmul.f32 %v7101_v13, %v1804_v49  ;;  %v8954_v13 = vld [vmem:[#allocation71_spill] sm:$0xff]  ;;  %v8958_v20 = vld [vmem:[#allocation77_spill] sm:$0xff] }
 0x423   :  { %v5768_v33 = vpop.eup %5767  ;;  %5783 = vpow2.f32 %v1499_v3  ;;  %vm1680_vm7 = vcmp.gt.f32.partialorder %v8954_v13, -1e+29  ;;  %v8970_v13 = vld [vmem:[#allocation74_spill] sm:$0xff] }
 0x424   :  { %v1800_v51 = vsel %vm1672_vm3, %v5768_v33, 0.0  ;;  %5785 = vpow2.f32 %v1505_v0  ;;  %v7496_v7 = vpop.xlane.xlu0 %1599  ;;  %vm1686_vm14 = vcmp.gt.f32.partialorder %v8970_v13, -1e+29  ;;  %v8988_v13 = vld [vmem:[#allocation94_spill] sm:$0xff] }
 0x425   :  { %v1864_v55 = vmul.f32 %v7238_v52, %v1800_v51  ;;  %5787 = vrcp.f32 %v7405_v30  ;;  %v1865_v52 = vmul.f32 %v7212_v23, %v1801_v4  ;;  %v8952_v30 = vld [vmem:[#allocation67_spill] sm:$0xff]  ;;  %v8961_v51 = vld [vmem:[#allocation68_spill] sm:$0xff] }
 0x426   :  { %v5770_v21 = vpop.eup %5769  ;;  %5789 = vrcp.f32 %v7425_v17  ;;  %v1867_v36 = vmul.f32 %v8952_v30, %v1803_v50  ;;  %v8953_v17 = vld [vmem:[#allocation64_spill] sm:$0xff]  ;;  %vm1682_vm10 = vcmp.gt.f32.partialorder %v8961_v51, -1e+29  ;;  %v8963_v50 = vld [vmem:[#allocation66_spill] sm:$0xff]  ;;  %v8978_v51 = vld [vmem:[#allocation89_spill] sm:$0xff] }
 0x427   :  { %v7476_v34 = vpop.eup %5771  ;;  %v1921_v63 = vpack.c.bf16 %v1864_v55, %v1863_v24  ;;  %v1802_v22 = vsel %vm1674_vm5, %v5770_v21, 0.0  ;;  %5791 = vrcp.f32 %v7381_v58  ;;  %vm1678_vm6 = vcmp.gt.f32.partialorder %v8953_v17, -1e+29  ;;  %v8962_v24 = vld [vmem:[#allocation78_spill] sm:$0xff]  ;;  %v1596_v55 = vpop.xlane.xlu1 %1595 }
 0x428   :  { %v5774_v32 = vpop.eup %5773  ;;  %v1866_v40 = vmul.f32 %v8951_v6, %v1802_v22  ;;  %5793 = vrcp.f32 %v7419_v19  ;;  %v1923_v58 = vpack.c.bf16 %v1868_v14, %v1867_v36  ;;  %v8956_v19 = vld [vmem:[#allocation70_spill] sm:$0xff]  ;;  %vm1684_vm11 = vcmp.gt.f32.partialorder %v8962_v24, -1e+29  ;;  %v8964_v14 = vld [vmem:[#allocation76_spill] sm:$0xff]  ;;  %v8968_v36 = vld [vmem:[#allocation73_spill] sm:$0xff] }
 0x429   :  { %v5776_v5 = vpop.eup %5775  ;;  %5320 = vmatprep.mubr.bf16.mxu0 %v1921_v63  ;;  %v1806_v47 = vsel %vm1678_vm6, %v5774_v32, 0.0  ;;  %vm1679_vm9 = vcmp.gt.f32.partialorder %v8956_v19, -1e+29  ;;  %5795 = vrcp.f32 %v7433_v45  ;;  %vm1681_vm12 = vcmp.gt.f32.partialorder %v8963_v50, -1e+29  ;;  %v1598_v63 = vpop.xlane.xlu0 %1597  ;;  %v8965_v32 = vld [vmem:[#allocation59_spill] sm:$0xff] }
 0x42a   :  { %v5778_v53 = vpop.eup %5777  ;;  %v1922_v31 = vpack.c.bf16 %v1866_v40, %v1865_v52  ;;  %v1808_v23 = vsel %vm1680_vm7, %v5776_v5, 0.0  ;;  %v1870_v26 = vmul.f32 %v8957_v43, %v1806_v47  ;;  %5797 = vrcp.f32 %v7412_v35  ;;  %v8967_v40 = vld [vmem:[#allocation34_spill] sm:$0xff]  ;;  %v8971_v47 = vld [vmem:[#allocation60_spill] sm:$0xff] }
 0x42b   :  { %v5780_v37 = vpop.eup %5779  ;;  %v1805_v59 = vsel %vm1677_vm8, %v5778_v53, 0.0  ;;  %v1872_v56 = vmul.f32 %v8958_v20, %v1808_v23  ;;  %5799 = vrcp.f32 %v1590_v2  ;;  %vm1683_vm13 = vcmp.gt.f32.partialorder %v8964_v14, -1e+29  ;;  %v8966_v2 = vld [vmem:[#allocation79_spill] sm:$0xff]  ;;  %v8974_v20 = vld [vmem:[#allocation84_spill] sm:$0xff] }
 0x42c   :  { %1629 = vadd.xlane.f32.xlu0 %v7476_v34  ;;  %5321 = vmatmul.mubr.bf16.gmra.mrb[60].mxu0 %v1922_v31  ;;  %v7489_v8 = vpop.eup %5781  ;;  %v1807_v41 = vsel %vm1679_vm9, %v5780_v37, 0.0  ;;  %v1869_v0 = vmul.f32 %v8959_v42, %v1805_v59  ;;  %5801 = vrcp.f32 %v7451_v1  ;;  %v8972_v59 = vld [vmem:[#allocation72_spill] sm:$0xff]  ;;  %vm1687_vm3 = vcmp.gt.f32.partialorder %v8974_v20, -1e+29  ;;  %v8982_v14 = vld [vmem:[#allocation87_spill] sm:$0xff] }
 0x42d   :  { %5366 = vmatprep.mubr.bf16.mxu0 %v1923_v58  ;;  %v7492_v12 = vpop.eup %5783  ;;  %v1871_v45 = vmul.f32 %v8960_v39, %v1807_v41  ;;  %5803 = vrcp.f32 %v1594_v25  ;;  %vm1685_vm15 = vcmp.gt.f32.partialorder %v8972_v59, -1e+29  ;;  %v8973_v25 = vld [vmem:[#allocation86_spill] sm:$0xff]  ;;  %vm1691_vm5 = vcmp.gt.f32.partialorder %v8982_v14, -1e+29 }
 0x42e   :  { %v7498_v16 = vpop.eup %5785  ;;  %v1924_v49 = vpack.c.bf16 %v1870_v26, %v1869_v0  ;;  %5805 = vrcp.f32 %v1596_v55  ;;  %vm1688_vm2 = vcmp.gt.f32.partialorder %v8973_v25, -1e+29 }
 0x42f   :  { %v5788_v3 = vpop.eup %5787  ;;  %v1925_v4 = vpack.c.bf16 %v1872_v56, %v1871_v45  ;;  %5807 = vrcp.f32 %v1598_v63  ;;  %v8975_v56 = vld [vmem:[#allocation61_spill] sm:$0xff] }
 0x430   :  { %1627 = vadd.xlane.f32.xlu1 %v7492_v12  ;;  %1631 = vadd.xlane.f32.xlu0 %v7489_v8  ;;  %v5790_v46 = vpop.eup %5789  ;;  %v1810_v21 = vsel %vm1682_vm10, %v5788_v3, 0.0  ;;  %5809 = vrcp.f32 %v7442_v15  ;;  %v7524_v15 = vpop.xlane.xlu1 %1601  ;;  %v8976_v3 = vld [vmem:[#allocation33_spill] sm:$0xff]  ;;  %vm1695_vm10 = vcmp.gt.f32.partialorder %v7282_v27, -1e+29 }
 0x431   :  { %v5792_v33 = vpop.eup %5791  ;;  %v1812_v22 = vsel %vm1684_vm11, %v5790_v46, 0.0  ;;  %v1874_v52 = vmul.f32 %v8966_v2, %v1810_v21  ;;  %v8977_v45 = vld [vmem:[#allocation81_spill] sm:$0xff]  ;;  %v8980_v21 = vld [vmem:[#allocation62_spill] sm:$0xff] }
 0x432   :  { %v5794_v35 = vpop.eup %5793  ;;  %v1809_v1 = vsel %vm1681_vm12, %v5792_v33, 0.0  ;;  %v1876_v5 = vmul.f32 %v8967_v40, %v1812_v22  ;;  %v8981_v63 = vld [vmem:[#allocation37_spill] sm:$0xff] }
 0x433   :  { %v1811_v6 = vsel %vm1683_vm13, %v5794_v35, 0.0  ;;  %v5796_v30 = vpop.eup %5795  ;;  %v1873_v53 = vmul.f32 %v8968_v36, %v1809_v1  ;;  %v7526_v43 = vpop.xlane.xlu0 %1607  ;;  %v8983_v1 = vld [vmem:[#allocation88_spill] sm:$0xff] }
 0x434   :  { %1633 = vadd.xlane.f32.xlu1 %v7498_v16  ;;  %5367 = vmatmul.mubr.bf16.vlgmr.msra.gmra.mrb[64].mxu0 %v1924_v49  ;;  %v5798_v17 = vpop.eup %5797  ;;  %v1814_v23 = vsel %vm1686_vm14, %v5796_v30, 0.0  ;;  %vm1692_vm6 = vcmp.gt.f32.partialorder %v8983_v1, -1e+29  ;;  %v8985_v30 = vld [vmem:[#allocation10_spill] sm:$0xff] }
 0x435   :  { %5409 = vmatpush3.bf16.msra.mxu0 %v8948_v18  ;;  %5370 = vmatprep.mubr.bf16.mxu0 %v1925_v4  ;;  %v8969_v18 = vld [vmem:[#allocation83_spill] sm:$0xff]  ;;  %v5800_v37 = vpop.eup %5799  ;;  %v1926_v58 = vpack.c.bf16 %v1874_v52, %v1873_v53  ;;  %v1813_v26 = vsel %vm1685_vm15, %v5798_v17, 0.0  ;;  %v1878_v42 = vmul.f32 %v8976_v3, %v1814_v23  ;;  %v8979_v4 = vld [vmem:[#allocation82_spill] sm:$0xff]  ;;  %v8984_v52 = vld [vmem:[#allocation80_spill] sm:$0xff] }
 0x436   :  { %5410 = vmatprep.subr.bf16.mxu0 %v8965_v32  ;;  %v1875_v31 = vmul.f32 %v8969_v18, %v1811_v6  ;;  %v5802_v19 = vpop.eup %5801  ;;  %v1816_v41 = vsel %vm1688_vm2, %v5800_v37, 0.0  ;;  %v1877_v33 = vmul.f32 %v8977_v45, %v1813_v26  ;;  %vm1690_vm4 = vcmp.gt.f32.partialorder %v8979_v4, -1e+29  ;;  %v8986_v53 = vld [vmem:[#allocation5_spill] sm:$0xff]  ;;  %v8987_v17 = vld [vmem:[#allocation91_spill] sm:$0xff]  ;;  %v8990_v23 = vld [vmem:[#allocation36_spill] sm:$0xff] }
 0x437   :  { %v5804_v0 = vpop.eup %5803  ;;  %v1815_v46 = vsel %vm1687_vm3, %v5802_v19, 0.0  ;;  %v1880_v49 = vmul.f32 %v8978_v51, %v1816_v41  ;;  %v7534_v24 = vpop.xlane.xlu1 %1603  ;;  %vm1689_vm7 = vcmp.gt.f32.partialorder %v8984_v52, -1e+29  ;;  %v8991_v3 = vld [vmem:[#allocation52_spill] sm:$0xff]  ;;  %v8993_v45 = vld [vmem:[#allocation42_spill] sm:$0xff] }
 0x438   :  { %v1927_v9 = vpack.c.bf16 %v1876_v5, %v1875_v31  ;;  %v5806_v39 = vpop.eup %5805  ;;  %v1928_v50 = vpack.c.bf16 %v1878_v42, %v1877_v33  ;;  %v1879_v22 = vmul.f32 %v8981_v63, %v1815_v46  ;;  %v1818_v2 = vsel %vm1690_vm4, %v5804_v0, 0.0  ;;  %v1947_v0 = vld [vmem:[%s8665_s4] sm:$0xff]  ;;  %v8996_v52 = vld [vmem:[#allocation16_spill] sm:$0xff] }
 0x439   :  { %5411 = vmatpush3.bf16.msra.mxu0 %v8965_v32  ;;  %v5808_v35 = vpop.eup %5807  ;;  %v1606_v32 = vpop.xlane.xlu0 %1605  ;;  %v1819_v40 = vsel %vm1691_vm5, %v5806_v39, 0.0  ;;  %v1882_v18 = vmul.f32 %v8987_v17, %v1818_v2  ;;  %v1392_v42 = vsub.f32 %v8991_v3, %v7299_v11  ;;  %5324 = vmatprep.subr.mxu1 %v1947_v0  ;;  %v8992_v39 = vld [vmem:[#allocation39_spill] sm:$0xff]  ;;  %v8994_v51 = vld [vmem:[#allocation50_spill] sm:$0xff]  ;;  %vm1703_vm3 = vcmp.gt.f32.partialorder %v7341_v48, -1e+29  ;;  %v9025_v48 = vld [vmem:[#allocation105_spill] sm:$0xff] }
 0x43a   :  { %5412 = vmatprep.subr.bf16.mxu0 %v8971_v47  ;;  %v5810_v55 = vpop.eup %5809  ;;  %v1929_v6 = vpack.c.bf16 %v1880_v49, %v1879_v22  ;;  %v1820_v5 = vsel %vm1692_vm6, %v5808_v35, 0.0  ;;  %5325 = vmatpush3.msra.mxu1 %v1947_v0  ;;  %v1393_v33 = vsub.f32 %v8993_v45, %v8992_v39  ;;  %v1391_v49 = vsub.f32 %v8994_v51, %v7291_v61  ;;  %v9006_v45 = vld [vmem:[#allocation113_spill] sm:$0xff] }
 0x43b   :  { %v1817_v36 = vsel %vm1689_vm7, %v5810_v55, 0.0  ;;  %v1610_v31 = vpop.xlane.xlu1 %1609  ;;  %v1509_v35 = vmul.f32 1.442695, %v1392_v42  ;;  %v7597_v42 = vld [vmem:[%s8665_s4 + $0x8] sm:$0xff] }
 0x43c   :  { %5371 = vmatmul.mubr.bf16.gmra.mrb[68].mxu0 %v1926_v58  ;;  %v8989_v58 = vld [vmem:[#allocation95_spill] sm:$0xff]  ;;  %v1881_v19 = vmul.f32 %v8990_v23, %v1817_v36  ;;  %v1511_v55 = vmul.f32 1.442695, %v1393_v33  ;;  %v1507_v4 = vmul.f32 1.442695, %v1391_v49  ;;  %5382 = vmatprep.subr.mxu1 %v7597_v42  ;;  %v9007_v33 = vld [vmem:[#allocation56_spill] sm:$0xff] }
 0x43d   :  { %5413 = vmatpush3.bf16.msra.mxu0 %v8971_v47  ;;  %5374 = vmatprep.mubr.bf16.mxu0 %v1927_v9  ;;  %v1883_v47 = vmul.f32 %v8988_v13, %v1819_v40  ;;  %v1884_v9 = vmul.f32 %v8989_v58, %v1820_v5  ;;  %5811 = vpow2.f32 %v1509_v35  ;;  %v9001_v58 = vld [vmem:[#allocation47_spill] sm:$0xff]  ;;  %v1396_v51 = vsub.f32 %v9007_v33, %v9006_v45  ;;  %v9022_v33 = vld [vmem:[#allocation102_spill] sm:$0xff] }
 0x43e   :  { %5414 = vmatprep.subr.bf16.mxu0 %v8975_v56  ;;  %v1930_v59 = vpack.c.bf16 %v1882_v18, %v1881_v19  ;;  %5813 = vpow2.f32 %v1511_v55  ;;  %v9000_v18 = vld [vmem:[#allocation85_spill] sm:$0xff]  ;;  %v9008_v35 = vld [vmem:[#allocation99_spill] sm:$0xff]  ;;  %vm1701_vm4 = vcmp.gt.f32.partialorder %v9022_v33, -1e+29 }
 0x43f   :  { %v1931_v41 = vpack.c.bf16 %v1884_v9, %v1883_v47  ;;  %5815 = vpow2.f32 %v1507_v4  ;;  %vm1693_vm11 = vcmp.gt.f32.partialorder %v9000_v18, -1e+29  ;;  %vm1700_vm13 = vcmp.gt.f32.partialorder %v9008_v35, -1e+29  ;;  %v9016_v18 = vld [vmem:[#allocation107_spill] sm:$0xff] }
 0x441   :  { %5415 = vmatpush3.bf16.msra.mxu0 %v8975_v56 }
 0x442   :  { %5416 = vmatprep.subr.bf16.mxu0 %v8980_v21 }
 0x444   :  { %5375 = vmatmul.mubr.bf16.gmra.mrb[72].mxu0 %v1928_v50 }
 0x445   :  { %5417 = vmatpush3.bf16.msra.mxu0 %v8980_v21  ;;  %3137 = vrot.lane.b32.xlu1 %v8985_v30, %s5987_s2  ;;  %v8995_v21 = vld [vmem:[#allocation51_spill] sm:$0xff] }
 0x446   :  { %5378 = vmatprep.mubr.bf16.mxu0 %v1929_v6  ;;  %3135 = vrot.lane.b32.xlu0 %v8986_v53, %s5987_s2  ;;  %v1394_v50 = vsub.f32 %v8995_v21, %v7295_v10  ;;  %v8997_v6 = vld [vmem:[#allocation9_spill] sm:$0xff] }
 0x447   :  { %v7549_v37 = vpop.xlane.xlu0 %1615  ;;  %v7565_v22 = vpop.eup %5811 }
 0x448   :  { %v1513_v63 = vmul.f32 1.442695, %v1394_v50  ;;  %v7568_v14 = vpop.eup %5813  ;;  %v9010_v50 = vld [vmem:[#allocation46_spill] sm:$0xff] }
 0x449   :  { %v7570_v1 = vpop.eup %5815  ;;  %vm1697_vm15 = vcmp.gt.f32.partialorder %v9010_v50, -1e+29 }
 0x44a   :  { %5817 = vpow2.f32 %v1513_v63 }
 0x44b   :  { %v1612_v25 = vpop.xlane.xlu1 %1611  ;;  %v1614_v26 = vpop.xlane.xlu0 %1613  ;;  %5819 = vrcp.f32 %v7524_v15 }
 0x44c   :  { %5379 = vmatmul.mubr.bf16.gmra.mrb[76].mxu0 %v1930_v59  ;;  %5821 = vrcp.f32 %v7534_v24  ;;  %v8998_v24 = vld [vmem:[#allocation35_spill] sm:$0xff]  ;;  %v9002_v59 = vld [vmem:[#allocation101_spill] sm:$0xff] }
 0x44d   :  { %5424 = vmatprep.mubr.bf16.mxu0 %v1931_v41  ;;  %5823 = vrcp.f32 %v1606_v32  ;;  %vm1694_vm8 = vcmp.gt.f32.partialorder %v8998_v24, -1e+29  ;;  %v8999_v32 = vld [vmem:[#allocation93_spill] sm:$0xff] }
 0x44e   :  { %5825 = vrcp.f32 %v7496_v7  ;;  %vm1696_vm9 = vcmp.gt.f32.partialorder %v8999_v32, -1e+29  ;;  %v1517_v32 = vmul.f32 1.442695, %v1396_v51  ;;  %v9023_v51 = vld [vmem:[#allocation116_spill] sm:$0xff] }
 0x44f   :  { %v1618_v20 = vpop.xlane.xlu1 %1617  ;;  %v2750_v56 = vpop.permute.xlu0 %2749  ;;  %5827 = vrcp.f32 %v1610_v31  ;;  %vm1704_vm5 = vcmp.gt.f32.partialorder %v9023_v51, -1e+29 }
 0x450   :  { %5418 = vmatprep.subr.bf16.mxu0 %v2750_v56  ;;  %5829 = vrcp.f32 %v1612_v25 }
 0x451   :  { %5419 = vmatpush3.bf16.msra.mxu0 %v2750_v56  ;;  %5831 = vrcp.f32 %v1614_v26  ;;  %v9003_v26 = vld [vmem:[#allocation100_spill] sm:$0xff] }
 0x452   :  { %5833 = vrcp.f32 %v7526_v43  ;;  %v9004_v56 = vld [vmem:[#allocation92_spill] sm:$0xff] }
 0x453   :  { %v2752_v46 = vpop.permute.xlu1 %2751  ;;  %5835 = vrcp.f32 %v1618_v20 }
 0x454   :  { %5420 = vmatprep.subr.bf16.mxu0 %v2752_v46  ;;  %v7574_v2 = vpop.eup %5817 }
 0x455   :  { %5421 = vmatpush3.bf16.msra.mxu0 %v2752_v46  ;;  %v5820_v40 = vpop.eup %5819  ;;  %v9005_v46 = vld [vmem:[#allocation90_spill] sm:$0xff] }
 0x456   :  { %v5822_v30 = vpop.eup %5821  ;;  %v1822_v7 = vsel %vm1694_vm8, %v5820_v40, 0.0  ;;  %vm1698_vm12 = vcmp.gt.f32.partialorder %v9005_v46, -1e+29  ;;  %v9012_v40 = vld [vmem:[#allocation48_spill] sm:$0xff]  ;;  %vm1708_vm8 = vcmp.gt.f32.partialorder %v7260_v44, -1e+29 }
 0x457   :  { %v5824_v15 = vpop.eup %5823  ;;  %v1823_v31 = vsel %vm1695_vm10, %v5822_v30, 0.0  ;;  %v1886_v9 = vmul.f32 %v9001_v58, %v1822_v7  ;;  %v9013_v30 = vld [vmem:[#allocation44_spill] sm:$0xff]  ;;  %v9015_v7 = vld [vmem:[#allocation103_spill] sm:$0xff]  ;;  %vm1710_vm10 = vcmp.gt.f32.partialorder %v7250_v28, -1e+29 }
 0x458   :  { %v5826_v36 = vpop.eup %5825  ;;  %v1824_v13 = vsel %vm1696_vm9, %v5824_v15, 0.0  ;;  %v1887_v25 = vmul.f32 %v9002_v59, %v1823_v31  ;;  %v9014_v15 = vld [vmem:[#allocation49_spill] sm:$0xff]  ;;  %vm1707_vm9 = vcmp.gt.f32.partialorder %v7240_v54, -1e+29 }
 0x459   :  { %v1821_v47 = vsel %vm1693_vm11, %v5826_v36, 0.0  ;;  %v5828_v43 = vpop.eup %5827  ;;  %v1888_v41 = vmul.f32 %v9003_v26, %v1824_v13  ;;  %v1395_v36 = vsub.f32 %v9014_v15, %v9013_v30  ;;  %v9017_v13 = vld [vmem:[#allocation106_spill] sm:$0xff]  ;;  %vm1711_vm11 = vcmp.gt.f32.partialorder %v7291_v61, -1e+29 }
 0x45a   :  { %v5830_v27 = vpop.eup %5829  ;;  %v1885_v3 = vmul.f32 %v9004_v56, %v1821_v47  ;;  %v1826_v21 = vsel %vm1698_vm12, %v5828_v43, 0.0  ;;  %v9021_v56 = vld [vmem:[#allocation54_spill] sm:$0xff]  ;;  %vm1709_vm12 = vcmp.gt.f32.partialorder %v7214_v62, -1e+29 }
 0x45b   :  { %v5832_v20 = vpop.eup %5831  ;;  %v1933_v4 = vpack.c.bf16 %v1888_v41, %v1887_v25  ;;  %v1515_v25 = vmul.f32 1.442695, %v1395_v36  ;;  %v9019_v41 = vld [vmem:[#allocation97_spill] sm:$0xff]  ;;  %v9027_v15 = vld [vmem:[#allocation114_spill] sm:$0xff] }
 0x45c   :  { %v5834_v0 = vpop.eup %5833  ;;  %v1932_v49 = vpack.c.bf16 %v1886_v9, %v1885_v3  ;;  %v9018_v9 = vld [vmem:[#allocation98_spill] sm:$0xff]  ;;  %vm1702_vm2 = vcmp.gt.f32.partialorder %v9019_v41, -1e+29  ;;  %vm1706_vm6 = vcmp.gt.f32.partialorder %v9027_v15, -1e+29 }
 0x45d   :  { %v1825_v24 = vsel %vm1697_vm15, %v5834_v0, 0.0  ;;  %v5836_v58 = vpop.eup %5835  ;;  %vm1715_vm15 = vcmp.gt.f32.partialorder %v9013_v30, -1e+29 }
 0x45e   :  { %v1889_v43 = vmul.f32 %v9018_v9, %v1825_v24  ;;  %v1830_v46 = vsel %vm1702_vm2, %v5836_v58, 0.0  ;;  %vm1713_vm2 = vcmp.gt.f32.partialorder %v8992_v39, -1e+29 }
 0x465   :  { %1637 = vadd.xlane.f32.xlu0 %v7565_v22 }
 0x469   :  { %1635 = vadd.xlane.f32.xlu1 %v7570_v1  ;;  %1639 = vadd.xlane.f32.xlu0 %v7568_v14 }
 0x46d   :  { %1641 = vadd.xlane.f32.xlu1 %v7574_v2 }
 0x47e   :  { %3141 = vrot.lane.b32.xlu1 %v8996_v52, %s5987_s2  ;;  %v1828_v52 = vsel %vm1700_vm13, %v5832_v20, 0.0  ;;  %vm1712_vm13 = vcmp.gt.f32.partialorder %v7299_v11, -1e+29 }
 0x47f   :  { %3139 = vrot.lane.b32.xlu0 %v8997_v6, %s5987_s2  ;;  %v9011_v6 = vld [vmem:[#allocation96_spill] sm:$0xff]  ;;  %v1892_v47 = vmul.f32 %v9017_v13, %v1828_v52  ;;  %v9026_v52 = vld [vmem:[#allocation118_spill] sm:$0xff] }
 0x480   :  { %v1622_v5 = vpop.xlane.xlu0 %1621 }
 0x484   :  { %v1620_v53 = vpop.xlane.xlu1 %1619  ;;  %v1624_v17 = vpop.xlane.xlu0 %1623 }
 0x485   :  { %5837 = vrcp.f32 %v1620_v53  ;;  %v1890_v53 = vmul.f32 %v9015_v7, %v1826_v21 }
 0x486   :  { %5839 = vrcp.f32 %v7549_v37  ;;  %v9009_v37 = vld [vmem:[#allocation104_spill] sm:$0xff] }
 0x487   :  { %5841 = vrcp.f32 %v1622_v5  ;;  %vm1699_vm14 = vcmp.gt.f32.partialorder %v9009_v37, -1e+29  ;;  %v1397_v5 = vsub.f32 %v9012_v40, %v9011_v6  ;;  %v9024_v37 = vld [vmem:[#allocation109_spill] sm:$0xff] }
 0x488   :  { %v1626_v23 = vpop.xlane.xlu1 %1625  ;;  %v2754_v19 = vpop.permute.xlu0 %2753  ;;  %v1827_v63 = vsel %vm1699_vm14, %v5830_v27, 0.0  ;;  %v9020_v27 = vld [vmem:[#allocation111_spill] sm:$0xff]  ;;  %vm1714_vm14 = vcmp.gt.f32.partialorder %v7295_v10, -1e+29 }
 0x489   :  { %5422 = vmatprep.subr.bf16.mxu0 %v2754_v19  ;;  %5843 = vrcp.f32 %v1626_v23  ;;  %v1891_v31 = vmul.f32 %v9016_v18, %v1827_v63  ;;  %v1519_v59 = vmul.f32 1.442695, %v1397_v5  ;;  %v1398_v3 = vsub.f32 %v9021_v56, %v9020_v27  ;;  %v9031_v56 = vld [vmem:[#allocation117_spill] sm:$0xff] }
 0x48a   :  { %5423 = vmatpush3.bf16.msra.mxu0 %v2754_v19  ;;  %5845 = vrcp.f32 %v1624_v17  ;;  %v1934_v23 = vpack.c.bf16 %v1890_v53, %v1889_v43  ;;  %v9028_v53 = vld [vmem:[#allocation108_spill] sm:$0xff] }
 0x48b   :  { %5847 = vpow2.f32 %v1517_v32  ;;  %v1935_v0 = vpack.c.bf16 %v1892_v47, %v1891_v31  ;;  %v1521_v35 = vmul.f32 1.442695, %v1398_v3  ;;  %vm1705_vm7 = vcmp.gt.f32.partialorder %v9028_v53, -1e+29  ;;  %v9029_v43 = vld [vmem:[#allocation24_spill] sm:$0xff]  ;;  %v9032_v3 = vld [vmem:[#allocation58_spill] sm:$0xff] }
 0x48c   :  { %v3134_v55 = vpop.permute.xlu1 %3133  ;;  %5849 = vpow2.f32 %v1519_v59 }
 0x48d   :  { %5425 = vmatmul.mubr.bf16.vlgmr.msra.gmra.mrb[80].mxu0 %v1932_v49  ;;  %5466 = vmatprep.subr.bf16.mxu0 %v3134_v55  ;;  %5851 = vpow2.f32 %v1515_v25 }
 0x48e   :  { %5428 = vmatprep.mubr.bf16.mxu0 %v1933_v4  ;;  %5467 = vmatpush3.bf16.msra.mxu0 %v3134_v55  ;;  %v1894_v55 = vmul.f32 %v9024_v37, %v1830_v46  ;;  %5853 = vpow2.f32 %v1521_v35  ;;  %v9034_v46 = vld [vmem:[#allocation53_spill] sm:$0xff]  ;;  %v9036_v35 = vld [vmem:[#allocation55_spill] sm:$0xff] }
 0x48f   :  { %v5838_v19 = vpop.eup %5837 }
 0x490   :  { %v5840_v26 = vpop.eup %5839  ;;  %v1831_v17 = vsel %vm1703_vm3, %v5838_v19, 0.0  ;;  %vm1716_vm3 = vcmp.gt.f32.partialorder %v9006_v45, -1e+29 }
 0x491   :  { %v5842_v20 = vpop.eup %5841  ;;  %v1829_v49 = vsel %vm1701_vm4, %v5840_v26, 0.0  ;;  %v1895_v21 = vmul.f32 %v7386_v29, %v1831_v17  ;;  %vm1718_vm4 = vcmp.gt.f32.partialorder %v9020_v27, -1e+29 }
 0x492   :  { %v1832_v4 = vsel %vm1704_vm5, %v5842_v20, 0.0  ;;  %v1893_v63 = vmul.f32 %v9025_v48, %v1829_v49  ;;  %v9035_v49 = vld [vmem:[#allocation112_spill] sm:$0xff] }
 0x493   :  { %v5844_v50 = vpop.eup %5843  ;;  %v1896_v40 = vmul.f32 %v9026_v52, %v1832_v4  ;;  %v1399_v37 = vsub.f32 %v9036_v35, %v9035_v49  ;;  %v9038_v52 = vld [vmem:[#allocation57_spill] sm:$0xff]  ;;  %vm1719_vm5 = vcmp.gt.f32.partialorder %v9035_v49, -1e+29 }
 0x494   :  { %v5846_v5 = vpop.eup %5845  ;;  %v1936_v36 = vpack.c.bf16 %v1894_v55, %v1893_v63  ;;  %v1834_v32 = vsel %vm1706_vm6, %v5844_v50, 0.0  ;;  %v9037_v63 = vld [vmem:[#allocation115_spill] sm:$0xff]  ;;  %vm1717_vm6 = vcmp.gt.f32.partialorder %v9011_v6, -1e+29 }
 0x495   :  { %5429 = vmatmul.mubr.bf16.gmra.mrb[84].mxu0 %v1934_v23  ;;  %v1937_v24 = vpack.c.bf16 %v1896_v40, %v1895_v21  ;;  %v7625_v7 = vpop.eup %5847  ;;  %v1833_v29 = vsel %vm1705_vm7, %v5846_v5, 0.0  ;;  %v1898_v18 = vmul.f32 %v7398_v60, %v1834_v32  ;;  %v9030_v60 = vld [vmem:[#allocation15_spill] sm:$0xff]  ;;  %v1400_v23 = vsub.f32 %v9032_v3, %v9031_v56 }
 0x496   :  { %5432 = vmatprep.mubr.bf16.mxu0 %v1935_v0  ;;  %v7630_v31 = vpop.eup %5849  ;;  %v1897_v47 = vmul.f32 %v7383_v38, %v1833_v29  ;;  %v9033_v0 = vld [vmem:[#allocation110_spill] sm:$0xff]  ;;  %v1523_v44 = vmul.f32 1.442695, %v1399_v37  ;;  %v1402_v40 = vsub.f32 %v9038_v52, %v9037_v63  ;;  %v5964_v37 = vld [vmem:[%s8662_s1 + $0x38] sm:$0xff]  ;;  %v5967_v52 = vld [vmem:[%s8662_s1 + $0x30] sm:$0xff] }
 0x497   :  { %v7632_v13 = vpop.eup %5851  ;;  %v1401_v33 = vsub.f32 %v9034_v46, %v9033_v0  ;;  %v1525_v55 = vmul.f32 1.442695, %v1400_v23  ;;  %v5960_v23 = vld [vmem:[%s8662_s1 + $0x18] sm:$0xff]  ;;  %vm1720_vm7 = vcmp.gt.f32.partialorder %v9031_v56, -1e+29 }
 0x498   :  { %v1938_v58 = vpack.c.bf16 %v1898_v18, %v1897_v47  ;;  %v7637_v9 = vpop.eup %5853  ;;  %v1529_v54 = vmul.f32 1.442695, %v1402_v40 }
 0x499   :  { %v1527_v48 = vmul.f32 1.442695, %v1401_v33  ;;  %v5962_v33 = vld [vmem:[%s8662_s1 + $0x28] sm:$0xff] }
 0x49d   :  { %5433 = vmatmul.mubr.bf16.gmra.mrb[88].mxu0 %v1936_v36 }
 0x49e   :  { %1645 = vadd.xlane.f32.xlu0 %v7625_v7  ;;  %5436 = vmatprep.mubr.bf16.mxu0 %v1937_v24 }
 0x4a2   :  { %1643 = vadd.xlane.f32.xlu1 %v7632_v13  ;;  %1647 = vadd.xlane.f32.xlu0 %v7630_v31 }
 0x4a5   :  { %5437 = vmatmul.mubr.bf16.gmra.mrb[92].mxu0 %v1938_v58 }
 0x4a6   :  { %1649 = vadd.xlane.f32.xlu1 %v7637_v9 }
 0x4b7   :  { %3145 = vrot.lane.b32.xlu1 %v9029_v43, %s5987_s2  ;;  %v7681_v43 = vld [vmem:[%s8665_s4 + $0x10] sm:$0xff] }
 0x4b8   :  { %3143 = vrot.lane.b32.xlu0 %v9030_v60, %s5987_s2 }
 0x4b9   :  { %v1630_v19 = vpop.xlane.xlu0 %1629 }
 0x4ba   :  { %5855 = vrcp.f32 %v1630_v19 }
 0x4bd   :  { %v1628_v59 = vpop.xlane.xlu1 %1627  ;;  %v7644_v38 = vpop.xlane.xlu0 %1631 }
 0x4be   :  { %5857 = vrcp.f32 %v1628_v59  ;;  %v5959_v59 = vld [vmem:[%s8662_s1 + $0x8] sm:$0xff] }
 0x4bf   :  { %5859 = vpow2.f32 %v1525_v55  ;;  %v5965_v55 = vld [vmem:[%s8662_s1 + $0x20] sm:$0xff] }
 0x4c0   :  { %5861 = vpow2.f32 %v1527_v48  ;;  %v5966_v48 = vld [vmem:[%s8662_s1 + $0x48] sm:$0xff] }
 0x4c1   :  { %v7646_v25 = vpop.xlane.xlu1 %1633  ;;  %v3136_v26 = vpop.permute.xlu0 %3135  ;;  %5863 = vpow2.f32 %v1523_v44 }
 0x4c2   :  { %5468 = vmatprep.subr.bf16.mxu0 %v3136_v26  ;;  %5865 = vpow2.f32 %v1529_v54  ;;  %v5969_v54 = vld [vmem:[%s8662_s1 + $0x40] sm:$0xff] }
 0x4c3   :  { %5469 = vmatpush3.bf16.msra.mxu0 %v3136_v26  ;;  %5867 = vrcp.f32 %v7646_v25 }
 0x4c4   :  { %v5856_v41 = vpop.eup %5855 }
 0x4c5   :  { %v3138_v20 = vpop.permute.xlu1 %3137  ;;  %v1836_v17 = vsel %vm1708_vm8, %v5856_v41, 0.0  ;;  %vm1722_vm8 = vcmp.gt.f32.partialorder %v9037_v63, -1e+29  ;;  %v1950_v63 = vld [vmem:[%s8665_s4 + $0x18] sm:$0xff] }
 0x4c6   :  { %5470 = vmatprep.subr.bf16.mxu0 %v3138_v20  ;;  %v1900_v50 = vmul.f32 %v7476_v34, %v1836_v17  ;;  %v5963_v17 = vld [vmem:[%s8662_s1 + $0x10] sm:$0xff] }
 0x4c7   :  { %5471 = vmatpush3.bf16.msra.mxu0 %v3138_v20 }
 0x4c8   :  { %v5858_v51 = vpop.eup %5857 }
 0x4c9   :  { %v1835_v4 = vsel %vm1707_vm9, %v5858_v51, 0.0  ;;  %v7664_v34 = vpop.eup %5859  ;;  %vm1721_vm9 = vcmp.gt.f32.partialorder %v9033_v0, -1e+29 }
 0x4ca   :  { %v1899_v21 = vmul.f32 %v7492_v12, %v1835_v4  ;;  %v7668_v12 = vpop.eup %5861 }
 0x4cb   :  { %v7670_v53 = vpop.eup %5863 }
 0x4cc   :  { %v1939_v5 = vpack.c.bf16 %v1900_v50, %v1899_v21  ;;  %v7674_v29 = vpop.eup %5865 }
 0x4cd   :  { %v5868_v25 = vpop.eup %5867 }
 0x4ce   :  { %5482 = vmatprep.mubr.bf16.mxu0 %v1939_v5  ;;  %v5968_v5 = vld [vmem:[%s8662_s1 + $0x58] sm:$0xff] }
 0x4d0   :  { %v5310_v15 = vpop.f32.mrb[48].mxu0 }
 0x4d1   :  { %v2009_v36 = vpop.f32.mrb[49].mxu0 }
 0x4d2   :  { %v5311_v24 = vpop.f32.mrb[50].mxu0  ;;  %5326 = vmatprep.mubr.msk.f32.mxu1 %vm462_vm1, %v2009_v36 }
 0x4d3   :  { %v2012_v32 = vpop.f32.mrb[51].mxu0 }
 0x4d4   :  { %5327 = vmatmul.mubr.msk.f32.vlgmr.msra.gmra.mrb[48].mxu1 %vm462_vm1, %v2012_v32 }
 0x4d5   :  { %5329 = vmatprep.mubr.msk.f32.mxu1 %vm462_vm1, %v5310_v15  ;;  %5383 = vmatpush3.msra.mxu1 %v7597_v42 }
 0x4d6   :  { %5440 = vmatprep.subr.mxu1 %v7681_v43 }
 0x4d7   :  { %1653 = vadd.xlane.f32.xlu0 %v7664_v34 }
 0x4d8   :  { %5330 = vmatmul.mubr.msk.f32.gmra.mrb[50].mxu1 %vm462_vm1, %v5311_v24  ;;  %v5970_v24 = vld [vmem:[%s8662_s1 + $0x68] sm:$0xff] }
 0x4db   :  { %1651 = vadd.xlane.f32.xlu1 %v7670_v53  ;;  %1655 = vadd.xlane.f32.xlu0 %v7668_v12 }
 0x4df   :  { %1657 = vadd.xlane.f32.xlu1 %v7674_v29  ;;  %v5314_v18 = vpop.f32.mrb[52].mxu0 }
 0x4e0   :  { %v2025_v42 = vpop.f32.mrb[53].mxu0 }
 0x4e1   :  { %v5315_v47 = vpop.f32.mrb[54].mxu0  ;;  %5332 = vmatprep.mubr.msk.f32.mxu1 %vm462_vm1, %v2025_v42 }
 0x4e2   :  { %v2028_v58 = vpop.f32.mrb[55].mxu0 }
 0x4e3   :  { %5333 = vmatmul.mubr.msk.f32.gmra.mrb[52].mxu1 %vm462_vm1, %v2028_v58 }
 0x4e4   :  { %5335 = vmatprep.mubr.msk.f32.mxu1 %vm462_vm1, %v5314_v18  ;;  %v5971_v18 = vld [vmem:[%s8662_s1 + $0x50] sm:$0xff] }
 0x4e7   :  { %5336 = vmatmul.mubr.msk.f32.gmra.mrb[54].mxu1 %vm462_vm1, %v5315_v47  ;;  %v5972_v47 = vld [vmem:[%s8662_s1 + $0x60] sm:$0xff] }
 0x4ef   :  { %v5318_v60 = vpop.f32.mrb[56].mxu0 }
 0x4f0   :  { %v2041_v19 = vpop.f32.mrb[57].mxu0  ;;  %3545 = vrot.lane.b32.xlu1 %v5959_v59, %s5978_s28 }
 0x4f1   :  { %3147 = vrot.lane.b32.xlu0 %v8945_v57, %s5987_s2  ;;  %v5319_v26 = vpop.f32.mrb[58].mxu0  ;;  %5338 = vmatprep.mubr.msk.f32.mxu1 %vm462_vm1, %v2041_v19  ;;  %v5961_v57 = vld [vmem:[%s8662_s1] sm:$0xff] }
 0x4f2   :  { %v2044_v41 = vpop.f32.mrb[59].mxu0  ;;  %v7694_v3 = vpop.xlane.xlu0 %1637 }
 0x4f3   :  { %5339 = vmatmul.mubr.msk.f32.gmra.mrb[56].mxu1 %vm462_vm1, %v2044_v41 }
 0x4f4   :  { %5341 = vmatprep.mubr.msk.f32.mxu1 %vm462_vm1, %v5318_v60  ;;  %3549 = vrot.lane.b32.xlu1 %v5960_v23, %s5978_s28 }
 0x4f5   :  { %3543 = vrot.lane.b32.xlu0 %v5961_v57, %s5978_s28 }
 0x4f6   :  { %v7706_v20 = vpop.xlane.xlu1 %1635  ;;  %v7708_v46 = vpop.xlane.xlu0 %1639 }
 0x4f7   :  { %5342 = vmatmul.mubr.msk.f32.gmra.mrb[58].mxu1 %vm462_vm1, %v5319_v26  ;;  %5869 = vrcp.f32 %v7706_v20 }
 0x4f8   :  { %3553 = vrot.lane.b32.xlu1 %v5962_v33, %s5978_s28  ;;  %5871 = vrcp.f32 %v7644_v38 }
 0x4f9   :  { %3547 = vrot.lane.b32.xlu0 %v5963_v17, %s5978_s28  ;;  %5873 = vrcp.f32 %v7694_v3 }
 0x4fa   :  { %v7719_v51 = vpop.xlane.xlu1 %1641  ;;  %v3140_v35 = vpop.permute.xlu0 %3139 }
 0x4fb   :  { %5472 = vmatprep.subr.bf16.mxu0 %v3140_v35  ;;  %5875 = vrcp.f32 %v7719_v51  ;;  %v1838_v51 = vsel %vm1710_vm10, %v5868_v25, 0.0 }
 0x4fc   :  { %5473 = vmatpush3.bf16.msra.mxu0 %v3140_v35  ;;  %3557 = vrot.lane.b32.xlu1 %v5964_v37, %s5978_s28 }
 0x4fd   :  { %3551 = vrot.lane.b32.xlu0 %v5965_v55, %s5978_s28 }
 0x4fe   :  { %v3142_v4 = vpop.permute.xlu1 %3141 }
 0x4ff   :  { %v5322_v21 = vpop.f32.mrb[60].mxu0  ;;  %5474 = vmatprep.subr.bf16.mxu0 %v3142_v4 }
 0x500   :  { %v2057_v50 = vpop.f32.mrb[61].mxu0  ;;  %5475 = vmatpush3.bf16.msra.mxu0 %v3142_v4  ;;  %3561 = vrot.lane.b32.xlu1 %v5966_v48, %s5978_s28 }
 0x501   :  { %v5323_v44 = vpop.f32.mrb[62].mxu0  ;;  %5344 = vmatprep.mubr.msk.f32.mxu1 %vm462_vm1, %v2057_v50  ;;  %3555 = vrot.lane.b32.xlu0 %v5967_v52, %s5978_s28  ;;  %v5870_v38 = vpop.eup %5869 }
 0x502   :  { %v2060_v40 = vpop.f32.mrb[63].mxu0  ;;  %v5872_v3 = vpop.eup %5871 }
 0x503   :  { %5345 = vmatmul.mubr.msk.f32.gmra.mrb[60].mxu1 %vm462_vm1, %v2060_v40 }
 0x504   :  { %5347 = vmatprep.mubr.msk.f32.mxu1 %vm462_vm1, %v5322_v21  ;;  %3565 = vrot.lane.b32.xlu1 %v5968_v5, %s5978_s28 }
 0x505   :  { %3559 = vrot.lane.b32.xlu0 %v5969_v54, %s5978_s28 }
 0x507   :  { %5348 = vmatmul.mubr.msk.f32.gmra.mrb[62].mxu1 %vm462_vm1, %v5323_v44  ;;  %v5368_v15 = vpop.f32.mrb[64].mxu0 }
 0x508   :  { %v2403_v36 = vpop.f32.mrb[65].mxu0  ;;  %3569 = vrot.lane.b32.xlu1 %v5970_v24, %s5978_s28 }
 0x509   :  { %v5369_v32 = vpop.f32.mrb[66].mxu0  ;;  %5384 = vmatprep.mubr.msk.f32.mxu1 %vm462_vm1, %v2403_v36  ;;  %3563 = vrot.lane.b32.xlu0 %v5971_v18, %s5978_s28 }
 0x50a   :  { %v2406_v42 = vpop.f32.mrb[67].mxu0 }
 0x50b   :  { %5385 = vmatmul.mubr.msk.f32.vlgmr.msra.gmra.mrb[64].mxu1 %vm462_vm1, %v2406_v42  ;;  %v1837_v42 = vsel %vm1709_vm12, %v5872_v3, 0.0 }
 0x50c   :  { %5387 = vmatprep.mubr.msk.f32.mxu1 %vm462_vm1, %v5368_v15  ;;  %5441 = vmatpush3.msra.mxu1 %v7681_v43  ;;  %v5874_v15 = vpop.eup %5873 }
 0x50d   :  { %3567 = vrot.lane.b32.xlu0 %v5972_v47, %s5978_s28  ;;  %v1902_v47 = vmul.f32 %v7498_v16, %v1838_v51  ;;  %v1840_v61 = vsel %vm1712_vm13, %v5874_v15, 0.0  ;;  %5498 = vmatprep.subr.mxu1 %v1950_v63 }
 0x50e   :  { %v1904_v16 = vmul.f32 %v7565_v22, %v1840_v61 }
 0x50f   :  { %v5372_v58 = vpop.f32.mrb[68].mxu0  ;;  %5388 = vmatmul.mubr.msk.f32.gmra.mrb[66].mxu1 %vm462_vm1, %v5369_v32 }
 0x510   :  { %v2419_v60 = vpop.f32.mrb[69].mxu0 }
 0x511   :  { %v5373_v19 = vpop.f32.mrb[70].mxu0  ;;  %5390 = vmatprep.mubr.msk.f32.mxu1 %vm462_vm1, %v2419_v60  ;;  %v5876_v60 = vpop.eup %5875 }
 0x512   :  { %v2422_v59 = vpop.f32.mrb[71].mxu0 }
 0x513   :  { %5391 = vmatmul.mubr.msk.f32.gmra.mrb[68].mxu1 %vm462_vm1, %v2422_v59 }
 0x514   :  { %5393 = vmatprep.mubr.msk.f32.mxu1 %vm462_vm1, %v5372_v58 }
 0x517   :  { %v5376_v26 = vpop.f32.mrb[72].mxu0  ;;  %5394 = vmatmul.mubr.msk.f32.gmra.mrb[70].mxu1 %vm462_vm1, %v5373_v19  ;;  %v1901_v19 = vmul.f32 %v7489_v8, %v1837_v42 }
 0x518   :  { %v2435_v43 = vpop.f32.mrb[73].mxu0 }
 0x519   :  { %v5377_v41 = vpop.f32.mrb[74].mxu0  ;;  %5396 = vmatprep.mubr.msk.f32.mxu1 %vm462_vm1, %v2435_v43  ;;  %v1940_v43 = vpack.c.bf16 %v1902_v47, %v1901_v19 }
 0x51a   :  { %v2438_v23 = vpop.f32.mrb[75].mxu0 }
 0x51b   :  { %5397 = vmatmul.mubr.msk.f32.gmra.mrb[72].mxu1 %vm462_vm1, %v2438_v23 }
 0x51c   :  { %5399 = vmatprep.mubr.msk.f32.mxu1 %vm462_vm1, %v5376_v26 }
 0x51f   :  { %v5380_v57 = vpop.f32.mrb[76].mxu0  ;;  %5400 = vmatmul.mubr.msk.f32.gmra.mrb[74].mxu1 %vm462_vm1, %v5377_v41 }
 0x520   :  { %v2451_v33 = vpop.f32.mrb[77].mxu0 }
 0x521   :  { %v5381_v17 = vpop.f32.mrb[78].mxu0  ;;  %5402 = vmatprep.mubr.msk.f32.mxu1 %vm462_vm1, %v2451_v33 }
 0x522   :  { %v2454_v35 = vpop.f32.mrb[79].mxu0 }
 0x523   :  { %5403 = vmatmul.mubr.msk.f32.gmra.mrb[76].mxu1 %vm462_vm1, %v2454_v35 }
 0x524   :  { %5405 = vmatprep.mubr.msk.f32.mxu1 %vm462_vm1, %v5380_v57  ;;  %v1842_v57 = vsel %vm1714_vm14, %v5876_v60, 0.0 }
 0x525   :  { %v1906_v30 = vmul.f32 %v7574_v2, %v1842_v57 }
 0x527   :  { %5406 = vmatmul.mubr.msk.f32.gmra.mrb[78].mxu1 %vm462_vm1, %v5381_v17 }
 0x52b   :  { %v1646_v37 = vpop.xlane.xlu0 %1645 }
 0x52f   :  { %v1644_v55 = vpop.xlane.xlu1 %1643  ;;  %v1648_v4 = vpop.xlane.xlu0 %1647 }
 0x530   :  { %5877 = vrcp.f32 %v1644_v55 }
 0x531   :  { %5879 = vrcp.f32 %v7708_v46  ;;  %v1839_v46 = vsel %vm1711_vm11, %v5870_v38, 0.0 }
 0x532   :  { %5881 = vrcp.f32 %v1646_v37  ;;  %v1903_v62 = vmul.f32 %v7570_v1, %v1839_v46 }
 0x533   :  { %v1650_v21 = vpop.xlane.xlu1 %1649  ;;  %v3144_v50 = vpop.permute.xlu0 %3143 }
 0x534   :  { %5476 = vmatprep.subr.bf16.mxu0 %v3144_v50  ;;  %5883 = vrcp.f32 %v1650_v21  ;;  %v1941_v8 = vpack.c.bf16 %v1904_v16, %v1903_v62 }
 0x535   :  { %5477 = vmatpush3.bf16.msra.mxu0 %v3144_v50 }
 0x537   :  { %v3146_v48 = vpop.permute.xlu1 %3145 }
 0x538   :  { %5478 = vmatprep.subr.bf16.mxu0 %v3146_v48 }
 0x539   :  { %5479 = vmatpush3.bf16.msra.mxu0 %v3146_v48 }
 0x53a   :  { %v5878_v11 = vpop.eup %5877 }
 0x53b   :  { %v5880_v59 = vpop.eup %5879  ;;  %v1843_v22 = vsel %vm1715_vm15, %v5878_v11, 0.0 }
 0x53c   :  { %v5882_v41 = vpop.eup %5881  ;;  %v1841_v17 = vsel %vm1713_vm2, %v5880_v59, 0.0  ;;  %v1907_v39 = vmul.f32 %v7632_v13, %v1843_v22 }
 0x53d   :  { %v1844_v35 = vsel %vm1716_vm3, %v5882_v41, 0.0  ;;  %v1905_v55 = vmul.f32 %v7568_v14, %v1841_v17 }
 0x53e   :  { %v5884_v37 = vpop.eup %5883  ;;  %v1908_v45 = vmul.f32 %v7625_v7, %v1844_v35 }
 0x53f   :  { %v1942_v48 = vpack.c.bf16 %v1906_v30, %v1905_v55  ;;  %v1846_v13 = vsel %vm1718_vm4, %v5884_v37, 0.0 }
 0x560   :  { %v5426_v44 = vpop.f32.mrb[80].mxu0 }
 0x561   :  { %v2797_v52 = vpop.f32.mrb[81].mxu0 }
 0x562   :  { %v5427_v40 = vpop.f32.mrb[82].mxu0  ;;  %5442 = vmatprep.mubr.msk.f32.mxu1 %vm462_vm1, %v2797_v52  ;;  %v1943_v52 = vpack.c.bf16 %v1908_v45, %v1907_v39 }
 0x563   :  { %v2800_v5 = vpop.f32.mrb[83].mxu0 }
 0x564   :  { %5443 = vmatmul.mubr.msk.f32.vlgmr.msra.gmra.mrb[80].mxu1 %vm462_vm1, %v2800_v5  ;;  %v1654_v54 = vpop.xlane.xlu0 %1653  ;;  %v1910_v5 = vmul.f32 %v7637_v9, %v1846_v13 }
 0x565   :  { %5445 = vmatprep.mubr.msk.f32.mxu1 %vm462_vm1, %v5426_v44  ;;  %5499 = vmatpush3.msra.mxu1 %v1950_v63 }
 0x568   :  { %v5430_v20 = vpop.f32.mrb[84].mxu0  ;;  %5446 = vmatmul.mubr.msk.f32.gmra.mrb[82].mxu1 %vm462_vm1, %v5427_v40  ;;  %v1656_v36 = vpop.xlane.xlu0 %1655 }
 0x569   :  { %v2813_v24 = vpop.f32.mrb[85].mxu0  ;;  %v1652_v32 = vpop.xlane.xlu1 %1651 }
 0x56a   :  { %v5431_v18 = vpop.f32.mrb[86].mxu0  ;;  %5448 = vmatprep.mubr.msk.f32.mxu1 %vm462_vm1, %v2813_v24  ;;  %5885 = vrcp.f32 %v1652_v32 }
 0x56b   :  { %v2816_v28 = vpop.f32.mrb[87].mxu0  ;;  %5887 = vrcp.f32 %v1648_v4 }
 0x56c   :  { %5449 = vmatmul.mubr.msk.f32.gmra.mrb[84].mxu1 %vm462_vm1, %v2816_v28  ;;  %v3148_v58 = vpop.permute.xlu0 %3147  ;;  %5889 = vrcp.f32 %v1654_v54 }
 0x56d   :  { %5451 = vmatprep.mubr.msk.f32.mxu1 %vm462_vm1, %v5430_v20  ;;  %5480 = vmatprep.subr.bf16.mxu0 %v3148_v58  ;;  %v1658_v1 = vpop.xlane.xlu1 %1657 }
 0x56e   :  { %5481 = vmatpush3.bf16.msra.mxu0 %v3148_v58  ;;  %5891 = vrcp.f32 %v1658_v1 }
 0x56f   :  { %5893 = vrcp.f32 %v1656_v36 }
 0x570   :  { %v5434_v26 = vpop.f32.mrb[88].mxu0  ;;  %5452 = vmatmul.mubr.msk.f32.gmra.mrb[86].mxu1 %vm462_vm1, %v5431_v18 }
 0x571   :  { %v2829_v23 = vpop.f32.mrb[89].mxu0  ;;  %5483 = vmatmul.mubr.bf16.vlgmr.msra.gmra.mrb[96].mxu0 %v1940_v43 }
 0x572   :  { %v5435_v33 = vpop.f32.mrb[90].mxu0  ;;  %5454 = vmatprep.mubr.msk.f32.mxu1 %vm462_vm1, %v2829_v23  ;;  %5486 = vmatprep.mubr.bf16.mxu0 %v1941_v8 }
 0x573   :  { %v2832_v10 = vpop.f32.mrb[91].mxu0 }
 0x574   :  { %5455 = vmatmul.mubr.msk.f32.gmra.mrb[88].mxu1 %vm462_vm1, %v2832_v10  ;;  %v5886_v4 = vpop.eup %5885 }
 0x575   :  { %5457 = vmatprep.mubr.msk.f32.mxu1 %vm462_vm1, %v5434_v26  ;;  %v5888_v21 = vpop.eup %5887  ;;  %v1847_v7 = vsel %vm1719_vm5, %v5886_v4, 0.0 }
 0x576   :  { %v5890_v2 = vpop.eup %5889  ;;  %v1845_v40 = vsel %vm1717_vm6, %v5888_v21, 0.0  ;;  %v1911_v54 = vmul.f32 %v7670_v53, %v1847_v7 }
 0x577   :  { %v1848_v49 = vsel %vm1720_vm7, %v5890_v2, 0.0  ;;  %v1909_v25 = vmul.f32 %v7630_v31, %v1845_v40 }
 0x578   :  { %v5438_v50 = vpop.f32.mrb[92].mxu0  ;;  %5458 = vmatmul.mubr.msk.f32.gmra.mrb[90].mxu1 %vm462_vm1, %v5435_v33  ;;  %v5892_v6 = vpop.eup %5891  ;;  %v1912_v38 = vmul.f32 %v7664_v34, %v1848_v49 }
 0x579   :  { %v2845_v44 = vpop.f32.mrb[93].mxu0  ;;  %5487 = vmatmul.mubr.bf16.gmra.mrb[100].mxu0 %v1942_v48  ;;  %v5894_v3 = vpop.eup %5893  ;;  %v1944_v56 = vpack.c.bf16 %v1910_v5, %v1909_v25  ;;  %v1850_v15 = vsel %vm1722_vm8, %v5892_v6, 0.0 }
 0x57a   :  { %v5439_v14 = vpop.f32.mrb[94].mxu0  ;;  %5460 = vmatprep.mubr.msk.f32.mxu1 %vm462_vm1, %v2845_v44  ;;  %5490 = vmatprep.mubr.bf16.mxu0 %v1943_v52  ;;  %v1945_v20 = vpack.c.bf16 %v1912_v38, %v1911_v54  ;;  %v1849_v9 = vsel %vm1721_vm9, %v5894_v3, 0.0  ;;  %v1914_v53 = vmul.f32 %v7674_v29, %v1850_v15 }
 0x57b   :  { %v2848_v27 = vpop.f32.mrb[95].mxu0  ;;  %v1913_v51 = vmul.f32 %v7668_v12, %v1849_v9 }
 0x57c   :  { %5461 = vmatmul.mubr.msk.f32.gmra.mrb[92].mxu1 %vm462_vm1, %v2848_v27 }
 0x57d   :  { %5463 = vmatprep.mubr.msk.f32.mxu1 %vm462_vm1, %v5438_v50  ;;  %v1946_v31 = vpack.c.bf16 %v1914_v53, %v1913_v51 }
 0x580   :  { %5464 = vmatmul.mubr.msk.f32.gmra.mrb[94].mxu1 %vm462_vm1, %v5439_v14 }
 0x581   :  { %5491 = vmatmul.mubr.bf16.gmra.mrb[104].mxu0 %v1944_v56 }
 0x582   :  { %5494 = vmatprep.mubr.bf16.mxu0 %v1945_v20 }
 0x589   :  { %5495 = vmatmul.mubr.bf16.gmra.mrb[108].mxu0 %v1946_v31 }
 0x5a7   :  { %v5328_v34 = vpop.f32.mrb[48].mxu1 }
 0x5a8   :  { %2283 = vrot.lane.b32.xlu1 %v5328_v34, %s5978_s28  ;;  %v2186_v36 = vpop.f32.mrb[49].mxu1  ;;  %v7895_v34 = vpop.permute.xlu1 %3545 }
 0x5ab   :  { %v5331_v0 = vpop.f32.mrb[50].mxu1 }
 0x5ac   :  { %2281 = vrot.lane.b32.xlu1 %v2186_v36, %s5978_s28  ;;  %v2196_v24 = vpop.f32.mrb[51].mxu1  ;;  %v7897_v36 = vpop.permute.xlu1 %3549 }
 0x5ad   :  { %2285 = vrot.lane.b32.xlu0 %v2196_v24, %s5978_s28  ;;  %v7901_v24 = vpop.permute.xlu0 %3543 }
 0x5b0   :  { %2287 = vrot.lane.b32.xlu1 %v5331_v0, %s5978_s28  ;;  %v7899_v0 = vpop.permute.xlu1 %3553 }
 0x5b6   :  { %v5334_v12 = vpop.f32.mrb[52].mxu1 }
 0x5b7   :  { %2291 = vrot.lane.b32.xlu1 %v5334_v12, %s5978_s28  ;;  %v2206_v29 = vpop.f32.mrb[53].mxu1  ;;  %v7903_v12 = vpop.permute.xlu1 %3557 }
 0x5b8   :  { %2289 = vrot.lane.b32.xlu0 %v2206_v29, %s5978_s28  ;;  %v7905_v29 = vpop.permute.xlu0 %3547 }
 0x5ba   :  { %v5337_v32 = vpop.f32.mrb[54].mxu1 }
 0x5bb   :  { %2295 = vrot.lane.b32.xlu1 %v5337_v32, %s5978_s28  ;;  %v2216_v18 = vpop.f32.mrb[55].mxu1  ;;  %v7907_v32 = vpop.permute.xlu1 %3561 }
 0x5bc   :  { %2293 = vrot.lane.b32.xlu0 %v2216_v18, %s5978_s28  ;;  %v7909_v18 = vpop.permute.xlu0 %3551 }
 0x5c6   :  { %v5340_v46 = vpop.f32.mrb[56].mxu1 }
 0x5c7   :  { %2299 = vrot.lane.b32.xlu1 %v5340_v46, %s5978_s28  ;;  %v2226_v42 = vpop.f32.mrb[57].mxu1  ;;  %v7911_v46 = vpop.permute.xlu1 %3565 }
 0x5c8   :  { %2297 = vrot.lane.b32.xlu0 %v2226_v42, %s5978_s28  ;;  %9039 = vst [vmem:[#allocation29_spill] sm:$0xff] %v7911_v46  ;;  %v7913_v42 = vpop.permute.xlu0 %3555  ;;  %v9055_v46 = vld [vmem:[#allocation7_spill] sm:$0xff] }
 0x5ca   :  { %v5343_v28 = vpop.f32.mrb[58].mxu1 }
 0x5cb   :  { %2303 = vrot.lane.b32.xlu1 %v5343_v28, %s5978_s28  ;;  %v2236_v47 = vpop.f32.mrb[59].mxu1  ;;  %v7915_v28 = vpop.permute.xlu1 %3569 }
 0x5cc   :  { %2301 = vrot.lane.b32.xlu0 %v2236_v47, %s5978_s28  ;;  %9040 = vst [vmem:[#allocation27_spill] sm:$0xff] %v7915_v28  ;;  %v7917_v47 = vpop.permute.xlu0 %3559 }
 0x5cd   :  { %9041 = vst [vmem:[#allocation30_spill] sm:$0xff] %v7917_v47 }
 0x5d6   :  { %v5346_v61 = vpop.f32.mrb[60].mxu1 }
 0x5d7   :  { %2307 = vrot.lane.b32.xlu1 %v5346_v61, %s5978_s28  ;;  %v2246_v58 = vpop.f32.mrb[61].mxu1 }
 0x5d8   :  { %2305 = vrot.lane.b32.xlu0 %v2246_v58, %s5978_s28  ;;  %v7921_v58 = vpop.permute.xlu0 %3563 }
 0x5d9   :  { %9042 = vst [vmem:[#allocation28_spill] sm:$0xff] %v7921_v58 }
 0x5da   :  { %v5349_v62 = vpop.f32.mrb[62].mxu1 }
 0x5db   :  { %2311 = vrot.lane.b32.xlu1 %v5349_v62, %s5978_s28  ;;  %v2256_v60 = vpop.f32.mrb[63].mxu1 }
 0x5dc   :  { %2309 = vrot.lane.b32.xlu0 %v2256_v60, %s5978_s28  ;;  %v7925_v60 = vpop.permute.xlu0 %3567 }
 0x5dd   :  { %9043 = vst [vmem:[#allocation31_spill] sm:$0xff] %v7925_v60 }
 0x5de   :  { %v5386_v19 = vpop.f32.mrb[64].mxu1 }
 0x5df   :  { %2677 = vrot.lane.b32.xlu1 %v5386_v19, %s5978_s28  ;;  %v2580_v11 = vpop.f32.mrb[65].mxu1 }
 0x5e0   :  { %2675 = vrot.lane.b32.xlu0 %v2580_v11, %s5978_s28 }
 0x5e2   :  { %v5389_v16 = vpop.f32.mrb[66].mxu1 }
 0x5e3   :  { %2681 = vrot.lane.b32.xlu1 %v5389_v16, %s5978_s28  ;;  %v2590_v59 = vpop.f32.mrb[67].mxu1 }
 0x5e4   :  { %2679 = vrot.lane.b32.xlu0 %v2590_v59, %s5978_s28 }
 0x5e6   :  { %v5392_v26 = vpop.f32.mrb[68].mxu1 }
 0x5e7   :  { %2685 = vrot.lane.b32.xlu1 %v5392_v26, %s5978_s28  ;;  %v2600_v43 = vpop.f32.mrb[69].mxu1 }
 0x5e8   :  { %2683 = vrot.lane.b32.xlu0 %v2600_v43, %s5978_s28 }
 0x5ea   :  { %v5395_v41 = vpop.f32.mrb[70].mxu1 }
 0x5eb   :  { %2689 = vrot.lane.b32.xlu1 %v5395_v41, %s5978_s28  ;;  %v2610_v1 = vpop.f32.mrb[71].mxu1 }
 0x5ec   :  { %2687 = vrot.lane.b32.xlu0 %v2610_v1, %s5978_s28 }
 0x5ee   :  { %v5398_v23 = vpop.f32.mrb[72].mxu1 }
 0x5ef   :  { %2693 = vrot.lane.b32.xlu1 %v5398_v23, %s5978_s28  ;;  %v2620_v8 = vpop.f32.mrb[73].mxu1 }
 0x5f0   :  { %2691 = vrot.lane.b32.xlu0 %v2620_v8, %s5978_s28 }
 0x5f2   :  { %v5401_v57 = vpop.f32.mrb[74].mxu1 }
 0x5f3   :  { %2697 = vrot.lane.b32.xlu1 %v5401_v57, %s5978_s28  ;;  %v2630_v33 = vpop.f32.mrb[75].mxu1 }
 0x5f4   :  { %2695 = vrot.lane.b32.xlu0 %v2630_v33, %s5978_s28 }
 0x5f6   :  { %v5404_v22 = vpop.f32.mrb[76].mxu1 }
 0x5f7   :  { %2701 = vrot.lane.b32.xlu1 %v5404_v22, %s5978_s28  ;;  %v2640_v10 = vpop.f32.mrb[77].mxu1 }
 0x5f8   :  { %2699 = vrot.lane.b32.xlu0 %v2640_v10, %s5978_s28 }
 0x5fa   :  { %v5407_v17 = vpop.f32.mrb[78].mxu1 }
 0x5fb   :  { %2705 = vrot.lane.b32.xlu1 %v5407_v17, %s5978_s28  ;;  %v2650_v30 = vpop.f32.mrb[79].mxu1 }
 0x5fc   :  { %2703 = vrot.lane.b32.xlu0 %v2650_v30, %s5978_s28 }
 0x61a   :  { %v7919_v61 = vpop.permute.xlu1 %2283 }
 0x61e   :  { %v7923_v62 = vpop.permute.xlu1 %2281 }
 0x61f   :  { %v7929_v11 = vpop.permute.xlu0 %2285 }
 0x622   :  { %v7927_v19 = vpop.permute.xlu1 %2287 }
 0x629   :  { %v7931_v16 = vpop.permute.xlu1 %2291 }
 0x62a   :  { %v7933_v59 = vpop.permute.xlu0 %2289 }
 0x62d   :  { %v7935_v26 = vpop.permute.xlu1 %2295 }
 0x62e   :  { %v7937_v43 = vpop.permute.xlu0 %2293 }
 0x637   :  { %v5444_v35 = vpop.f32.mrb[80].mxu1 }
 0x638   :  { %3071 = vrot.lane.b32.xlu1 %v5444_v35, %s5978_s28  ;;  %v2974_v39 = vpop.f32.mrb[81].mxu1 }
 0x639   :  { %3069 = vrot.lane.b32.xlu0 %v2974_v39, %s5978_s28  ;;  %v7939_v1 = vpop.permute.xlu1 %2299 }
 0x63a   :  { %v7942_v8 = vpop.permute.xlu0 %2297 }
 0x63b   :  { %v5447_v37 = vpop.f32.mrb[82].mxu1 }
 0x63c   :  { %3075 = vrot.lane.b32.xlu1 %v5447_v37, %s5978_s28  ;;  %v2984_v55 = vpop.f32.mrb[83].mxu1 }
 0x63d   :  { %3073 = vrot.lane.b32.xlu0 %v2984_v55, %s5978_s28  ;;  %v7947_v22 = vpop.permute.xlu1 %2303 }
 0x63e   :  { %v7949_v10 = vpop.permute.xlu0 %2301 }
 0x63f   :  { %v5450_v4 = vpop.f32.mrb[84].mxu1 }
 0x640   :  { %3079 = vrot.lane.b32.xlu1 %v5450_v4, %s5978_s28  ;;  %v2994_v45 = vpop.f32.mrb[85].mxu1 }
 0x641   :  { %3077 = vrot.lane.b32.xlu0 %v2994_v45, %s5978_s28 }
 0x643   :  { %v5453_v21 = vpop.f32.mrb[86].mxu1 }
 0x644   :  { %3083 = vrot.lane.b32.xlu1 %v5453_v21, %s5978_s28  ;;  %v3004_v50 = vpop.f32.mrb[87].mxu1  ;;  %v5484_v48 = vpop.f32.mrb[96].mxu0 }
 0x645   :  { %3081 = vrot.lane.b32.xlu0 %v3004_v50, %s5978_s28  ;;  %v3191_v2 = vpop.f32.mrb[97].mxu0 }
 0x646   :  { %v5485_v44 = vpop.f32.mrb[98].mxu0  ;;  %5500 = vmatprep.mubr.msk.f32.mxu1 %vm462_vm1, %v3191_v2 }
 0x647   :  { %v5456_v52 = vpop.f32.mrb[88].mxu1  ;;  %v3194_v13 = vpop.f32.mrb[99].mxu0 }
 0x648   :  { %3087 = vrot.lane.b32.xlu1 %v5456_v52, %s5978_s28  ;;  %v3014_v14 = vpop.f32.mrb[89].mxu1  ;;  %5501 = vmatmul.mubr.msk.f32.vlgmr.msra.gmra.mrb[96].mxu1 %vm462_vm1, %v3194_v13 }
 0x649   :  { %3085 = vrot.lane.b32.xlu0 %v3014_v14, %s5978_s28  ;;  %5503 = vmatprep.mubr.msk.f32.mxu1 %vm462_vm1, %v5484_v48  ;;  %v7953_v35 = vpop.permute.xlu1 %2307 }
 0x64a   :  { %v7955_v39 = vpop.permute.xlu0 %2305 }
 0x64b   :  { %v5459_v7 = vpop.f32.mrb[90].mxu1 }
 0x64c   :  { %3091 = vrot.lane.b32.xlu1 %v5459_v7, %s5978_s28  ;;  %v3024_v27 = vpop.f32.mrb[91].mxu1  ;;  %v5488_v40 = vpop.f32.mrb[100].mxu0  ;;  %5504 = vmatmul.mubr.msk.f32.gmra.mrb[98].mxu1 %vm462_vm1, %v5485_v44 }
 0x64d   :  { %3089 = vrot.lane.b32.xlu0 %v3024_v27, %s5978_s28  ;;  %v3207_v5 = vpop.f32.mrb[101].mxu0  ;;  %v7959_v45 = vpop.permute.xlu1 %2311 }
 0x64e   :  { %v5489_v49 = vpop.f32.mrb[102].mxu0  ;;  %5506 = vmatprep.mubr.msk.f32.mxu1 %vm462_vm1, %v3207_v5  ;;  %9044 = vst [vmem:[#allocation6_spill] sm:$0xff] %v7959_v45  ;;  %v7962_v50 = vpop.permute.xlu0 %2309 }
 0x64f   :  { %v5462_v54 = vpop.f32.mrb[92].mxu1  ;;  %v3210_v6 = vpop.f32.mrb[103].mxu0  ;;  %9045 = vst [vmem:[#allocation23_spill] sm:$0xff] %v7962_v50  ;;  %v9054_v50 = vld [vmem:[#allocation8_spill] sm:$0xff] }
 0x650   :  { %3095 = vrot.lane.b32.xlu1 %v5462_v54, %s5978_s28  ;;  %v3034_v25 = vpop.f32.mrb[93].mxu1  ;;  %5507 = vmatmul.mubr.msk.f32.gmra.mrb[100].mxu1 %vm462_vm1, %v3210_v6  ;;  %v5974_v54 = vld [vmem:[%s8662_s1 + $0x70] sm:$0xff]  ;;  %v2332_v45 = vadd.f32 %v7927_v19, %v9054_v50 }
 0x651   :  { %3093 = vrot.lane.b32.xlu0 %v3034_v25, %s5978_s28  ;;  %5509 = vmatprep.mubr.msk.f32.mxu1 %vm462_vm1, %v5488_v40  ;;  %v2678_v44 = vpop.permute.xlu1 %2677 }
 0x652   :  { %v2676_v52 = vpop.permute.xlu0 %2675 }
 0x653   :  { %v5465_v38 = vpop.f32.mrb[94].mxu1 }
 0x654   :  { %3099 = vrot.lane.b32.xlu1 %v5465_v38, %s5978_s28  ;;  %v3044_v3 = vpop.f32.mrb[95].mxu1  ;;  %v5492_v56 = vpop.f32.mrb[104].mxu0  ;;  %5510 = vmatmul.mubr.msk.f32.gmra.mrb[102].mxu1 %vm462_vm1, %v5489_v49  ;;  %v5973_v49 = vld [vmem:[%s8662_s1 + $0x78] sm:$0xff]  ;;  %s5988_s1 = smov 32  }
 0x655   :  { %3097 = vrot.lane.b32.xlu0 %v3044_v3, %s5978_s28  ;;  %v3223_v20 = vpop.f32.mrb[105].mxu0  ;;  %v2682_v27 = vpop.permute.xlu1 %2681 }
 0x656   :  { %v5493_v15 = vpop.f32.mrb[106].mxu0  ;;  %5512 = vmatprep.mubr.msk.f32.mxu1 %vm462_vm1, %v3223_v20  ;;  %v2680_v5 = vpop.permute.xlu0 %2679 }
 0x657   :  { %v3226_v9 = vpop.f32.mrb[107].mxu0 }
 0x658   :  { %5513 = vmatmul.mubr.msk.f32.gmra.mrb[104].mxu1 %vm462_vm1, %v3226_v9 }
 0x659   :  { %5515 = vmatprep.mubr.msk.f32.mxu1 %vm462_vm1, %v5492_v56  ;;  %v2686_v6 = vpop.permute.xlu1 %2685 }
 0x65a   :  { %v2684_v25 = vpop.permute.xlu0 %2683 }
 0x65c   :  { %v5496_v53 = vpop.f32.mrb[108].mxu0  ;;  %5516 = vmatmul.mubr.msk.f32.gmra.mrb[106].mxu1 %vm462_vm1, %v5493_v15 }
 0x65d   :  { %v3239_v51 = vpop.f32.mrb[109].mxu0  ;;  %v2690_v38 = vpop.permute.xlu1 %2689 }
 0x65e   :  { %v5497_v31 = vpop.f32.mrb[110].mxu0  ;;  %5518 = vmatprep.mubr.msk.f32.mxu1 %vm462_vm1, %v3239_v51  ;;  %v7979_v3 = vpop.permute.xlu0 %2687 }
 0x65f   :  { %v3242_v63 = vpop.f32.mrb[111].mxu0 }
 0x660   :  { %5519 = vmatmul.mubr.msk.f32.gmra.mrb[108].mxu1 %vm462_vm1, %v3242_v63 }
 0x661   :  { %5521 = vmatprep.mubr.msk.f32.mxu1 %vm462_vm1, %v5496_v53  ;;  %v7981_v56 = vpop.permute.xlu1 %2693 }
 0x662   :  { %v7983_v20 = vpop.permute.xlu0 %2691 }
 0x664   :  { %5522 = vmatmul.mubr.msk.f32.gmra.mrb[110].mxu1 %vm462_vm1, %v5497_v31 }
 0x665   :  { %v7985_v15 = vpop.permute.xlu1 %2697 }
 0x666   :  { %v7987_v9 = vpop.permute.xlu0 %2695 }
 0x669   :  { %v7989_v53 = vpop.permute.xlu1 %2701 }
 0x66a   :  { %9046 = vst [vmem:[#allocation45_spill] sm:$0xff] %v7989_v53  ;;  %v7991_v51 = vpop.permute.xlu0 %2699  ;;  %v2726_v53 = vadd.f32 %v2682_v27, %v2332_v45 }
 0x66b   :  { %9047 = vst [vmem:[#allocation38_spill] sm:$0xff] %v7991_v51 }
 0x66d   :  { %v7993_v31 = vpop.permute.xlu1 %2705 }
 0x66e   :  { %9048 = vst [vmem:[#allocation32_spill] sm:$0xff] %v7993_v31  ;;  %v7995_v63 = vpop.permute.xlu0 %2703 }
 0x66f   :  { %9049 = vst [vmem:[#allocation41_spill] sm:$0xff] %v7995_v63 }
 0x71b   :  { %v5502_v41 = vpop.f32.mrb[96].mxu1 }
 0x71c   :  { %3465 = vrot.lane.b32.xlu1 %v5502_v41, %s5978_s28  ;;  %v3368_v23 = vpop.f32.mrb[97].mxu1  ;;  %v3072_v41 = vpop.permute.xlu1 %3071 }
 0x71d   :  { %3463 = vrot.lane.b32.xlu0 %v3368_v23, %s5978_s28  ;;  %v3070_v23 = vpop.permute.xlu0 %3069 }
 0x71f   :  { %v5505_v57 = vpop.f32.mrb[98].mxu1 }
 0x720   :  { %3469 = vrot.lane.b32.xlu1 %v5505_v57, %s5978_s28  ;;  %v3378_v33 = vpop.f32.mrb[99].mxu1  ;;  %v3076_v57 = vpop.permute.xlu1 %3075 }
 0x721   :  { %3467 = vrot.lane.b32.xlu0 %v3378_v33, %s5978_s28  ;;  %v3074_v33 = vpop.permute.xlu0 %3073 }
 0x723   :  { %v5508_v17 = vpop.f32.mrb[100].mxu1 }
 0x724   :  { %3473 = vrot.lane.b32.xlu1 %v5508_v17, %s5978_s28  ;;  %v3388_v30 = vpop.f32.mrb[101].mxu1  ;;  %v3080_v17 = vpop.permute.xlu1 %3079 }
 0x725   :  { %3471 = vrot.lane.b32.xlu0 %v3388_v30, %s5978_s28  ;;  %v3078_v30 = vpop.permute.xlu0 %3077 }
 0x727   :  { %v5511_v37 = vpop.f32.mrb[102].mxu1 }
 0x728   :  { %3477 = vrot.lane.b32.xlu1 %v5511_v37, %s5978_s28  ;;  %v3398_v55 = vpop.f32.mrb[103].mxu1  ;;  %v3084_v37 = vpop.permute.xlu1 %3083 }
 0x729   :  { %3475 = vrot.lane.b32.xlu0 %v3398_v55, %s5978_s28  ;;  %v3082_v55 = vpop.permute.xlu0 %3081 }
 0x72b   :  { %v5514_v4 = vpop.f32.mrb[104].mxu1 }
 0x72c   :  { %3481 = vrot.lane.b32.xlu1 %v5514_v4, %s5978_s28  ;;  %v3408_v21 = vpop.f32.mrb[105].mxu1  ;;  %v7997_v4 = vpop.permute.xlu1 %3087 }
 0x72d   :  { %3479 = vrot.lane.b32.xlu0 %v3408_v21, %s5978_s28  ;;  %v7999_v21 = vpop.permute.xlu0 %3085 }
 0x72f   :  { %v5517_v48 = vpop.f32.mrb[106].mxu1 }
 0x730   :  { %3485 = vrot.lane.b32.xlu1 %v5517_v48, %s5978_s28  ;;  %v3418_v2 = vpop.f32.mrb[107].mxu1  ;;  %v8001_v48 = vpop.permute.xlu1 %3091 }
 0x731   :  { %3483 = vrot.lane.b32.xlu0 %v3418_v2, %s5978_s28  ;;  %v8003_v2 = vpop.permute.xlu0 %3089 }
 0x733   :  { %v5520_v13 = vpop.f32.mrb[108].mxu1 }
 0x734   :  { %3489 = vrot.lane.b32.xlu1 %v5520_v13, %s5978_s28  ;;  %v3428_v14 = vpop.f32.mrb[109].mxu1  ;;  %v8005_v13 = vpop.permute.xlu1 %3095 }
 0x735   :  { %3487 = vrot.lane.b32.xlu0 %v3428_v14, %s5978_s28  ;;  %9050 = vst [vmem:[#allocation43_spill] sm:$0xff] %v8005_v13  ;;  %v8007_v14 = vpop.permute.xlu0 %3093  ;;  %v2331_v13 = vadd.f32 %v7929_v11, %v9055_v46 }
 0x736   :  { %9051 = vst [vmem:[#allocation40_spill] sm:$0xff] %v8007_v14 }
 0x737   :  { %v5523_v7 = vpop.f32.mrb[110].mxu1  ;;  %v2725_v47 = vadd.f32 %v2680_v5, %v2331_v13 }
 0x738   :  { %3493 = vrot.lane.b32.xlu1 %v5523_v7, %s5978_s28  ;;  %v3438_v40 = vpop.f32.mrb[111].mxu1  ;;  %v9052_v7 = vld [vmem:[#allocation4_spill] sm:$0xff]  ;;  %v8013_v60 = vpop.permute.xlu1 %3099 }
 0x739   :  { %3491 = vrot.lane.b32.xlu0 %v3438_v40, %s5978_s28  ;;  %v2330_v40 = vadd.f32 %v7919_v61, %v9052_v7  ;;  %v8015_v28 = vpop.permute.xlu0 %3097  ;;  %v3119_v50 = vadd.f32 %v3074_v33, %v2725_v47 }
 0x73b   :  { %v2724_v63 = vadd.f32 %v2678_v44, %v2330_v40  ;;  %v3120_v40 = vadd.f32 %v3076_v57, %v2726_v53  ;;  %v9059_v53 = vld [vmem:[#allocation21_spill] sm:$0xff] }
 0x73c   :  { %3573 = vrot.lane.b32.xlu1 %v5973_v49, %s5978_s28  ;;  %v9053_v49 = vld [vmem:[#allocation3_spill] sm:$0xff] }
 0x73d   :  { %3571 = vrot.lane.b32.xlu0 %v5974_v54, %s5978_s28  ;;  %v2329_v54 = vadd.f32 %v7923_v62, %v9053_v49  ;;  %v3118_v58 = vadd.f32 %v3072_v41, %v2724_v63  ;;  %v9056_v49 = vld [vmem:[#allocation26_spill] sm:$0xff] }
 0x73e   :  { %v2334_v44 = vadd.f32 %v7931_v16, %v9056_v49 }
 0x73f   :  { %v2723_v31 = vadd.f32 %v2676_v52, %v2329_v54  ;;  %v9057_v54 = vld [vmem:[#allocation25_spill] sm:$0xff] }
 0x740   :  { %v2333_v19 = vadd.f32 %v7933_v59, %v9057_v54  ;;  %v2728_v45 = vadd.f32 %v2686_v6, %v2334_v44  ;;  %v2335_v6 = vadd.f32 %v7937_v43, %v9059_v53  ;;  %v9071_v53 = vld [vmem:[#allocation40_spill] sm:$0xff] }
 0x741   :  { %v3117_v14 = vadd.f32 %v3070_v23, %v2723_v31 }
 0x742   :  { %v2727_v16 = vadd.f32 %v2684_v25, %v2333_v19  ;;  %v3122_v47 = vadd.f32 %v3080_v17, %v2728_v45  ;;  %v9061_v17 = vld [vmem:[#allocation12_spill] sm:$0xff]  ;;  %v9066_v45 = vld [vmem:[#allocation30_spill] sm:$0xff] }
 0x78e   :  { %v3466_v51 = vpop.permute.xlu1 %3465 }
 0x78f   :  { %v3512_v61 = vadd.f32 %v3466_v51, %v3118_v58  ;;  %v3464_v7 = vpop.permute.xlu0 %3463  ;;  %v3121_v51 = vadd.f32 %v3078_v30, %v2727_v16 }
 0x790   :  { %v3511_v62 = vadd.f32 %v3464_v7, %v3117_v14 }
 0x791   :  { %v8024_v52 = vadd.f32 %v7895_v34, %v3512_v61  ;;  %v9058_v34 = vld [vmem:[#allocation22_spill] sm:$0xff] }
 0x792   :  { %v8029_v46 = vadd.f32 %v7901_v24, %v3511_v62  ;;  %v3470_v11 = vpop.permute.xlu1 %3469  ;;  %v2336_v59 = vadd.f32 %v7935_v26, %v9058_v34  ;;  %v2729_v26 = vadd.f32 %v7979_v3, %v2335_v6 }
 0x793   :  { %v3514_v58 = vadd.f32 %v3470_v11, %v3120_v40  ;;  %3625 = vrot.lane.b32.xlu1 %v8024_v52, %s5988_s1  ;;  %v3468_v27 = vpop.permute.xlu0 %3467 }
 0x794   :  { %v3513_v5 = vadd.f32 %v3468_v27, %v3119_v50  ;;  %3623 = vrot.lane.b32.xlu0 %v8029_v46, %s5988_s1  ;;  %v2730_v25 = vadd.f32 %v2690_v38, %v2336_v59  ;;  %v2337_v38 = vadd.f32 %v7942_v8, %v9061_v17  ;;  %v3123_v30 = vadd.f32 %v3082_v55, %v2729_v26  ;;  %v9067_v27 = vld [vmem:[#allocation45_spill] sm:$0xff] }
 0x795   :  { %v8038_v24 = vadd.f32 %v7897_v36, %v3514_v58  ;;  %v9060_v36 = vld [vmem:[#allocation14_spill] sm:$0xff] }
 0x796   :  { %v8043_v31 = vadd.f32 %v7905_v29, %v3513_v5  ;;  %v3474_v63 = vpop.permute.xlu1 %3473  ;;  %v2338_v43 = vadd.f32 %v7939_v1, %v9060_v36  ;;  %v3124_v33 = vadd.f32 %v3084_v37, %v2730_v25  ;;  %v2731_v1 = vadd.f32 %v7983_v20, %v2337_v38 }
 0x797   :  { %v3516_v41 = vadd.f32 %v3474_v63, %v3122_v47  ;;  %3629 = vrot.lane.b32.xlu1 %v8038_v24, %s5988_s1  ;;  %v3472_v23 = vpop.permute.xlu0 %3471 }
 0x798   :  { %v3515_v57 = vadd.f32 %v3472_v23, %v3121_v51  ;;  %3627 = vrot.lane.b32.xlu0 %v8043_v31, %s5988_s1  ;;  %v2732_v3 = vadd.f32 %v7981_v56, %v2338_v43  ;;  %v9063_v56 = vld [vmem:[#allocation11_spill] sm:$0xff]  ;;  %v3125_v49 = vadd.f32 %v7999_v21, %v2731_v1  ;;  %v9072_v51 = vld [vmem:[#allocation28_spill] sm:$0xff]  ;;  %v9074_v23 = vld [vmem:[#allocation6_spill] sm:$0xff] }
 0x799   :  { %v8053_v29 = vadd.f32 %v7899_v0, %v3516_v41  ;;  %v9062_v0 = vld [vmem:[#allocation13_spill] sm:$0xff]  ;;  %v2339_v62 = vadd.f32 %v7949_v10, %v9063_v56  ;;  %v9064_v10 = vld [vmem:[#allocation20_spill] sm:$0xff]  ;;  %v9073_v41 = vld [vmem:[#allocation19_spill] sm:$0xff] }
 0x79a   :  { %v8058_v13 = vadd.f32 %v7909_v18, %v3515_v57  ;;  %v3478_v14 = vpop.permute.xlu1 %3477  ;;  %v2340_v8 = vadd.f32 %v7947_v22, %v9062_v0  ;;  %v3126_v18 = vadd.f32 %v7997_v4, %v2732_v3  ;;  %v2342_v21 = vadd.f32 %v7953_v35, %v9064_v10  ;;  %v9075_v43 = vld [vmem:[#allocation17_spill] sm:$0xff]  ;;  %v9078_v3 = vld [vmem:[#allocation27_spill] sm:$0xff] }
 0x79b   :  { %v3518_v61 = vadd.f32 %v3478_v14, %v3124_v33  ;;  %3633 = vrot.lane.b32.xlu1 %v8053_v29, %s5988_s1  ;;  %v3476_v7 = vpop.permute.xlu0 %3475  ;;  %v2733_v4 = vadd.f32 %v7987_v9, %v2339_v62  ;;  %v2344_v26 = vadd.f32 %v9074_v23, %v9073_v41  ;;  %v9076_v33 = vld [vmem:[#allocation23_spill] sm:$0xff] }
 0x79c   :  { %v3517_v37 = vadd.f32 %v3476_v7, %v3123_v30  ;;  %3631 = vrot.lane.b32.xlu0 %v8058_v13, %s5988_s1  ;;  %v2734_v40 = vadd.f32 %v7985_v15, %v2340_v8  ;;  %v9065_v15 = vld [vmem:[#allocation18_spill] sm:$0xff]  ;;  %v2736_v16 = vadd.f32 %v9067_v27, %v2342_v21  ;;  %v2343_v17 = vadd.f32 %v9076_v33, %v9075_v43  ;;  %v9077_v30 = vld [vmem:[#allocation32_spill] sm:$0xff]  ;;  %v9079_v7 = vld [vmem:[#allocation41_spill] sm:$0xff] }
 0x79d   :  { %v8070_v55 = vadd.f32 %v7903_v12, %v3518_v61  ;;  %v2341_v50 = vadd.f32 %v7955_v39, %v9065_v15  ;;  %v3127_v11 = vadd.f32 %v8003_v2, %v2733_v4  ;;  %v9069_v39 = vld [vmem:[#allocation43_spill] sm:$0xff]  ;;  %v9070_v2 = vld [vmem:[#allocation29_spill] sm:$0xff]  ;;  %v2738_v14 = vadd.f32 %v9077_v30, %v2344_v26 }
 0x79e   :  { %v8076_v44 = vadd.f32 %v7913_v42, %v3517_v37  ;;  %v3482_v20 = vpop.permute.xlu1 %3481  ;;  %v3128_v42 = vadd.f32 %v8001_v48, %v2734_v40  ;;  %v9068_v48 = vld [vmem:[#allocation38_spill] sm:$0xff]  ;;  %v3130_v59 = vadd.f32 %v9069_v39, %v2736_v16  ;;  %v2737_v1 = vadd.f32 %v9079_v7, %v2343_v17  ;;  %v9080_v37 = vld [vmem:[#allocation31_spill] sm:$0xff] }
 0x79f   :  { %v3520_v54 = vadd.f32 %v3482_v20, %v3126_v18  ;;  %3637 = vrot.lane.b32.xlu1 %v8070_v55, %s5988_s1  ;;  %v3480_v22 = vpop.permute.xlu0 %3479  ;;  %v2735_v34 = vadd.f32 %v9068_v48, %v2341_v50  ;;  %v3132_v18 = vadd.f32 %v8013_v60, %v2738_v14 }
 0x7a0   :  { %v3519_v12 = vadd.f32 %v3480_v22, %v3125_v49  ;;  %3635 = vrot.lane.b32.xlu0 %v8076_v44, %s5988_s1  ;;  %v3131_v62 = vadd.f32 %v8015_v28, %v2737_v1 }
 0x7a1   :  { %v8088_v19 = vadd.f32 %v7907_v32, %v3520_v54  ;;  %v3129_v6 = vadd.f32 %v9071_v53, %v2735_v34 }
 0x7a2   :  { %v8094_v58 = vadd.f32 %v9066_v45, %v3519_v12  ;;  %v3486_v9 = vpop.permute.xlu1 %3485 }
 0x7a3   :  { %v3522_v5 = vadd.f32 %v3486_v9, %v3128_v42  ;;  %3641 = vrot.lane.b32.xlu1 %v8088_v19, %s5988_s1  ;;  %v3484_v35 = vpop.permute.xlu0 %3483 }
 0x7a4   :  { %v3521_v32 = vadd.f32 %v3484_v35, %v3127_v11  ;;  %3639 = vrot.lane.b32.xlu0 %v8094_v58, %s5988_s1 }
 0x7a5   :  { %v8104_v47 = vadd.f32 %v9070_v2, %v3522_v5 }
 0x7a6   :  { %v8108_v63 = vadd.f32 %v9072_v51, %v3521_v32  ;;  %v3490_v25 = vpop.permute.xlu1 %3489 }
 0x7a7   :  { %v3524_v57 = vadd.f32 %v3490_v25, %v3130_v59  ;;  %3645 = vrot.lane.b32.xlu1 %v8104_v47, %s5988_s1  ;;  %v3488_v36 = vpop.permute.xlu0 %3487 }
 0x7a8   :  { %v3523_v38 = vadd.f32 %v3488_v36, %v3129_v6  ;;  %3643 = vrot.lane.b32.xlu0 %v8108_v63, %s5988_s1 }
 0x7a9   :  { %v8120_v61 = vadd.f32 %v9078_v3, %v3524_v57 }
 0x7aa   :  { %v8124_v0 = vadd.f32 %v9080_v37, %v3523_v38  ;;  %v3494_v8 = vpop.permute.xlu1 %3493 }
 0x7ab   :  { %3649 = vrot.lane.b32.xlu1 %v8120_v61, %s5988_s1  ;;  %v3492_v56 = vpop.permute.xlu0 %3491  ;;  %v3526_v49 = vadd.f32 %v3494_v8, %v3132_v18 }
 0x7ac   :  { %3647 = vrot.lane.b32.xlu0 %v8124_v0, %s5988_s1  ;;  %v3525_v20 = vadd.f32 %v3492_v56, %v3131_v62 }
 0x7ae   :  { %v3574_v40 = vpop.permute.xlu1 %3573 }
 0x7af   :  { %v8132_v54 = vadd.f32 %v3574_v40, %v3526_v49  ;;  %v3572_v22 = vpop.permute.xlu0 %3571 }
 0x7b0   :  { %v8134_v4 = vadd.f32 %v3572_v22, %v3525_v20 }
 0x7b1   :  { %3653 = vrot.lane.b32.xlu1 %v8132_v54, %s5988_s1 }
 0x7b2   :  { %3651 = vrot.lane.b32.xlu0 %v8134_v4, %s5988_s1 }
 0x805   :  { %v3626_v60 = vpop.permute.xlu1 %3625 }
 0x806   :  { %v3624_v12 = vpop.permute.xlu0 %3623  ;;  %v3674_v28 = vsel %vm75_vm0, %v3626_v60, 0.0 }
 0x807   :  { %3675 = vadd.xlane.f32.xlu1 %v3674_v28  ;;  %v3671_v10 = vsel %vm75_vm0, %v3624_v12, 0.0 }
 0x808   :  { %3672 = vadd.xlane.f32.xlu0 %v3671_v10 }
 0x809   :  { %v3630_v21 = vpop.permute.xlu1 %3629 }
 0x80a   :  { %v3628_v42 = vpop.permute.xlu0 %3627  ;;  %v3680_v15 = vsel %vm75_vm0, %v3630_v21, 0.0 }
 0x80b   :  { %v3677_v45 = vsel %vm75_vm0, %v3628_v42, 0.0 }
 0x80c   :  { %3681 = vadd.xlane.f32.xlu0 %v3680_v15 }
 0x80d   :  { %v3634_v50 = vpop.permute.xlu1 %3633 }
 0x80e   :  { %v3632_v11 = vpop.permute.xlu0 %3631  ;;  %v3686_v5 = vsel %vm75_vm0, %v3634_v50, 0.0 }
 0x80f   :  { %v3683_v9 = vsel %vm75_vm0, %v3632_v11, 0.0 }
 0x810   :  { %3678 = vadd.xlane.f32.xlu0 %v3677_v45  ;;  %3684 = vadd.xlane.f32.xlu1 %v3683_v9 }
 0x811   :  { %v3638_v27 = vpop.permute.xlu1 %3637 }
 0x812   :  { %v3636_v16 = vpop.permute.xlu0 %3635  ;;  %v3692_v32 = vsel %vm75_vm0, %v3638_v27, 0.0 }
 0x813   :  { %v3689_v35 = vsel %vm75_vm0, %v3636_v16, 0.0 }
 0x814   :  { %3687 = vadd.xlane.f32.xlu0 %v3686_v5  ;;  %3690 = vadd.xlane.f32.xlu1 %v3689_v35 }
 0x815   :  { %v3642_v48 = vpop.permute.xlu1 %3641 }
 0x816   :  { %v3640_v34 = vpop.permute.xlu0 %3639  ;;  %v3698_v53 = vsel %vm75_vm0, %v3642_v48, 0.0 }
 0x817   :  { %v3695_v39 = vsel %vm75_vm0, %v3640_v34, 0.0 }
 0x818   :  { %3693 = vadd.xlane.f32.xlu0 %v3692_v32  ;;  %3696 = vadd.xlane.f32.xlu1 %v3695_v39 }
 0x819   :  { %v3646_v59 = vpop.permute.xlu1 %3645 }
 0x81a   :  { %v3644_v2 = vpop.permute.xlu0 %3643  ;;  %v3704_v25 = vsel %vm75_vm0, %v3646_v59, 0.0 }
 0x81b   :  { %v3701_v6 = vsel %vm75_vm0, %v3644_v2, 0.0 }
 0x81c   :  { %3699 = vadd.xlane.f32.xlu0 %v3698_v53  ;;  %3702 = vadd.xlane.f32.xlu1 %v3701_v6 }
 0x81d   :  { %v3650_v23 = vpop.permute.xlu1 %3649 }
 0x81e   :  { %v3648_v51 = vpop.permute.xlu0 %3647  ;;  %v3710_v26 = vsel %vm75_vm0, %v3650_v23, 0.0 }
 0x81f   :  { %v3707_v41 = vsel %vm75_vm0, %v3648_v51, 0.0 }
 0x820   :  { %3705 = vadd.xlane.f32.xlu0 %v3704_v25  ;;  %3708 = vadd.xlane.f32.xlu1 %v3707_v41 }
 0x823   :  { %v3654_v57 = vpop.permute.xlu1 %3653 }
 0x824   :  { %3711 = vadd.xlane.f32.xlu0 %v3710_v26  ;;  %v3652_v36 = vpop.permute.xlu0 %3651  ;;  %v3716_v33 = vsel %vm75_vm0, %v3654_v57, 0.0 }
 0x825   :  { %v3713_v43 = vsel %vm75_vm0, %v3652_v36, 0.0 }
 0x826   :  { %3714 = vadd.xlane.f32.xlu1 %v3713_v43 }
 0x828   :  { %3717 = vadd.xlane.f32.xlu0 %v3716_v33 }
 0x894   :  { %v3676_v17 = vpop.xlane.xlu1 %3675 }
 0x895   :  { %v3721_v38 = vmul.f32 0.03125, %v3676_v17  ;;  %v3673_v30 = vpop.xlane.xlu0 %3672 }
 0x896   :  { %v3720_v14 = vmul.f32 0.03125, %v3673_v30 }
 0x897   :  { %v8157_v3 = vsub.f32 %v8024_v52, %v3721_v38 }
 0x898   :  { %v8160_v7 = vsub.f32 %v8029_v46, %v3720_v14 }
 0x899   :  { %v3753_v1 = vmul.f32 %v8157_v3, %v8157_v3  ;;  %v3682_v37 = vpop.xlane.xlu0 %3681 }
 0x89a   :  { %v3752_v8 = vmul.f32 %v8160_v7, %v8160_v7  ;;  %v3723_v18 = vmul.f32 0.03125, %v3682_v37 }
 0x89b   :  { %3786 = vrot.lane.b32.xlu0 %v3753_v1, %s5988_s1 }
 0x89c   :  { %v8168_v56 = vsub.f32 %v8038_v24, %v3723_v18  ;;  %3784 = vrot.lane.b32.xlu1 %v3752_v8, %s5988_s1 }
 0x89d   :  { %v3685_v52 = vpop.xlane.xlu1 %3684  ;;  %v3679_v62 = vpop.xlane.xlu0 %3678 }
 0x89e   :  { %v3755_v46 = vmul.f32 %v8168_v56, %v8168_v56  ;;  %v3724_v49 = vmul.f32 0.03125, %v3685_v52  ;;  %v3722_v20 = vmul.f32 0.03125, %v3679_v62 }
 0x8a0   :  { %v8174_v40 = vsub.f32 %v8058_v13, %v3724_v49  ;;  %v8177_v22 = vsub.f32 %v8043_v31, %v3722_v20  ;;  %3790 = vrot.lane.b32.xlu1 %v3755_v46, %s5988_s1 }
 0x8a1   :  { %v3691_v60 = vpop.xlane.xlu1 %3690  ;;  %v3688_v24 = vpop.xlane.xlu0 %3687 }
 0x8a2   :  { %v3756_v12 = vmul.f32 %v8174_v40, %v8174_v40  ;;  %v3754_v28 = vmul.f32 %v8177_v22, %v8177_v22  ;;  %v3726_v10 = vmul.f32 0.03125, %v3691_v60  ;;  %v3725_v21 = vmul.f32 0.03125, %v3688_v24 }
 0x8a4   :  { %v8185_v42 = vsub.f32 %v8076_v44, %v3726_v10  ;;  %v8188_v13 = vsub.f32 %v8053_v29, %v3725_v21  ;;  %3792 = vrot.lane.b32.xlu0 %v3756_v12, %s5988_s1  ;;  %3788 = vrot.lane.b32.xlu1 %v3754_v28, %s5988_s1 }
 0x8a5   :  { %v3697_v31 = vpop.xlane.xlu1 %3696  ;;  %v3694_v15 = vpop.xlane.xlu0 %3693 }
 0x8a6   :  { %v3758_v50 = vmul.f32 %v8185_v42, %v8185_v42  ;;  %v3757_v11 = vmul.f32 %v8188_v13, %v8188_v13  ;;  %v3728_v45 = vmul.f32 0.03125, %v3697_v31  ;;  %v3727_v9 = vmul.f32 0.03125, %v3694_v15 }
 0x8a8   :  { %v8197_v44 = vsub.f32 %v8094_v58, %v3728_v45  ;;  %v8200_v29 = vsub.f32 %v8070_v55, %v3727_v9  ;;  %3796 = vrot.lane.b32.xlu0 %v3758_v50, %s5988_s1  ;;  %3794 = vrot.lane.b32.xlu1 %v3757_v11, %s5988_s1 }
 0x8a9   :  { %v3703_v27 = vpop.xlane.xlu1 %3702  ;;  %v3700_v16 = vpop.xlane.xlu0 %3699 }
 0x8aa   :  { %v3760_v5 = vmul.f32 %v8197_v44, %v8197_v44  ;;  %v3759_v35 = vmul.f32 %v8200_v29, %v8200_v29  ;;  %v3730_v48 = vmul.f32 0.03125, %v3703_v27  ;;  %v3729_v34 = vmul.f32 0.03125, %v3700_v16 }
 0x8ac   :  { %v8209_v58 = vsub.f32 %v8108_v63, %v3730_v48  ;;  %v8212_v55 = vsub.f32 %v8088_v19, %v3729_v34  ;;  %3800 = vrot.lane.b32.xlu0 %v3760_v5, %s5988_s1  ;;  %3798 = vrot.lane.b32.xlu1 %v3759_v35, %s5988_s1 }
 0x8ad   :  { %v3709_v32 = vpop.xlane.xlu1 %3708  ;;  %v3706_v39 = vpop.xlane.xlu0 %3705 }
 0x8ae   :  { %v3762_v59 = vmul.f32 %v8209_v58, %v8209_v58  ;;  %v3761_v2 = vmul.f32 %v8212_v55, %v8212_v55  ;;  %v3732_v53 = vmul.f32 0.03125, %v3709_v32  ;;  %v3731_v6 = vmul.f32 0.03125, %v3706_v39  ;;  %v9081_v39 = vld [vmem:[#allocation2_spill] sm:$0xff] }
 0x8b0   :  { %v8221_v63 = vsub.f32 %v8124_v0, %v3732_v53  ;;  %v8224_v19 = vsub.f32 %v8104_v47, %v3731_v6  ;;  %3804 = vrot.lane.b32.xlu0 %v3762_v59, %s5988_s1  ;;  %3802 = vrot.lane.b32.xlu1 %v3761_v2, %s5988_s1  ;;  %v3946_v59 = vsub.s32 1, %v9081_v39  ;;  %v8272_v2 = vld [vmem:[%s8663_s7] sm:$0xff]  ;;  %v3970_v6 = vsub.s32 2, %v9081_v39 }
 0x8b1   :  { %v3712_v51 = vpop.xlane.xlu0 %3711 }
 0x8b2   :  { %v3764_v25 = vmul.f32 %v8221_v63, %v8221_v63  ;;  %v3763_v41 = vmul.f32 %v8224_v19, %v8224_v19  ;;  %v3733_v23 = vmul.f32 0.03125, %v3712_v51  ;;  %v3947_v53 = vrot.slane %v8272_v2, %v3946_v59 }
 0x8b3   :  { %v3715_v26 = vpop.xlane.xlu1 %3714  ;;  %v3971_v51 = vrot.slane %v8272_v2, %v3970_v6 }
 0x8b4   :  { %v8233_v57 = vsub.f32 %v8120_v61, %v3733_v23  ;;  %v3734_v0 = vmul.f32 0.03125, %v3715_v26  ;;  %3808 = vrot.lane.b32.xlu0 %v3764_v25, %s5988_s1  ;;  %3806 = vrot.lane.b32.xlu1 %v3763_v41, %s5988_s1  ;;  %v5629_v25 = vld [vmem:[%s8666_s5] sm:$0xff]   ;;  %v5630_v41 = vld [vmem:[%s8666_s5 + $0x8] sm:$0xff]  }
 0x8b5   :  { %v3718_v47 = vpop.xlane.xlu0 %3717  ;;  %5524 = vmatprep.subr.bf16.mxu0 %v5629_v25 }
 0x8b6   :  { %v3765_v36 = vmul.f32 %v8233_v57, %v8233_v57  ;;  %v8240_v43 = vsub.f32 %v8134_v4, %v3734_v0  ;;  %v3735_v33 = vmul.f32 0.03125, %v3718_v47  ;;  %5525 = vmatpush3.bf16.msra.mxu0 %v5629_v25 }
 0x8b7   :  { %5526 = vmatprep.subr.bf16.mxu0 %v5630_v41 }
 0x8b8   :  { %v3766_v17 = vmul.f32 %v8240_v43, %v8240_v43  ;;  %v8245_v38 = vsub.f32 %v8132_v54, %v3735_v33  ;;  %3810 = vrot.lane.b32.xlu1 %v3765_v36, %s5988_s1 }
 0x8ba   :  { %v3767_v61 = vmul.f32 %v8245_v38, %v8245_v38  ;;  %3812 = vrot.lane.b32.xlu0 %v3766_v17, %s5988_s1  ;;  %5527 = vmatpush3.bf16.msra.mxu0 %v5630_v41 }
 0x8bc   :  { %3814 = vrot.lane.b32.xlu1 %v3767_v61, %s5988_s1 }
 0x90d   :  { %v3787_v30 = vpop.permute.xlu0 %3786 }
 0x90e   :  { %v3835_v4 = vsel %vm75_vm0, %v3787_v30, 0.0  ;;  %v3785_v14 = vpop.permute.xlu1 %3784 }
 0x90f   :  { %v3832_v1 = vsel %vm75_vm0, %v3785_v14, 0.0  ;;  %3836 = vadd.xlane.f32.xlu1 %v3835_v4 }
 0x910   :  { %3833 = vadd.xlane.f32.xlu0 %v3832_v1 }
 0x912   :  { %v3791_v37 = vpop.permute.xlu1 %3790 }
 0x913   :  { %v3841_v54 = vsel %vm75_vm0, %v3791_v37, 0.0 }
 0x914   :  { %3842 = vadd.xlane.f32.xlu0 %v3841_v54 }
 0x916   :  { %v3789_v8 = vpop.permute.xlu1 %3788  ;;  %v3793_v18 = vpop.permute.xlu0 %3792 }
 0x917   :  { %v3838_v52 = vsel %vm75_vm0, %v3789_v8, 0.0  ;;  %v3844_v62 = vsel %vm75_vm0, %v3793_v18, 0.0 }
 0x918   :  { %3839 = vadd.xlane.f32.xlu0 %v3838_v52  ;;  %3845 = vadd.xlane.f32.xlu1 %v3844_v62 }
 0x91a   :  { %v3795_v46 = vpop.permute.xlu1 %3794  ;;  %v3797_v49 = vpop.permute.xlu0 %3796 }
 0x91b   :  { %v3847_v20 = vsel %vm75_vm0, %v3795_v46, 0.0  ;;  %v3850_v60 = vsel %vm75_vm0, %v3797_v49, 0.0 }
 0x91c   :  { %3848 = vadd.xlane.f32.xlu0 %v3847_v20  ;;  %3851 = vadd.xlane.f32.xlu1 %v3850_v60 }
 0x91e   :  { %v3799_v24 = vpop.permute.xlu1 %3798  ;;  %v3801_v12 = vpop.permute.xlu0 %3800 }
 0x91f   :  { %v3853_v28 = vsel %vm75_vm0, %v3799_v24, 0.0  ;;  %v3856_v10 = vsel %vm75_vm0, %v3801_v12, 0.0 }
 0x920   :  { %3854 = vadd.xlane.f32.xlu0 %v3853_v28  ;;  %3857 = vadd.xlane.f32.xlu1 %v3856_v10 }
 0x922   :  { %v3803_v21 = vpop.permute.xlu1 %3802  ;;  %v3805_v31 = vpop.permute.xlu0 %3804 }
 0x923   :  { %v3859_v15 = vsel %vm75_vm0, %v3803_v21, 0.0  ;;  %v3862_v50 = vsel %vm75_vm0, %v3805_v31, 0.0 }
 0x924   :  { %3860 = vadd.xlane.f32.xlu0 %v3859_v15  ;;  %3863 = vadd.xlane.f32.xlu1 %v3862_v50 }
 0x926   :  { %v3807_v11 = vpop.permute.xlu1 %3806  ;;  %v3809_v45 = vpop.permute.xlu0 %3808 }
 0x927   :  { %v3865_v9 = vsel %vm75_vm0, %v3807_v11, 0.0  ;;  %v3868_v27 = vsel %vm75_vm0, %v3809_v45, 0.0 }
 0x928   :  { %3866 = vadd.xlane.f32.xlu0 %v3865_v9  ;;  %3869 = vadd.xlane.f32.xlu1 %v3868_v27 }
 0x92a   :  { %v3811_v16 = vpop.permute.xlu1 %3810 }
 0x92b   :  { %v3871_v5 = vsel %vm75_vm0, %v3811_v16, 0.0 }
 0x92c   :  { %3872 = vadd.xlane.f32.xlu0 %v3871_v5  ;;  %v3813_v35 = vpop.permute.xlu0 %3812 }
 0x92d   :  { %v3874_v48 = vsel %vm75_vm0, %v3813_v35, 0.0 }
 0x92e   :  { %v3815_v34 = vpop.permute.xlu1 %3814  ;;  %3875 = vadd.xlane.f32.xlu1 %v3874_v48 }
 0x92f   :  { %v3877_v32 = vsel %vm75_vm0, %v3815_v34, 0.0 }
 0x930   :  { %3878 = vadd.xlane.f32.xlu0 %v3877_v32 }
 0x93f   :  { %3949 = vrot.lane.b32.xlu1 %v3947_v53, %s5978_s28 }
 0x946   :  { %3973 = vrot.lane.b32.xlu0 %v3971_v51, %s5978_s28 }
 0x99c   :  { %v3837_v26 = vpop.xlane.xlu1 %3836 }
 0x99d   :  { %v3834_v23 = vpop.xlane.xlu0 %3833  ;;  %v3881_v47 = vmul.f32 0.03125, %v3837_v26 }
 0x99e   :  { %v3880_v36 = vmul.f32 0.03125, %v3834_v23 }
 0x99f   :  { %v3897_v4 = vadd.f32 1e-05, %v3881_v47 }
 0x9a0   :  { %v3896_v1 = vadd.f32 1e-05, %v3880_v36 }
 0x9a1   :  { %v3843_v0 = vpop.xlane.xlu0 %3842  ;;  %5895 = vrsqrt.f32 %v3897_v4 }
 0x9a2   :  { %v3883_v33 = vmul.f32 0.03125, %v3843_v0  ;;  %5897 = vrsqrt.f32 %v3896_v1 }
 0x9a4   :  { %v3899_v37 = vadd.f32 1e-05, %v3883_v33 }
 0x9a5   :  { %v3846_v17 = vpop.xlane.xlu1 %3845  ;;  %v3840_v61 = vpop.xlane.xlu0 %3839 }
 0x9a6   :  { %v3884_v30 = vmul.f32 0.03125, %v3846_v17  ;;  %v3882_v14 = vmul.f32 0.03125, %v3840_v61  ;;  %5899 = vrsqrt.f32 %v3899_v37 }
 0x9a8   :  { %v3900_v18 = vadd.f32 1e-05, %v3884_v30  ;;  %v3898_v46 = vadd.f32 1e-05, %v3882_v14 }
 0x9a9   :  { %v3852_v54 = vpop.xlane.xlu1 %3851  ;;  %v3849_v8 = vpop.xlane.xlu0 %3848 }
 0x9aa   :  { %v3886_v52 = vmul.f32 0.03125, %v3852_v54  ;;  %v3885_v62 = vmul.f32 0.03125, %v3849_v8  ;;  %5901 = vrsqrt.f32 %v3900_v18 }
 0x9ab   :  { %5903 = vrsqrt.f32 %v3898_v46  ;;  %v5896_v9 = vpop.eup %5895 }
 0x9ac   :  { %v3902_v49 = vadd.f32 1e-05, %v3886_v52  ;;  %v3901_v20 = vadd.f32 1e-05, %v3885_v62  ;;  %v5898_v35 = vpop.eup %5897  ;;  %v3929_v17 = vmul.f32 %v5896_v9, %v8157_v3 }
 0x9ad   :  { %v3858_v60 = vpop.xlane.xlu1 %3857  ;;  %v3855_v24 = vpop.xlane.xlu0 %3854  ;;  %v3928_v8 = vmul.f32 %v5898_v35, %v8160_v7 }
 0x9ae   :  { %v3888_v12 = vmul.f32 0.03125, %v3858_v60  ;;  %v3887_v28 = vmul.f32 0.03125, %v3855_v24  ;;  %5905 = vrsqrt.f32 %v3902_v49 }
 0x9af   :  { %5907 = vrsqrt.f32 %v3901_v20 }
 0x9b0   :  { %v3904_v10 = vadd.f32 1e-05, %v3888_v12  ;;  %v3903_v21 = vadd.f32 1e-05, %v3887_v28  ;;  %v5900_v32 = vpop.eup %5899 }
 0x9b1   :  { %v3864_v31 = vpop.xlane.xlu1 %3863  ;;  %v3861_v15 = vpop.xlane.xlu0 %3860  ;;  %v3931_v18 = vmul.f32 %v5900_v32, %v8168_v56 }
 0x9b2   :  { %5909 = vrsqrt.f32 %v3904_v10  ;;  %v3890_v50 = vmul.f32 0.03125, %v3864_v31  ;;  %v3889_v11 = vmul.f32 0.03125, %v3861_v15 }
 0x9b3   :  { %5911 = vrsqrt.f32 %v3903_v21 }
 0x9b4   :  { %v3905_v45 = vadd.f32 1e-05, %v3889_v11  ;;  %v3906_v27 = vadd.f32 1e-05, %v3890_v50  ;;  %v5902_v59 = vpop.eup %5901 }
 0x9b5   :  { %v3870_v16 = vpop.xlane.xlu1 %3869  ;;  %v3867_v5 = vpop.xlane.xlu0 %3866  ;;  %v3932_v61 = vmul.f32 %v5902_v59, %v8174_v40 }
 0x9b6   :  { %v3892_v48 = vmul.f32 0.03125, %v3870_v16  ;;  %v3891_v34 = vmul.f32 0.03125, %v3867_v5  ;;  %5913 = vrsqrt.f32 %v3905_v45  ;;  %v5904_v51 = vpop.eup %5903 }
 0x9b7   :  { %5915 = vrsqrt.f32 %v3906_v27  ;;  %v3930_v52 = vmul.f32 %v5904_v51, %v8177_v22 }
 0x9b8   :  { %v3908_v53 = vadd.f32 1e-05, %v3892_v48  ;;  %v3907_v6 = vadd.f32 1e-05, %v3891_v34  ;;  %v5906_v41 = vpop.eup %5905 }
 0x9b9   :  { %v3873_v25 = vpop.xlane.xlu0 %3872  ;;  %v5908_v26 = vpop.eup %5907  ;;  %v3934_v62 = vmul.f32 %v5906_v41, %v8185_v42 }
 0x9ba   :  { %5917 = vrsqrt.f32 %v3908_v53  ;;  %v3893_v23 = vmul.f32 0.03125, %v3873_v25  ;;  %v3933_v1 = vmul.f32 %v5908_v26, %v8188_v13 }
 0x9bb   :  { %5919 = vrsqrt.f32 %v3907_v6  ;;  %v3876_v0 = vpop.xlane.xlu1 %3875 }
 0x9bc   :  { %v5910_v47 = vpop.eup %5909  ;;  %v3909_v36 = vadd.f32 1e-05, %v3893_v23  ;;  %v3894_v33 = vmul.f32 0.03125, %v3876_v0 }
 0x9bd   :  { %v3936_v30 = vmul.f32 %v5910_v47, %v8197_v44  ;;  %v3879_v4 = vpop.xlane.xlu0 %3878  ;;  %v5912_v14 = vpop.eup %5911 }
 0x9be   :  { %5921 = vrsqrt.f32 %v3909_v36  ;;  %v3910_v37 = vadd.f32 1e-05, %v3894_v33  ;;  %v3895_v54 = vmul.f32 0.03125, %v3879_v4  ;;  %v3935_v20 = vmul.f32 %v5912_v14, %v8200_v29 }
 0x9bf   :  { %v3950_v3 = vpop.permute.xlu1 %3949 }
 0x9c0   :  { %5923 = vrsqrt.f32 %v3910_v37  ;;  %v3911_v40 = vadd.f32 1e-05, %v3895_v54  ;;  %v3956_v46 = vmul.f32 %v3950_v3, %v3932_v61  ;;  %v3957_v44 = vmul.f32 %v3950_v3, %v3933_v1  ;;  %v5914_v49 = vpop.eup %5913 }
 0x9c1   :  { %v3974_v13 = vpop.permute.xlu0 %3973  ;;  %v3952_v60 = vmul.f32 %v3950_v3, %v3928_v8  ;;  %v3953_v24 = vmul.f32 %v3950_v3, %v3929_v17  ;;  %v3960_v12 = vmul.f32 %v3950_v3, %v3936_v30  ;;  %v3937_v7 = vmul.f32 %v5914_v49, %v8212_v55  ;;  %v5916_v22 = vpop.eup %5915 }
 0x9c2   :  { %5925 = vrsqrt.f32 %v3911_v40  ;;  %v3980_v56 = vadd.f32 %v3974_v13, %v3956_v46  ;;  %v3981_v28 = vadd.f32 %v3974_v13, %v3957_v44  ;;  %v3954_v21 = vmul.f32 %v3950_v3, %v3930_v52  ;;  %v5633_v52 = vld [vmem:[%s8667_s6 + $0x10] sm:$0xff]   ;;  %v5636_v40 = vld [vmem:[%s8667_s6 + $0x28] sm:$0xff]  }
 0x9c3   :  { %v3976_v10 = vadd.f32 %v3974_v13, %v3952_v60  ;;  %v3977_v42 = vadd.f32 %v3974_v13, %v3953_v24  ;;  %v3961_v50 = vmul.f32 %v3950_v3, %v3937_v7  ;;  %v3955_v11 = vmul.f32 %v3950_v3, %v3931_v18  ;;  %v5632_v18 = vld [vmem:[%s8667_s6 + $0x8] sm:$0xff]   ;;  %v5637_v7 = vld [vmem:[%s8667_s6 + $0x30] sm:$0xff]  }
 0x9c4   :  { %v5918_v31 = vpop.eup %5917  ;;  %v3994_v15 = vpack.c.bf16 %v3981_v28, %v3980_v56  ;;  %v3958_v45 = vmul.f32 %v3950_v3, %v3934_v62  ;;  %v3978_v16 = vadd.f32 %v3974_v13, %v3954_v21  ;;  %v3959_v5 = vmul.f32 %v3950_v3, %v3935_v20  ;;  %v5634_v62 = vld [vmem:[%s8667_s6 + $0x18] sm:$0xff]  }
 0x9c5   :  { %v5920_v9 = vpop.eup %5919  ;;  %v3940_v29 = vmul.f32 %v5918_v31, %v8221_v63  ;;  %v3992_v27 = vpack.c.bf16 %v3977_v42, %v3976_v10  ;;  %v3984_v35 = vadd.f32 %v3974_v13, %v3960_v12  ;;  %v3985_v48 = vadd.f32 %v3974_v13, %v3961_v50 }
 0x9c6   :  { %v3939_v55 = vmul.f32 %v5920_v9, %v8224_v19  ;;  %4020 = vrot.lane.b32.xlu0 %v3994_v15, %s5988_s1  ;;  %v3979_v34 = vadd.f32 %v3974_v13, %v3955_v11  ;;  %v3938_v32 = vmul.f32 %v5916_v22, %v8209_v58  ;;  %v3982_v6 = vadd.f32 %v3974_v13, %v3958_v45 }
 0x9c7   :  { %4016 = vrot.lane.b32.xlu1 %v3992_v27, %s5988_s1  ;;  %v3996_v53 = vpack.c.bf16 %v3985_v48, %v3984_v35  ;;  %v3983_v51 = vadd.f32 %v3974_v13, %v3959_v5  ;;  %v3964_v25 = vmul.f32 %v3950_v3, %v3940_v29 }
 0x9c8   :  { %v5922_v59 = vpop.eup %5921  ;;  %v3993_v41 = vpack.c.bf16 %v3979_v34, %v3978_v16  ;;  %v3963_v23 = vmul.f32 %v3950_v3, %v3939_v55  ;;  %v3962_v58 = vmul.f32 %v3950_v3, %v3938_v32 }
 0x9c9   :  { %v3941_v63 = vmul.f32 %v5922_v59, %v8233_v57  ;;  %v3995_v36 = vpack.c.bf16 %v3983_v51, %v3982_v6  ;;  %v3988_v33 = vadd.f32 %v3974_v13, %v3964_v25 }
 0x9ca   :  { %v5924_v26 = vpop.eup %5923  ;;  %4024 = vrot.lane.b32.xlu0 %v3996_v53, %s5988_s1  ;;  %v3987_v30 = vadd.f32 %v3974_v13, %v3963_v23  ;;  %v3986_v14 = vadd.f32 %v3974_v13, %v3962_v58 }
 0x9cb   :  { %v3942_v19 = vmul.f32 %v5924_v26, %v8240_v43  ;;  %4018 = vrot.lane.b32.xlu1 %v3993_v41, %s5988_s1  ;;  %v3965_v0 = vmul.f32 %v3950_v3, %v3941_v63 }
 0x9cc   :  { %v5926_v47 = vpop.eup %5925  ;;  %v3997_v43 = vpack.c.bf16 %v3987_v30, %v3986_v14 }
 0x9cd   :  { %v3943_v17 = vmul.f32 %v5926_v47, %v8245_v38  ;;  %v3989_v61 = vadd.f32 %v3974_v13, %v3965_v0  ;;  %v3966_v4 = vmul.f32 %v3950_v3, %v3942_v19  ;;  %v5631_v38 = vld [vmem:[%s8667_s6] sm:$0xff]  }
 0x9ce   :  { %5544 = vmatprep.subr.bf16.mxu1 %v5631_v38 }
 0x9cf   :  { %4022 = vrot.lane.b32.xlu1 %v3995_v36, %s5988_s1  ;;  %v3998_v57 = vpack.c.bf16 %v3989_v61, %v3988_v33  ;;  %v3967_v1 = vmul.f32 %v3950_v3, %v3943_v17  ;;  %v3990_v37 = vadd.f32 %v3974_v13, %v3966_v4  ;;  %5545 = vmatpush3.bf16.msra.mxu1 %v5631_v38  ;;  %v5635_v3 = vld [vmem:[%s8667_s6 + $0x20] sm:$0xff]  }
 0x9d0   :  { %5546 = vmatprep.subr.bf16.mxu1 %v5632_v18 }
 0x9d1   :  { %4028 = vrot.lane.b32.xlu0 %v3998_v57, %s5988_s1  ;;  %v3991_v54 = vadd.f32 %v3974_v13, %v3967_v1 }
 0x9d3   :  { %4026 = vrot.lane.b32.xlu1 %v3997_v43, %s5988_s1  ;;  %v3999_v8 = vpack.c.bf16 %v3991_v54, %v3990_v37  ;;  %5547 = vmatpush3.bf16.msra.mxu1 %v5632_v18 }
 0x9d4   :  { %5548 = vmatprep.subr.bf16.mxu1 %v5633_v52 }
 0x9d5   :  { %4370 = vrot.lane.b32.xlu0 %v3976_v10, %s5988_s1 }
 0x9d7   :  { %4030 = vrot.lane.b32.xlu1 %v3999_v8, %s5988_s1  ;;  %5549 = vmatpush3.bf16.msra.mxu1 %v5633_v52 }
 0x9d8   :  { %5550 = vmatprep.subr.bf16.mxu1 %v5634_v62 }
 0x9d9   :  { %4374 = vrot.lane.b32.xlu0 %v3978_v16, %s5988_s1 }
 0x9db   :  { %4372 = vrot.lane.b32.xlu1 %v3977_v42, %s5988_s1  ;;  %5551 = vmatpush3.bf16.msra.mxu1 %v5634_v62 }
 0x9dc   :  { %5552 = vmatprep.subr.bf16.mxu1 %v5635_v3 }
 0x9dd   :  { %4378 = vrot.lane.b32.xlu0 %v3980_v56, %s5988_s1  ;;  %v5638_v56 = vld [vmem:[%s8667_s6 + $0x38] sm:$0xff]  }
 0x9df   :  { %4376 = vrot.lane.b32.xlu1 %v3979_v34, %s5988_s1  ;;  %5553 = vmatpush3.bf16.msra.mxu1 %v5635_v3 }
 0x9e0   :  { %5554 = vmatprep.subr.bf16.mxu1 %v5636_v40 }
 0x9e1   :  { %4382 = vrot.lane.b32.xlu0 %v3982_v6, %s5988_s1 }
 0x9e3   :  { %4380 = vrot.lane.b32.xlu1 %v3981_v28, %s5988_s1  ;;  %5555 = vmatpush3.bf16.msra.mxu1 %v5636_v40  ;;  %v4006_v28 = vsub.s32 3, %v9081_v39 }
 0x9e4   :  { %5556 = vmatprep.subr.bf16.mxu1 %v5637_v7 }
 0x9e5   :  { %4386 = vrot.lane.b32.xlu0 %v3984_v35, %s5988_s1  ;;  %v4007_v22 = vrot.slane %v8272_v2, %v4006_v28 }
 0x9e7   :  { %4384 = vrot.lane.b32.xlu1 %v3983_v51, %s5988_s1  ;;  %5557 = vmatpush3.bf16.msra.mxu1 %v5637_v7 }
 0x9e8   :  { %5558 = vmatprep.subr.bf16.mxu1 %v5638_v56 }
 0x9e9   :  { %4390 = vrot.lane.b32.xlu0 %v3986_v14, %s5988_s1 }
 0x9eb   :  { %4388 = vrot.lane.b32.xlu1 %v3985_v48, %s5988_s1  ;;  %5559 = vmatpush3.bf16.msra.mxu1 %v5638_v56  ;;  %v4207_v56 = vsub.s32 4, %v9081_v39 }
 0x9ed   :  { %4394 = vrot.lane.b32.xlu0 %v3988_v33, %s5988_s1 }
 0x9ef   :  { %4392 = vrot.lane.b32.xlu1 %v3987_v30, %s5988_s1 }
 0x9f1   :  { %4398 = vrot.lane.b32.xlu0 %v3990_v37, %s5988_s1 }
 0x9f3   :  { %4396 = vrot.lane.b32.xlu1 %v3989_v61, %s5988_s1 }
 0x9f7   :  { %4400 = vrot.lane.b32.xlu1 %v3991_v54, %s5988_s1 }
 0xa38   :  { %v4021_v49 = vpop.permute.xlu0 %4020 }
 0xa39   :  { %v4017_v46 = vpop.permute.xlu1 %4016 }
 0xa3a   :  { %5528 = vmatprep.mubr.msk.bf16.mxu0 %vm75_vm0, %v4017_v46 }
 0xa3c   :  { %v4025_v13 = vpop.permute.xlu0 %4024 }
 0xa3d   :  { %v4019_v44 = vpop.permute.xlu1 %4018 }
 0xa3e   :  { %5529 = vmatmul.mubr.msk.bf16.vlgmr.msra.gmra.mrb[112].mxu0 %vm75_vm0, %v4019_v44 }
 0xa3f   :  { %5532 = vmatprep.mubr.msk.bf16.mxu0 %vm75_vm0, %v4021_v49 }
 0xa41   :  { %v4023_v20 = vpop.permute.xlu1 %4022 }
 0xa43   :  { %v4029_v24 = vpop.permute.xlu0 %4028 }
 0xa45   :  { %v4027_v60 = vpop.permute.xlu1 %4026 }
 0xa46   :  { %5533 = vmatmul.mubr.msk.bf16.gmra.mrb[116].mxu0 %vm75_vm0, %v4023_v20 }
 0xa47   :  { %5536 = vmatprep.mubr.msk.bf16.mxu0 %vm75_vm0, %v4025_v13 }
 0xa49   :  { %v4031_v12 = vpop.permute.xlu1 %4030 }
 0xa4e   :  { %5537 = vmatmul.mubr.msk.bf16.gmra.mrb[120].mxu0 %vm75_vm0, %v4027_v60 }
 0xa4f   :  { %5540 = vmatprep.mubr.msk.bf16.mxu0 %vm75_vm0, %v4029_v24  ;;  %v4371_v24 = vpop.permute.xlu0 %4370 }
 0xa53   :  { %v4375_v7 = vpop.permute.xlu0 %4374 }
 0xa56   :  { %5541 = vmatmul.mubr.msk.bf16.gmra.mrb[124].mxu0 %vm75_vm0, %v4031_v12  ;;  %v4373_v12 = vpop.permute.xlu1 %4372 }
 0xa5a   :  { %v4377_v28 = vpop.permute.xlu1 %4376 }
 0xb11   :  { %v5530_v10 = vpop.f32.mrb[112].mxu0 }
 0xb12   :  { %v4111_v42 = vadd.f32 %v5530_v10, %v4007_v22  ;;  %v4102_v21 = vpop.f32.mrb[113].mxu0  ;;  %v8361_v10 = vrot.slane %v8272_v2, %v4207_v56 }
 0xb13   :  { %v4103_v31 = vadd.f32 %v4102_v21, %v4007_v22  ;;  %v5531_v15 = vpop.f32.mrb[114].mxu0 }
 0xb14   :  { %v4114_v50 = vadd.f32 %v5531_v15, %v4007_v22  ;;  %v4105_v11 = vpop.f32.mrb[115].mxu0  ;;  %v4167_v9 = vmax.f32 %v4111_v42, 0.0  ;;  %v4379_v42 = vpop.permute.xlu0 %4378 }
 0xb15   :  { %v4106_v45 = vadd.f32 %v4105_v11, %v4007_v22  ;;  %v4165_v27 = vmax.f32 %v4103_v31, 0.0  ;;  %v4381_v15 = vpop.permute.xlu1 %4380 }
 0xb16   :  { %v4168_v29 = vmax.f32 %v4114_v50, 0.0 }
 0xb17   :  { %v4166_v16 = vmax.f32 %v4106_v45, 0.0 }
 0xb18   :  { %v4182_v5 = vpack.c.bf16 %v4168_v29, %v4167_v9 }
 0xb19   :  { %v4181_v55 = vpack.c.bf16 %v4166_v16, %v4165_v27  ;;  %v5534_v35 = vpop.f32.mrb[116].mxu0  ;;  %v4383_v27 = vpop.permute.xlu0 %4382 }
 0xb1a   :  { %v4127_v48 = vadd.f32 %v5534_v35, %v4007_v22  ;;  %v4118_v34 = vpop.f32.mrb[117].mxu0  ;;  %v4385_v35 = vpop.permute.xlu1 %4384 }
 0xb1b   :  { %v4119_v32 = vadd.f32 %v4118_v34, %v4007_v22  ;;  %v5535_v59 = vpop.f32.mrb[118].mxu0  ;;  %5560 = vmatprep.mubr.bf16.mxu1 %v4181_v55 }
 0xb1c   :  { %v4130_v53 = vadd.f32 %v5535_v59, %v4007_v22  ;;  %v4121_v6 = vpop.f32.mrb[119].mxu0  ;;  %5561 = vmatmul.mubr.bf16.vlgmr.msra.gmra.mrb[112].mxu1 %v4182_v5  ;;  %v4171_v25 = vmax.f32 %v4127_v48, 0.0 }
 0xb1d   :  { %v4122_v51 = vadd.f32 %v4121_v6, %v4007_v22  ;;  %v4169_v41 = vmax.f32 %v4119_v32, 0.0 }
 0xb1e   :  { %v4172_v63 = vmax.f32 %v4130_v53, 0.0 }
 0xb1f   :  { %v4170_v23 = vmax.f32 %v4122_v51, 0.0 }
 0xb20   :  { %v4184_v26 = vpack.c.bf16 %v4172_v63, %v4171_v25  ;;  %v4387_v63 = vpop.permute.xlu0 %4386 }
 0xb21   :  { %v4183_v19 = vpack.c.bf16 %v4170_v23, %v4169_v41  ;;  %v5538_v0 = vpop.f32.mrb[120].mxu0 }
 0xb22   :  { %v4143_v58 = vadd.f32 %v5538_v0, %v4007_v22  ;;  %v4134_v47 = vpop.f32.mrb[121].mxu0 }
 0xb23   :  { %v4135_v36 = vadd.f32 %v4134_v47, %v4007_v22  ;;  %v5539_v33 = vpop.f32.mrb[122].mxu0  ;;  %5564 = vmatprep.mubr.bf16.mxu1 %v4183_v19 }
 0xb24   :  { %v4146_v17 = vadd.f32 %v5539_v33, %v4007_v22  ;;  %v4137_v61 = vpop.f32.mrb[123].mxu0  ;;  %5565 = vmatmul.mubr.bf16.gmra.mrb[116].mxu1 %v4184_v26  ;;  %v4175_v4 = vmax.f32 %v4143_v58, 0.0  ;;  %v4389_v33 = vpop.permute.xlu1 %4388 }
 0xb25   :  { %v4138_v30 = vadd.f32 %v4137_v61, %v4007_v22  ;;  %v4173_v14 = vmax.f32 %v4135_v36, 0.0 }
 0xb26   :  { %v4176_v57 = vmax.f32 %v4146_v17, 0.0 }
 0xb27   :  { %v4174_v1 = vmax.f32 %v4138_v30, 0.0  ;;  %v4391_v30 = vpop.permute.xlu0 %4390 }
 0xb28   :  { %v4186_v43 = vpack.c.bf16 %v4176_v57, %v4175_v4 }
 0xb29   :  { %v4185_v37 = vpack.c.bf16 %v4174_v1, %v4173_v14  ;;  %v5542_v54 = vpop.f32.mrb[124].mxu0 }
 0xb2a   :  { %v4159_v8 = vadd.f32 %v5542_v54, %v4007_v22  ;;  %v4150_v38 = vpop.f32.mrb[125].mxu0 }
 0xb2b   :  { %v4151_v18 = vadd.f32 %v4150_v38, %v4007_v22  ;;  %v5543_v52 = vpop.f32.mrb[126].mxu0  ;;  %5568 = vmatprep.mubr.bf16.mxu1 %v4185_v37 }
 0xb2c   :  { %v4162_v62 = vadd.f32 %v5543_v52, %v4007_v22  ;;  %v4153_v3 = vpop.f32.mrb[127].mxu0  ;;  %5569 = vmatmul.mubr.bf16.gmra.mrb[120].mxu1 %v4186_v43  ;;  %v4179_v46 = vmax.f32 %v4159_v8, 0.0 }
 0xb2d   :  { %v4154_v40 = vadd.f32 %v4153_v3, %v4007_v22  ;;  %v4177_v49 = vmax.f32 %v4151_v18, 0.0  ;;  %v4393_v18 = vpop.permute.xlu1 %4392 }
 0xb2e   :  { %v4180_v44 = vmax.f32 %v4162_v62, 0.0 }
 0xb2f   :  { %v4178_v20 = vmax.f32 %v4154_v40, 0.0 }
 0xb30   :  { %v4188_v13 = vpack.c.bf16 %v4180_v44, %v4179_v46  ;;  %v4395_v44 = vpop.permute.xlu0 %4394 }
 0xb31   :  { %v4187_v60 = vpack.c.bf16 %v4178_v20, %v4177_v49 }
 0xb33   :  { %5572 = vmatprep.mubr.bf16.mxu1 %v4187_v60 }
 0xb34   :  { %5573 = vmatmul.mubr.bf16.gmra.mrb[124].mxu1 %v4188_v13 }
 0xbef   :  { %v5562_v21 = vpop.f32.mrb[112].mxu1 }
 0xbf0   :  { %v4300_v22 = vadd.f32 %v5562_v21, %v8361_v10  ;;  %v4291_v31 = vpop.f32.mrb[113].mxu1 }
 0xbf1   :  { %v4292_v50 = vadd.f32 %v4291_v31, %v8361_v10  ;;  %v5563_v11 = vpop.f32.mrb[114].mxu1  ;;  %v4399_v31 = vpop.permute.xlu0 %4398 }
 0xbf2   :  { %v8365_v45 = vadd.f32 %v4375_v7, %v4300_v22  ;;  %v4294_v9 = vpop.f32.mrb[115].mxu1  ;;  %v4303_v2 = vadd.f32 %v5563_v11, %v8361_v10 }
 0xbf3   :  { %v4295_v29 = vadd.f32 %v4294_v9, %v8361_v10  ;;  %v8368_v16 = vadd.f32 %v4371_v24, %v4292_v50 }
 0xbf4   :  { %v4440_v5 = vsel %vm75_vm0, %v8365_v45, 0.0  ;;  %v8377_v32 = vadd.f32 %v4377_v28, %v4303_v2 }
 0xbf5   :  { %v8373_v55 = vadd.f32 %v4373_v12, %v4295_v29  ;;  %4441 = vadd.xlane.f32.xlu0 %v4440_v5  ;;  %v4434_v6 = vsel %vm75_vm0, %v8368_v16, 0.0  ;;  %v4397_v12 = vpop.permute.xlu1 %4396 }
 0xbf6   :  { %v4443_v36 = vsel %vm75_vm0, %v8377_v32, 0.0 }
 0xbf7   :  { %v5566_v48 = vpop.f32.mrb[116].mxu1  ;;  %v4437_v34 = vsel %vm75_vm0, %v8373_v55, 0.0 }
 0xbf8   :  { %v4316_v59 = vadd.f32 %v5566_v48, %v8361_v10  ;;  %v4307_v53 = vpop.f32.mrb[117].mxu1  ;;  %4438 = vadd.xlane.f32.xlu1 %v4437_v34 }
 0xbf9   :  { %v4308_v51 = vadd.f32 %v4307_v53, %v8361_v10  ;;  %4435 = vadd.xlane.f32.xlu0 %v4434_v6  ;;  %v5567_v25 = vpop.f32.mrb[118].mxu1 }
 0xbfa   :  { %v8383_v41 = vadd.f32 %v4383_v27, %v4316_v59  ;;  %v4319_v23 = vadd.f32 %v5567_v25, %v8361_v10  ;;  %v4310_v26 = vpop.f32.mrb[119].mxu1  ;;  %v4401_v27 = vpop.permute.xlu1 %4400 }
 0xbfb   :  { %v4311_v19 = vadd.f32 %v4310_v26, %v8361_v10  ;;  %v8387_v0 = vadd.f32 %v4379_v42, %v4308_v51 }
 0xbfc   :  { %v8389_v58 = vadd.f32 %v4385_v35, %v4319_v23  ;;  %v4452_v47 = vsel %vm75_vm0, %v8383_v41, 0.0 }
 0xbfd   :  { %4453 = vadd.xlane.f32.xlu1 %v4452_v47  ;;  %4444 = vadd.xlane.f32.xlu0 %v4443_v36  ;;  %v8395_v17 = vadd.f32 %v4381_v15, %v4311_v19  ;;  %v4446_v14 = vsel %vm75_vm0, %v8387_v0, 0.0 }
 0xbfe   :  { %v4455_v1 = vsel %vm75_vm0, %v8389_v58, 0.0 }
 0xbff   :  { %v5570_v61 = vpop.f32.mrb[120].mxu1  ;;  %v4449_v52 = vsel %vm75_vm0, %v8395_v17, 0.0 }
 0xc00   :  { %v4332_v4 = vadd.f32 %v5570_v61, %v8361_v10  ;;  %v4323_v57 = vpop.f32.mrb[121].mxu1 }
 0xc01   :  { %v4324_v43 = vadd.f32 %v4323_v57, %v8361_v10  ;;  %v5571_v37 = vpop.f32.mrb[122].mxu1  ;;  %4447 = vadd.xlane.f32.xlu1 %v4446_v14  ;;  %4456 = vadd.xlane.f32.xlu0 %v4455_v1 }
 0xc02   :  { %v8403_v54 = vadd.f32 %v4391_v30, %v4332_v4  ;;  %v4335_v8 = vadd.f32 %v5571_v37, %v8361_v10  ;;  %v4326_v38 = vpop.f32.mrb[123].mxu1 }
 0xc03   :  { %v8408_v62 = vadd.f32 %v4387_v63, %v4324_v43  ;;  %v4327_v40 = vadd.f32 %v4326_v38, %v8361_v10 }
 0xc04   :  { %v8410_v3 = vadd.f32 %v4393_v18, %v4335_v8  ;;  %v4464_v46 = vsel %vm75_vm0, %v8403_v54, 0.0 }
 0xc05   :  { %4465 = vadd.xlane.f32.xlu1 %v4464_v46  ;;  %4450 = vadd.xlane.f32.xlu0 %v4449_v52  ;;  %v8415_v20 = vadd.f32 %v4389_v33, %v4327_v40  ;;  %v4458_v60 = vsel %vm75_vm0, %v8408_v62, 0.0 }
 0xc06   :  { %v4467_v24 = vsel %vm75_vm0, %v8410_v3, 0.0 }
 0xc07   :  { %v5574_v49 = vpop.f32.mrb[124].mxu1  ;;  %v4461_v50 = vsel %vm75_vm0, %v8415_v20, 0.0 }
 0xc08   :  { %v4339_v13 = vpop.f32.mrb[125].mxu1  ;;  %v4348_v7 = vadd.f32 %v5574_v49, %v8361_v10 }
 0xc09   :  { %v4340_v56 = vadd.f32 %v4339_v13, %v8361_v10  ;;  %v5575_v28 = vpop.f32.mrb[126].mxu1  ;;  %4459 = vadd.xlane.f32.xlu1 %v4458_v60  ;;  %4468 = vadd.xlane.f32.xlu0 %v4467_v24 }
 0xc0a   :  { %v4342_v42 = vpop.f32.mrb[127].mxu1  ;;  %v4351_v15 = vadd.f32 %v5575_v28, %v8361_v10  ;;  %v8429_v11 = vadd.f32 %v4399_v31, %v4348_v7 }
 0xc0b   :  { %v8423_v21 = vadd.f32 %v4395_v44, %v4340_v56  ;;  %v4343_v22 = vadd.f32 %v4342_v42, %v8361_v10 }
 0xc0c   :  { %v8437_v5 = vadd.f32 %v4401_v27, %v4351_v15  ;;  %v4476_v10 = vsel %vm75_vm0, %v8429_v11, 0.0 }
 0xc0d   :  { %v8431_v9 = vadd.f32 %v4397_v12, %v4343_v22  ;;  %4462 = vadd.xlane.f32.xlu0 %v4461_v50  ;;  %v4470_v29 = vsel %vm75_vm0, %v8423_v21, 0.0 }
 0xc0e   :  { %4471 = vadd.xlane.f32.xlu1 %v4470_v29  ;;  %v4479_v35 = vsel %vm75_vm0, %v8437_v5, 0.0 }
 0xc0f   :  { %v4473_v2 = vsel %vm75_vm0, %v8431_v9, 0.0 }
 0xc11   :  { %4474 = vadd.xlane.f32.xlu0 %v4473_v2 }
 0xc12   :  { %4477 = vadd.xlane.f32.xlu1 %v4476_v10 }
 0xc15   :  { %4480 = vadd.xlane.f32.xlu0 %v4479_v35 }
 0xc82   :  { %v4442_v48 = vpop.xlane.xlu0 %4441 }
 0xc83   :  { %v4484_v34 = vmul.f32 0.03125, %v4442_v48 }
 0xc85   :  { %v8444_v59 = vsub.f32 %v8365_v45, %v4484_v34  ;;  %v4439_v53 = vpop.xlane.xlu1 %4438 }
 0xc86   :  { %v4436_v6 = vpop.xlane.xlu0 %4435  ;;  %v4483_v63 = vmul.f32 0.03125, %v4439_v53 }
 0xc87   :  { %v4482_v51 = vmul.f32 0.03125, %v4436_v6  ;;  %v4516_v25 = vmul.f32 %v8444_v59, %v8444_v59 }
 0xc88   :  { %v8455_v61 = vsub.f32 %v8373_v55, %v4483_v63 }
 0xc89   :  { %v8449_v23 = vsub.f32 %v8368_v16, %v4482_v51  ;;  %v4536_v26 = vsel %vm75_vm0, %v4516_v25, 0.0 }
 0xc8a   :  { %4537 = vadd.xlane.f32.xlu1 %v4536_v26  ;;  %v4445_v19 = vpop.xlane.xlu0 %4444  ;;  %v4454_v47 = vpop.xlane.xlu1 %4453 }
 0xc8b   :  { %v4485_v36 = vmul.f32 0.03125, %v4445_v19  ;;  %v4488_v33 = vmul.f32 0.03125, %v4454_v47  ;;  %v4514_v45 = vmul.f32 %v8449_v23, %v8449_v23 }
 0xc8d   :  { %v8458_v30 = vsub.f32 %v8377_v32, %v4485_v36  ;;  %v8461_v4 = vsub.f32 %v8383_v41, %v4488_v33  ;;  %v4530_v16 = vsel %vm75_vm0, %v4514_v45, 0.0  ;;  %v4515_v32 = vmul.f32 %v8455_v61, %v8455_v61 }
 0xc8e   :  { %4531 = vadd.xlane.f32.xlu1 %v4530_v16  ;;  %v4457_v57 = vpop.xlane.xlu0 %4456  ;;  %v4448_v14 = vpop.xlane.xlu1 %4447 }
 0xc8f   :  { %v4489_v1 = vmul.f32 0.03125, %v4457_v57  ;;  %v4486_v43 = vmul.f32 0.03125, %v4448_v14  ;;  %v4517_v37 = vmul.f32 %v8458_v30, %v8458_v30  ;;  %v4520_v55 = vmul.f32 %v8461_v4, %v8461_v4 }
 0xc90   :  { %v4533_v60 = vsel %vm75_vm0, %v4515_v32, 0.0 }
 0xc91   :  { %v8471_v8 = vsub.f32 %v8389_v58, %v4489_v1  ;;  %v8474_v41 = vsub.f32 %v8387_v0, %v4486_v43  ;;  %v4539_v38 = vsel %vm75_vm0, %v4517_v37, 0.0  ;;  %v4548_v18 = vsel %vm75_vm0, %v4520_v55, 0.0 }
 0xc92   :  { %v4451_v52 = vpop.xlane.xlu0 %4450  ;;  %4540 = vadd.xlane.f32.xlu0 %v4539_v38  ;;  %4549 = vadd.xlane.f32.xlu1 %v4548_v18  ;;  %v4466_v40 = vpop.xlane.xlu1 %4465 }
 0xc93   :  { %v4487_v46 = vmul.f32 0.03125, %v4451_v52  ;;  %v4492_v44 = vmul.f32 0.03125, %v4466_v40  ;;  %v4518_v49 = vmul.f32 %v8474_v41, %v8474_v41  ;;  %v4521_v58 = vmul.f32 %v8471_v8, %v8471_v8 }
 0xc95   :  { %v8483_v13 = vsub.f32 %v8395_v17, %v4487_v46  ;;  %v8486_v0 = vsub.f32 %v8403_v54, %v4492_v44  ;;  %v4542_v24 = vsel %vm75_vm0, %v4518_v49, 0.0  ;;  %v4551_v22 = vsel %vm75_vm0, %v4521_v58, 0.0 }
 0xc96   :  { %v4469_v12 = vpop.xlane.xlu0 %4468  ;;  %4534 = vadd.xlane.f32.xlu0 %v4533_v60  ;;  %4543 = vadd.xlane.f32.xlu1 %v4542_v24  ;;  %v4460_v7 = vpop.xlane.xlu1 %4459  ;;  %v4644_v49 = vsub.s32 5, %v9081_v39  ;;  %v4664_v24 = vsub.s32 6, %v9081_v39 }
 0xc97   :  { %v4493_v56 = vmul.f32 0.03125, %v4469_v12  ;;  %v4490_v28 = vmul.f32 0.03125, %v4460_v7  ;;  %v4524_v42 = vmul.f32 %v8486_v0, %v8486_v0  ;;  %v4519_v15 = vmul.f32 %v8483_v13, %v8483_v13 }
 0xc99   :  { %v8494_v17 = vsub.f32 %v8410_v3, %v4493_v56  ;;  %v8497_v54 = vsub.f32 %v8408_v62, %v4490_v28  ;;  %v4560_v31 = vsel %vm75_vm0, %v4524_v42, 0.0  ;;  %v4545_v62 = vsel %vm75_vm0, %v4519_v15, 0.0  ;;  %v5976_v42 = vld [vmem:[%s8663_s7] sm:$0xff] }
 0xc9a   :  { %v4463_v50 = vpop.xlane.xlu0 %4462  ;;  %4552 = vadd.xlane.f32.xlu0 %v4551_v22  ;;  %4561 = vadd.xlane.f32.xlu1 %v4560_v31  ;;  %v8544_v22 = vrot.slane %v5976_v42, %v4644_v49 }
 0xc9b   :  { %v4491_v29 = vmul.f32 0.03125, %v4463_v50  ;;  %v4472_v27 = vpop.xlane.xlu1 %4471  ;;  %v4522_v2 = vmul.f32 %v8497_v54, %v8497_v54  ;;  %v4525_v48 = vmul.f32 %v8494_v17, %v8494_v17 }
 0xc9c   :  { %v4494_v10 = vmul.f32 0.03125, %v4472_v27 }
 0xc9d   :  { %v8505_v3 = vsub.f32 %v8415_v20, %v4491_v29  ;;  %v4554_v35 = vsel %vm75_vm0, %v4522_v2, 0.0  ;;  %v4563_v26 = vsel %vm75_vm0, %v4525_v48, 0.0  ;;  %v8546_v29 = vrot.slane %v5976_v42, %v4664_v24 }
 0xc9e   :  { %v8512_v34 = vsub.f32 %v8423_v21, %v4494_v10  ;;  %v4475_v53 = vpop.xlane.xlu0 %4474  ;;  %4546 = vadd.xlane.f32.xlu0 %v4545_v62  ;;  %4555 = vadd.xlane.f32.xlu1 %v4554_v35 }
 0xc9f   :  { %v4495_v6 = vmul.f32 0.03125, %v4475_v53  ;;  %v4478_v51 = vpop.xlane.xlu1 %4477  ;;  %v4523_v19 = vmul.f32 %v8505_v3, %v8505_v3 }
 0xca0   :  { %v4496_v25 = vmul.f32 0.03125, %v4478_v51  ;;  %v4526_v20 = vmul.f32 %v8512_v34, %v8512_v34 }
 0xca1   :  { %v8517_v63 = vsub.f32 %v8431_v9, %v4495_v6  ;;  %v4557_v16 = vsel %vm75_vm0, %v4523_v19, 0.0 }
 0xca2   :  { %v8523_v21 = vsub.f32 %v8429_v11, %v4496_v25  ;;  %v4481_v47 = vpop.xlane.xlu0 %4480  ;;  %4564 = vadd.xlane.f32.xlu0 %v4563_v26  ;;  %v4566_v36 = vsel %vm75_vm0, %v4526_v20, 0.0 }
 0xca3   :  { %v4497_v33 = vmul.f32 0.03125, %v4481_v47  ;;  %4567 = vadd.xlane.f32.xlu1 %v4566_v36  ;;  %v4527_v57 = vmul.f32 %v8517_v63, %v8517_v63 }
 0xca4   :  { %v4528_v45 = vmul.f32 %v8523_v21, %v8523_v21 }
 0xca5   :  { %v8529_v9 = vsub.f32 %v8437_v5, %v4497_v33  ;;  %v4569_v14 = vsel %vm75_vm0, %v4527_v57, 0.0 }
 0xca6   :  { %4558 = vadd.xlane.f32.xlu0 %v4557_v16  ;;  %v4572_v11 = vsel %vm75_vm0, %v4528_v45, 0.0 }
 0xca7   :  { %4573 = vadd.xlane.f32.xlu1 %v4572_v11  ;;  %v4529_v1 = vmul.f32 %v8529_v9, %v8529_v9 }
 0xca9   :  { %v4575_v43 = vsel %vm75_vm0, %v4529_v1, 0.0 }
 0xcaa   :  { %4570 = vadd.xlane.f32.xlu0 %v4569_v14 }
 0xcae   :  { %4576 = vadd.xlane.f32.xlu0 %v4575_v43 }
 0xd17   :  { %v4538_v5 = vpop.xlane.xlu1 %4537 }
 0xd18   :  { %v4580_v37 = vmul.f32 0.03125, %v4538_v5 }
 0xd1a   :  { %v4596_v55 = vadd.f32 1e-05, %v4580_v37 }
 0xd1b   :  { %v4532_v32 = vpop.xlane.xlu1 %4531 }
 0xd1c   :  { %5927 = vrsqrt.f32 %v4596_v55  ;;  %v4578_v38 = vmul.f32 0.03125, %v4532_v32 }
 0xd1e   :  { %v4594_v18 = vadd.f32 1e-05, %v4578_v38 }
 0xd1f   :  { %v4541_v52 = vpop.xlane.xlu0 %4540  ;;  %v4550_v40 = vpop.xlane.xlu1 %4549 }
 0xd20   :  { %5929 = vrsqrt.f32 %v4594_v18  ;;  %v4581_v46 = vmul.f32 0.03125, %v4541_v52  ;;  %v4584_v44 = vmul.f32 0.03125, %v4550_v40 }
 0xd22   :  { %v4597_v58 = vadd.f32 1e-05, %v4581_v46  ;;  %v4600_v60 = vadd.f32 1e-05, %v4584_v44 }
 0xd23   :  { %v4535_v12 = vpop.xlane.xlu0 %4534  ;;  %v4544_v7 = vpop.xlane.xlu1 %4543 }
 0xd24   :  { %5931 = vrsqrt.f32 %v4597_v58  ;;  %v4579_v56 = vmul.f32 0.03125, %v4535_v12  ;;  %v4582_v28 = vmul.f32 0.03125, %v4544_v7 }
 0xd25   :  { %5933 = vrsqrt.f32 %v4600_v60 }
 0xd26   :  { %v5928_v31 = vpop.eup %5927  ;;  %v4595_v15 = vadd.f32 1e-05, %v4579_v56  ;;  %v4598_v50 = vadd.f32 1e-05, %v4582_v28 }
 0xd27   :  { %v4628_v27 = vmul.f32 %v5928_v31, %v8444_v59  ;;  %v4553_v39 = vpop.xlane.xlu0 %4552  ;;  %v4562_v2 = vpop.xlane.xlu1 %4561 }
 0xd28   :  { %5935 = vrsqrt.f32 %v4595_v15  ;;  %v4585_v10 = vmul.f32 0.03125, %v4553_v39  ;;  %v4588_v62 = vmul.f32 0.03125, %v4562_v2 }
 0xd29   :  { %v4648_v35 = vmul.f32 %v8544_v22, %v4628_v27  ;;  %5937 = vrsqrt.f32 %v4598_v50 }
 0xd2a   :  { %v5930_v48 = vpop.eup %5929  ;;  %v4601_v53 = vadd.f32 1e-05, %v4585_v10  ;;  %v4604_v6 = vadd.f32 1e-05, %v4588_v62 }
 0xd2b   :  { %v4668_v51 = vadd.f32 %v8546_v29, %v4648_v35  ;;  %v4626_v25 = vmul.f32 %v5930_v48, %v8449_v23  ;;  %v4547_v20 = vpop.xlane.xlu0 %4546  ;;  %v4556_v26 = vpop.xlane.xlu1 %4555 }
 0xd2c   :  { %5939 = vrsqrt.f32 %v4601_v53  ;;  %v4583_v19 = vmul.f32 0.03125, %v4547_v20  ;;  %v4586_v59 = vmul.f32 0.03125, %v4556_v26 }
 0xd2d   :  { %4684 = vst.msk [vmem:[%s8668_s8 + $0x10] sm:$0xff] %vm75_vm0, %v4668_v51  ;;  %v4646_v47 = vmul.f32 %v8544_v22, %v4626_v25  ;;  %5941 = vrsqrt.f32 %v4604_v6 }
 0xd2e   :  { %v5932_v36 = vpop.eup %5931  ;;  %v4599_v33 = vadd.f32 1e-05, %v4583_v19  ;;  %v4602_v45 = vadd.f32 1e-05, %v4586_v59 }
 0xd2f   :  { %v5934_v16 = vpop.eup %5933  ;;  %v4666_v57 = vadd.f32 %v8546_v29, %v4646_v47  ;;  %v4629_v23 = vmul.f32 %v5932_v36, %v8458_v30  ;;  %v4565_v11 = vpop.xlane.xlu0 %4564 }
 0xd30   :  { %v4632_v14 = vmul.f32 %v5934_v16, %v8461_v4  ;;  %5943 = vrsqrt.f32 %v4599_v33  ;;  %v4589_v1 = vmul.f32 0.03125, %v4565_v11  ;;  %v4568_v43 = vpop.xlane.xlu1 %4567 }
 0xd31   :  { %4682 = vst.msk [vmem:[%s8668_s8] sm:$0xff] %vm75_vm0, %v4666_v57  ;;  %v4649_v5 = vmul.f32 %v8544_v22, %v4629_v23  ;;  %5945 = vrsqrt.f32 %v4602_v45  ;;  %v4590_v37 = vmul.f32 0.03125, %v4568_v43 }
 0xd32   :  { %v5936_v55 = vpop.eup %5935  ;;  %v4652_v32 = vmul.f32 %v8544_v22, %v4632_v14  ;;  %v4605_v38 = vadd.f32 1e-05, %v4589_v1 }
 0xd33   :  { %v5938_v30 = vpop.eup %5937  ;;  %v4669_v18 = vadd.f32 %v8546_v29, %v4649_v5  ;;  %v4627_v4 = vmul.f32 %v5936_v55, %v8455_v61  ;;  %v4606_v52 = vadd.f32 1e-05, %v4590_v37  ;;  %v4559_v40 = vpop.xlane.xlu0 %4558 }
 0xd34   :  { %v4672_v46 = vadd.f32 %v8546_v29, %v4652_v32  ;;  %v4630_v44 = vmul.f32 %v5938_v30, %v8474_v41  ;;  %5947 = vrsqrt.f32 %v4605_v38  ;;  %v4587_v49 = vmul.f32 0.03125, %v4559_v40  ;;  %v4574_v58 = vpop.xlane.xlu1 %4573 }
 0xd35   :  { %4685 = vst.msk [vmem:[%s8668_s8 + $0x18] sm:$0xff] %vm75_vm0, %v4669_v18  ;;  %v4647_v60 = vmul.f32 %v8544_v22, %v4627_v4  ;;  %5949 = vrsqrt.f32 %v4606_v52  ;;  %v4592_v24 = vmul.f32 0.03125, %v4574_v58 }
 0xd36   :  { %v5940_v12 = vpop.eup %5939  ;;  %4688 = vst.msk [vmem:[%s8668_s8 + $0x30] sm:$0xff] %vm75_vm0, %v4672_v46  ;;  %v4650_v61 = vmul.f32 %v8544_v22, %v4630_v44  ;;  %v4603_v41 = vadd.f32 1e-05, %v4587_v49 }
 0xd37   :  { %v5942_v7 = vpop.eup %5941  ;;  %v4667_v56 = vadd.f32 %v8546_v29, %v4647_v60  ;;  %v4633_v28 = vmul.f32 %v5940_v12, %v8471_v8  ;;  %v4608_v42 = vadd.f32 1e-05, %v4592_v24  ;;  %v4571_v31 = vpop.xlane.xlu0 %4570 }
 0xd38   :  { %v4670_v15 = vadd.f32 %v8546_v29, %v4650_v61  ;;  %v4636_v50 = vmul.f32 %v5942_v7, %v8486_v0  ;;  %5951 = vrsqrt.f32 %v4603_v41  ;;  %v4591_v27 = vmul.f32 0.03125, %v4571_v31 }
 0xd39   :  { %4683 = vst.msk [vmem:[%s8668_s8 + $0x8] sm:$0xff] %vm75_vm0, %v4667_v56  ;;  %v4653_v39 = vmul.f32 %v8544_v22, %v4633_v28  ;;  %5953 = vrsqrt.f32 %v4608_v42 }
 0xd3a   :  { %v5944_v2 = vpop.eup %5943  ;;  %4686 = vst.msk [vmem:[%s8668_s8 + $0x20] sm:$0xff] %vm75_vm0, %v4670_v15  ;;  %v4656_v8 = vmul.f32 %v8544_v22, %v4636_v50  ;;  %v4607_v10 = vadd.f32 1e-05, %v4591_v27 }
 0xd3b   :  { %v5946_v0 = vpop.eup %5945  ;;  %v4673_v62 = vadd.f32 %v8546_v29, %v4653_v39  ;;  %v4631_v35 = vmul.f32 %v5944_v2, %v8483_v13  ;;  %v4577_v48 = vpop.xlane.xlu0 %4576 }
 0xd3c   :  { %v4676_v53 = vadd.f32 %v8546_v29, %v4656_v8  ;;  %v4634_v6 = vmul.f32 %v5946_v0, %v8497_v54  ;;  %5955 = vrsqrt.f32 %v4607_v10  ;;  %v4593_v51 = vmul.f32 0.03125, %v4577_v48 }
 0xd3d   :  { %4689 = vst.msk [vmem:[%s8668_s8 + $0x38] sm:$0xff] %vm75_vm0, %v4673_v62  ;;  %v4651_v25 = vmul.f32 %v8544_v22, %v4631_v35 }
 0xd3e   :  { %v5948_v20 = vpop.eup %5947  ;;  %4692 = vst.msk [vmem:[%s8668_s8 + $0x50] sm:$0xff] %vm75_vm0, %v4676_v53  ;;  %v4654_v13 = vmul.f32 %v8544_v22, %v4634_v6  ;;  %v4609_v26 = vadd.f32 1e-05, %v4593_v51 }
 0xd3f   :  { %v5950_v19 = vpop.eup %5949  ;;  %v4671_v54 = vadd.f32 %v8546_v29, %v4651_v25  ;;  %v4637_v59 = vmul.f32 %v5948_v20, %v8494_v17 }
 0xd40   :  { %v4674_v47 = vadd.f32 %v8546_v29, %v4654_v13  ;;  %v4638_v36 = vmul.f32 %v5950_v19, %v8512_v34  ;;  %5957 = vrsqrt.f32 %v4609_v26 }
 0xd41   :  { %4687 = vst.msk [vmem:[%s8668_s8 + $0x28] sm:$0xff] %vm75_vm0, %v4671_v54  ;;  %v4657_v33 = vmul.f32 %v8544_v22, %v4637_v59 }
 0xd42   :  { %v5952_v45 = vpop.eup %5951  ;;  %4690 = vst.msk [vmem:[%s8668_s8 + $0x40] sm:$0xff] %vm75_vm0, %v4674_v47  ;;  %v4658_v17 = vmul.f32 %v8544_v22, %v4638_v36 }
 0xd43   :  { %v5954_v16 = vpop.eup %5953  ;;  %v4677_v57 = vadd.f32 %v8546_v29, %v4657_v33  ;;  %v4635_v34 = vmul.f32 %v5952_v45, %v8505_v3 }
 0xd44   :  { %v4678_v23 = vadd.f32 %v8546_v29, %v4658_v17  ;;  %v4640_v11 = vmul.f32 %v5954_v16, %v8523_v21 }
 0xd45   :  { %4693 = vst.msk [vmem:[%s8668_s8 + $0x58] sm:$0xff] %vm75_vm0, %v4677_v57  ;;  %v4655_v14 = vmul.f32 %v8544_v22, %v4635_v34 }
 0xd46   :  { %v5956_v1 = vpop.eup %5955  ;;  %4694 = vst.msk [vmem:[%s8668_s8 + $0x60] sm:$0xff] %vm75_vm0, %v4678_v23  ;;  %v4660_v43 = vmul.f32 %v8544_v22, %v4640_v11 }
 0xd47   :  { %v4675_v3 = vadd.f32 %v8546_v29, %v4655_v14  ;;  %v4639_v5 = vmul.f32 %v5956_v1, %v8517_v63 }
 0xd48   :  { %v4680_v21 = vadd.f32 %v8546_v29, %v4660_v43 }
 0xd49   :  { %4691 = vst.msk [vmem:[%s8668_s8 + $0x48] sm:$0xff] %vm75_vm0, %v4675_v3  ;;  %v4659_v37 = vmul.f32 %v8544_v22, %v4639_v5 }
 0xd4a   :  { %v5958_v55 = vpop.eup %5957  ;;  %4696 = vst.msk [vmem:[%s8668_s8 + $0x70] sm:$0xff] %vm75_vm0, %v4680_v21 }
 0xd4b   :  { %v4679_v32 = vadd.f32 %v8546_v29, %v4659_v37  ;;  %v4641_v38 = vmul.f32 %v5958_v55, %v8529_v9 }
 0xd4d   :  { %4695 = vst.msk [vmem:[%s8668_s8 + $0x68] sm:$0xff] %vm75_vm0, %v4679_v32  ;;  %v4661_v63 = vmul.f32 %v8544_v22, %v4641_v38 }
 0xd4f   :  { %v4681_v30 = vadd.f32 %v8546_v29, %v4661_v63 }
 0xd51   :  { %4697 = vst.msk [vmem:[%s8668_s8 + $0x78] sm:$0xff] %vm75_vm0, %v4681_v30 }

</bundles_post_ra>
